<compile_context>
chip_gen: v6e
topology: v6e:2x2x1
jax: 0.10.0
libtpu: 0.0.40
codegen_flags: <defaults>
</compile_context>

<pallas_src>
import functools

import numpy as np
import jax
import jax.numpy as jnp
from jax.experimental import pallas as pl
from jax.experimental.pallas import tpu as pltpu


# ----------------------------------------------------------------------------
# Pallas kernel: fused conv3x3 (single K=9*Cin matmul) + BN affine + opt. ReLU
# ----------------------------------------------------------------------------
def _conv_bn_kernel(p_ref, w_ref, s_ref, b_ref, o_ref, *, relu):
    # p_ref: (tm, 9*Cin)   bf16 im2col patches (M = B*H*W flattened)
    # w_ref: (9*Cin, Cout) bf16 conv weights
    # s_ref, b_ref: (1, Cout) f32 folded BN scale / bias (conv bias folded in)
    # o_ref: (tm, Cout) f32
    y = jnp.dot(p_ref[...], w_ref[...], preferred_element_type=jnp.float32)
    y = y * s_ref[...] + b_ref[...]
    if relu:
        y = jnp.maximum(y, 0.0)
    o_ref[...] = y


def _choose_m_tile(M, max_tile=256):
    """Largest M tile <= max_tile that divides M (all M here are multiples of 8)."""
    if M <= max_tile:
        return M
    for t in (256, 128, 64, 32, 16, 8):
        if M % t == 0:
            return t
    return M  # fall back to a single full block


def _im2col_3x3(x):
    # x: (B, H, W, C) -> (B*H*W, 9*C), zero padding 1 (matches Conv2d pad=1).
    # Tap order (dh, dw, cin) matches w_hwio.reshape(9*C, Cout) row-major order.
    B, H, W, C = x.shape
    xp = jnp.pad(x, ((0, 0), (1, 1), (1, 1), (0, 0)))
    taps = [xp[:, dh:dh + H, dw:dw + W, :] for dh in range(3) for dw in range(3)]
    patches = jnp.concatenate(taps, axis=-1)              # (B, H, W, 9*C)
    return patches.reshape(B * H * W, 9 * C)


def conv3x3_bn_act(x, w_hwio, scale, bias, relu=True):
    """x: (B,H,W,Cin) f32 -> (B,H,W,Cout) f32. Fused conv3x3 + BN + ReLU."""
    B, H, W, Cin = x.shape
    Cout = w_hwio.shape[-1]
    M, K = B * H * W, 9 * Cin

    patches = _im2col_3x3(x.astype(jnp.float32)).astype(jnp.bfloat16)   # (M, K)
    w2 = w_hwio.reshape(K, Cout).astype(jnp.bfloat16)                   # (K, Cout)
    s2 = scale.reshape(1, Cout).astype(jnp.float32)
    b2 = bias.reshape(1, Cout).astype(jnp.float32)

    tm = _choose_m_tile(M)
    kernel = functools.partial(_conv_bn_kernel, relu=relu)
    out = pl.pallas_call(
        kernel,
        out_shape=jax.ShapeDtypeStruct((M, Cout), jnp.float32),
        grid_spec=pltpu.PrefetchScalarGridSpec(
            num_scalar_prefetch=0,
            grid=(M // tm,),
            in_specs=[
                pl.BlockSpec((tm, K), lambda i: (i, 0)),
                pl.BlockSpec((K, Cout), lambda i: (0, 0)),
                pl.BlockSpec((1, Cout), lambda i: (0, 0)),
                pl.BlockSpec((1, Cout), lambda i: (0, 0)),
            ],
            out_specs=pl.BlockSpec((tm, Cout), lambda i: (i, 0)),
        ),
        compiler_params=pltpu.CompilerParams(
            dimension_semantics=("parallel",)),
    )(patches, w2, s2, b2)
    return out.reshape(B, H, W, Cout)


# ----------------------------------------------------------------------------
# Plain-JAX glue: 2x2 max-pool and bilinear(align_corners=True) 2x upsample
# ----------------------------------------------------------------------------
def maxpool2(x):
    B, H, W, C = x.shape
    return x.reshape(B, H // 2, 2, W // 2, 2, C).max(axis=(2, 4))


@functools.lru_cache(maxsize=None)
def _interp_matrix(n_in, n_out):
    # (n_out, n_in) 1-D linear interpolation matrix with align_corners=True
    # (built with numpy -> folded into the graph as a constant, no TPU gathers).
    m = np.zeros((n_out, n_in), np.float32)
    if n_in == 1 or n_out == 1:
        m[:, 0] = 1.0
        return jnp.asarray(m)
    s = np.arange(n_out, dtype=np.float64) * ((n_in - 1) / (n_out - 1))
    i0 = np.clip(np.floor(s).astype(np.int64), 0, n_in - 1)
    i1 = np.clip(i0 + 1, 0, n_in - 1)
    w = (s - i0).astype(np.float32)
    m[np.arange(n_out), i0] += 1.0 - w
    m[np.arange(n_out), i1] += w
    return jnp.asarray(m)


def upsample2x_bilinear_align_corners(x):
    # Matches nn.functional.interpolate(scale_factor=2, mode='bilinear',
    # align_corners=True); bilinear is separable, so it is two dense
    # interpolation-matrix contractions instead of gather indexing.
    B, H, W, C = x.shape
    My = _interp_matrix(H, 2 * H)          # (2H, H)
    Mx = _interp_matrix(W, 2 * W)          # (2W, W)
    y = jnp.einsum('oh,bhwc->bowc', My, x)
    return jnp.einsum('pw,bowc->bopc', Mx, y)


# ----------------------------------------------------------------------------
# Deterministic parameter construction (conv + BN folded to scale/bias)
# ----------------------------------------------------------------------------
def make_conv_bn_params(key, cin, cout, eps=1e-3):
    k = jax.random.split(key, 6)
    fan_in = float(cin * 9)
    w = jax.random.normal(k[0], (3, 3, cin, cout), jnp.float32) / jnp.sqrt(fan_in)
    conv_b = 0.1 * jax.random.normal(k[1], (cout,), jnp.float32)
    gamma = 1.0 + 0.1 * jax.random.normal(k[2], (cout,), jnp.float32)
    beta = 0.1 * jax.random.normal(k[3], (cout,), jnp.float32)
    running_mean = 0.1 * jax.random.normal(k[4], (cout,), jnp.float32)
    running_var = 1.0 + 0.1 * jnp.abs(jax.random.normal(k[5], (cout,), jnp.float32))
    scale = gamma / jnp.sqrt(running_var + eps)
    bias = beta + (conv_b - running_mean) * scale
    return {"w": w, "scale": scale, "bias": bias}


def make_params(key, n_channels=1, n_classes=1, nf=16):
    layer_channels = {
        "down0_0": (n_channels, nf), "down0_1": (nf, nf),
        "down1_0": (nf, 2 * nf), "down1_1": (2 * nf, 2 * nf),
        "down2_0": (2 * nf, 4 * nf), "down2_1": (4 * nf, 4 * nf),
        "bott_0": (4 * nf + 3, 8 * nf), "bott_1": (8 * nf, 8 * nf),
        "up3": (8 * nf, 4 * nf),
        "conv5_0": (8 * nf, 4 * nf), "conv5_1": (4 * nf, 4 * nf),
        "up2": (4 * nf, 2 * nf),
        "conv6_0": (4 * nf, 2 * nf), "conv6_1": (2 * nf, 2 * nf),
        "up1": (2 * nf, nf),
        "conv7_0": (2 * nf, nf), "conv7_1": (nf, n_classes),
    }
    keys = jax.random.split(key, len(layer_channels))
    return {name: make_conv_bn_params(k, cin, cout)
            for k, (name, (cin, cout)) in zip(keys, layer_channels.items())}


# ----------------------------------------------------------------------------
# smallUNet_2 forward (generator_output='delta' -> returns (x14, None))
# ----------------------------------------------------------------------------
def small_unet2_forward(params, x_nchw, desired_output, groundtruth_output):
    assert desired_output.shape == groundtruth_output.shape
    x = jnp.transpose(x_nchw.astype(jnp.float32), (0, 2, 3, 1))  # NCHW -> NHWC
    d = desired_output.astype(jnp.float32).reshape(-1)
    g = groundtruth_output.astype(jnp.float32).reshape(-1)

    def block(name, h, relu=True):
        p = params[name]
        return conv3x3_bn_act(h, p["w"], p["scale"], p["bias"], relu=relu)

    # encoder
    x0 = block("down0_1", block("down0_0", x))
    x1 = block("down1_1", block("down1_0", maxpool2(x0)))
    x2 = block("down2_1", block("down2_0", maxpool2(x1)))
    x4 = maxpool2(x2)  # down3

    B, H4, W4, _ = x4.shape
    d_map = jnp.broadcast_to(d.reshape(B, 1, 1, 1), (B, H4, W4, 1))
    g_map = jnp.broadcast_to(g.reshape(B, 1, 1, 1), (B, H4, W4, 1))
    x5 = jnp.concatenate([x4, d_map, g_map, g_map - d_map], axis=-1)

    x6 = block("bott_1", block("bott_0", x5))

    # decoder
    xu3 = block("up3", upsample2x_bilinear_align_corners(x6))
    x11 = block("conv5_1", block("conv5_0", jnp.concatenate([xu3, x2], axis=-1)))
    xu2 = block("up2", upsample2x_bilinear_align_corners(x11))
    x12 = block("conv6_1", block("conv6_0", jnp.concatenate([xu2, x1], axis=-1)))
    xu1 = block("up1", upsample2x_bilinear_align_corners(x12))
    h = block("conv7_0", jnp.concatenate([xu1, x0], axis=-1))
    x13 = block("conv7_1", h, relu=False)   # last activation is Identity

    x14 = jnp.transpose(x13, (0, 3, 1, 2))  # back to NCHW
    # opt.generator_output == 'delta' -> output_delta
    return x14, None


# ----------------------------------------------------------------------------
if __name__ == "__main__":
    B, n_channels, H, W = 2, 1, 16, 16
    n_classes, nf = 1, 16

    key = jax.random.PRNGKey(0)
    kx, kd, kg, kp = jax.random.split(key, 4)
    x = jax.random.normal(kx, (B, n_channels, H, W), jnp.float32)
    desired_output = jax.random.normal(kd, (B,), jnp.float32)
    groundtruth_output = jax.random.normal(kg, (B,), jnp.float32)

    params = make_params(kp, n_channels=n_channels, n_classes=n_classes, nf=nf)

    fwd = jax.jit(small_unet2_forward)
    delta, flow = fwd(params, x, desired_output, groundtruth_output)
    delta = jax.block_until_ready(delta)
    assert delta.shape == (B, n_classes, H, W), delta.shape
    assert flow is None
    assert bool(jnp.isfinite(delta).all())
    print("KERNEL_OK")
</pallas_src>

<mosaic_0001>
module attributes {stable_mosaic.version = 11 : i64} {
  func.func @_conv_bn_kernel(%arg0: i32, %arg1: memref<256x9xbf16, #tpu.memory_space<vmem>>, %arg2: memref<9x16xbf16, #tpu.memory_space<vmem>>, %arg3: memref<1x16xf32, #tpu.memory_space<vmem>>, %arg4: memref<1x16xf32, #tpu.memory_space<vmem>>, %arg5: memref<256x16xf32, #tpu.memory_space<vmem>>) attributes {dimension_semantics = [#tpu.dimension_semantics<parallel>], iteration_bounds = array<i64: 2>, scalar_prefetch = 0 : i64, scratch_operands = 0 : i64, tpu.core_type = #tpu.core_type<tc>, window_params = [{transform_indices = @transform_0, window_bounds = array<i64: 256, 9>}, {pipeline_mode = #tpu.pipeline_mode<synchronous>, transform_indices = @transform_1, window_bounds = array<i64: 9, 16>}, {pipeline_mode = #tpu.pipeline_mode<synchronous>, transform_indices = @transform_2, window_bounds = array<i64: 1, 16>}, {pipeline_mode = #tpu.pipeline_mode<synchronous>, transform_indices = @transform_3, window_bounds = array<i64: 1, 16>}, {transform_indices = @transform_4, window_bounds = array<i64: 256, 16>}]} {
    %c0 = arith.constant 0 : index
    %c0_0 = arith.constant 0 : index
    %0 = vector.load %arg1[%c0, %c0_0] : memref<256x9xbf16, #tpu.memory_space<vmem>>, vector<256x9xbf16>
    %c0_1 = arith.constant 0 : index
    %c0_2 = arith.constant 0 : index
    %1 = vector.load %arg2[%c0_1, %c0_2] : memref<9x16xbf16, #tpu.memory_space<vmem>>, vector<9x16xbf16>
    %cst = arith.constant dense<0.000000e+00> : vector<256x16xf32>
    %2 = tpu.matmul %0, %1, %cst {dimension_numbers = #tpu.dot_dimension_numbers<[1], [0], [0], [1], [0, 0, 1, 1], [], []>} : vector<256x9xbf16>, vector<9x16xbf16>, vector<256x16xf32> -> vector<256x16xf32>
    %c0_3 = arith.constant 0 : index
    %c0_4 = arith.constant 0 : index
    %3 = vector.load %arg3[%c0_3, %c0_4] : memref<1x16xf32, #tpu.memory_space<vmem>>, vector<1x16xf32>
    %4 = vector.broadcast %3 : vector<1x16xf32> to vector<256x16xf32>
    %5 = arith.mulf %2, %4 : vector<256x16xf32>
    %c0_5 = arith.constant 0 : index
    %c0_6 = arith.constant 0 : index
    %6 = vector.load %arg4[%c0_5, %c0_6] : memref<1x16xf32, #tpu.memory_space<vmem>>, vector<1x16xf32>
    %7 = vector.broadcast %6 : vector<1x16xf32> to vector<256x16xf32>
    %8 = arith.addf %5, %7 : vector<256x16xf32>
    %cst_7 = arith.constant 0.000000e+00 : f32
    %9 = vector.broadcast %cst_7 : f32 to vector<256x16xf32>
    %10 = arith.maximumf %8, %9 : vector<256x16xf32>
    %c0_8 = arith.constant 0 : index
    %c0_9 = arith.constant 0 : index
    %11 = vector.load %arg5[%c0_8, %c0_9] : memref<256x16xf32, #tpu.memory_space<vmem>>, vector<256x16xf32>
    tpu.vector_store %arg5[%c0_8, %c0_9], %10 {strides = array<i32>} : memref<256x16xf32, #tpu.memory_space<vmem>>, vector<256x16xf32>,
    return
  }
  func.func @transform_0(%arg0: i32) -> (i32, i32) {
    %c0_i32 = arith.constant 0 : i32
    %c0_i32_0 = arith.constant 0 : i32
    return %arg0, %c0_i32 : i32, i32
  }
  func.func @transform_1(%arg0: i32) -> (i32, i32) {
    %c0_i32 = arith.constant 0 : i32
    %c0_i32_0 = arith.constant 0 : i32
    %c0_i32_1 = arith.constant 0 : i32
    return %c0_i32, %c0_i32_0 : i32, i32
  }
  func.func @transform_2(%arg0: i32) -> (i32, i32) {
    %c0_i32 = arith.constant 0 : i32
    %c0_i32_0 = arith.constant 0 : i32
    %c0_i32_1 = arith.constant 0 : i32
    return %c0_i32, %c0_i32_0 : i32, i32
  }
  func.func @transform_3(%arg0: i32) -> (i32, i32) {
    %c0_i32 = arith.constant 0 : i32
    %c0_i32_0 = arith.constant 0 : i32
    %c0_i32_1 = arith.constant 0 : i32
    return %c0_i32, %c0_i32_0 : i32, i32
  }
  func.func @transform_4(%arg0: i32) -> (i32, i32) {
    %c0_i32 = arith.constant 0 : i32
    %c0_i32_0 = arith.constant 0 : i32
    return %arg0, %c0_i32 : i32, i32
  }
}

module attributes {stable_mosaic.version = 11 : i64} {
  func.func @_conv_bn_kernel(%arg0: i32, %arg1: memref<256x144xbf16, #tpu.memory_space<vmem>>, %arg2: memref<144x16xbf16, #tpu.memory_space<vmem>>, %arg3: memref<1x16xf32, #tpu.memory_space<vmem>>, %arg4: memref<1x16xf32, #tpu.memory_space<vmem>>, %arg5: memref<256x16xf32, #tpu.memory_space<vmem>>) attributes {dimension_semantics = [#tpu.dimension_semantics<parallel>], iteration_bounds = array<i64: 2>, scalar_prefetch = 0 : i64, scratch_operands = 0 : i64, tpu.core_type = #tpu.core_type<tc>, window_params = [{transform_indices = @transform_0, window_bounds = array<i64: 256, 144>}, {pipeline_mode = #tpu.pipeline_mode<synchronous>, transform_indices = @transform_1, window_bounds = array<i64: 144, 16>}, {pipeline_mode = #tpu.pipeline_mode<synchronous>, transform_indices = @transform_2, window_bounds = array<i64: 1, 16>}, {pipeline_mode = #tpu.pipeline_mode<synchronous>, transform_indices = @transform_3, window_bounds = array<i64: 1, 16>}, {transform_indices = @transform_4, window_bounds = array<i64: 256, 16>}]} {
    %c0 = arith.constant 0 : index
    %c0_0 = arith.constant 0 : index
    %0 = vector.load %arg1[%c0, %c0_0] : memref<256x144xbf16, #tpu.memory_space<vmem>>, vector<256x144xbf16>
    %c0_1 = arith.constant 0 : index
    %c0_2 = arith.constant 0 : index
    %1 = vector.load %arg2[%c0_1, %c0_2] : memref<144x16xbf16, #tpu.memory_space<vmem>>, vector<144x16xbf16>
    %cst = arith.constant dense<0.000000e+00> : vector<256x16xf32>
    %2 = tpu.matmul %0, %1, %cst {dimension_numbers = #tpu.dot_dimension_numbers<[1], [0], [0], [1], [0, 0, 1, 1], [], []>} : vector<256x144xbf16>, vector<144x16xbf16>, vector<256x16xf32> -> vector<256x16xf32>
    %c0_3 = arith.constant 0 : index
    %c0_4 = arith.constant 0 : index
    %3 = vector.load %arg3[%c0_3, %c0_4] : memref<1x16xf32, #tpu.memory_space<vmem>>, vector<1x16xf32>
    %4 = vector.broadcast %3 : vector<1x16xf32> to vector<256x16xf32>
    %5 = arith.mulf %2, %4 : vector<256x16xf32>
    %c0_5 = arith.constant 0 : index
    %c0_6 = arith.constant 0 : index
    %6 = vector.load %arg4[%c0_5, %c0_6] : memref<1x16xf32, #tpu.memory_space<vmem>>, vector<1x16xf32>
    %7 = vector.broadcast %6 : vector<1x16xf32> to vector<256x16xf32>
    %8 = arith.addf %5, %7 : vector<256x16xf32>
    %cst_7 = arith.constant 0.000000e+00 : f32
    %9 = vector.broadcast %cst_7 : f32 to vector<256x16xf32>
    %10 = arith.maximumf %8, %9 : vector<256x16xf32>
    %c0_8 = arith.constant 0 : index
    %c0_9 = arith.constant 0 : index
    %11 = vector.load %arg5[%c0_8, %c0_9] : memref<256x16xf32, #tpu.memory_space<vmem>>, vector<256x16xf32>
    tpu.vector_store %arg5[%c0_8, %c0_9], %10 {strides = array<i32>} : memref<256x16xf32, #tpu.memory_space<vmem>>, vector<256x16xf32>,
    return
  }
  func.func @transform_0(%arg0: i32) -> (i32, i32) {
    %c0_i32 = arith.constant 0 : i32
    %c0_i32_0 = arith.constant 0 : i32
    return %arg0, %c0_i32 : i32, i32
  }
  func.func @transform_1(%arg0: i32) -> (i32, i32) {
    %c0_i32 = arith.constant 0 : i32
    %c0_i32_0 = arith.constant 0 : i32
    %c0_i32_1 = arith.constant 0 : i32
    return %c0_i32, %c0_i32_0 : i32, i32
  }
  func.func @transform_2(%arg0: i32) -> (i32, i32) {
    %c0_i32 = arith.constant 0 : i32
    %c0_i32_0 = arith.constant 0 : i32
    %c0_i32_1 = arith.constant 0 : i32
    return %c0_i32, %c0_i32_0 : i32, i32
  }
  func.func @transform_3(%arg0: i32) -> (i32, i32) {
    %c0_i32 = arith.constant 0 : i32
    %c0_i32_0 = arith.constant 0 : i32
    %c0_i32_1 = arith.constant 0 : i32
    return %c0_i32, %c0_i32_0 : i32, i32
  }
  func.func @transform_4(%arg0: i32) -> (i32, i32) {
    %c0_i32 = arith.constant 0 : i32
    %c0_i32_0 = arith.constant 0 : i32
    return %arg0, %c0_i32 : i32, i32
  }
}

module attributes {stable_mosaic.version = 11 : i64} {
  func.func @_conv_bn_kernel(%arg0: i32, %arg1: memref<128x144xbf16, #tpu.memory_space<vmem>>, %arg2: memref<144x32xbf16, #tpu.memory_space<vmem>>, %arg3: memref<1x32xf32, #tpu.memory_space<vmem>>, %arg4: memref<1x32xf32, #tpu.memory_space<vmem>>, %arg5: memref<128x32xf32, #tpu.memory_space<vmem>>) attributes {dimension_semantics = [#tpu.dimension_semantics<parallel>], iteration_bounds = array<i64: 1>, scalar_prefetch = 0 : i64, scratch_operands = 0 : i64, tpu.core_type = #tpu.core_type<tc>, window_params = [{transform_indices = @transform_0, window_bounds = array<i64: 128, 144>}, {pipeline_mode = #tpu.pipeline_mode<synchronous>, transform_indices = @transform_1, window_bounds = array<i64: 144, 32>}, {pipeline_mode = #tpu.pipeline_mode<synchronous>, transform_indices = @transform_2, window_bounds = array<i64: 1, 32>}, {pipeline_mode = #tpu.pipeline_mode<synchronous>, transform_indices = @transform_3, window_bounds = array<i64: 1, 32>}, {transform_indices = @transform_4, window_bounds = array<i64: 128, 32>}]} {
    %c0 = arith.constant 0 : index
    %c0_0 = arith.constant 0 : index
    %0 = vector.load %arg1[%c0, %c0_0] : memref<128x144xbf16, #tpu.memory_space<vmem>>, vector<128x144xbf16>
    %c0_1 = arith.constant 0 : index
    %c0_2 = arith.constant 0 : index
    %1 = vector.load %arg2[%c0_1, %c0_2] : memref<144x32xbf16, #tpu.memory_space<vmem>>, vector<144x32xbf16>
    %cst = arith.constant dense<0.000000e+00> : vector<128x32xf32>
    %2 = tpu.matmul %0, %1, %cst {dimension_numbers = #tpu.dot_dimension_numbers<[1], [0], [0], [1], [0, 0, 1, 1], [], []>} : vector<128x144xbf16>, vector<144x32xbf16>, vector<128x32xf32> -> vector<128x32xf32>
    %c0_3 = arith.constant 0 : index
    %c0_4 = arith.constant 0 : index
    %3 = vector.load %arg3[%c0_3, %c0_4] : memref<1x32xf32, #tpu.memory_space<vmem>>, vector<1x32xf32>
    %4 = vector.broadcast %3 : vector<1x32xf32> to vector<128x32xf32>
    %5 = arith.mulf %2, %4 : vector<128x32xf32>
    %c0_5 = arith.constant 0 : index
    %c0_6 = arith.constant 0 : index
    %6 = vector.load %arg4[%c0_5, %c0_6] : memref<1x32xf32, #tpu.memory_space<vmem>>, vector<1x32xf32>
    %7 = vector.broadcast %6 : vector<1x32xf32> to vector<128x32xf32>
    %8 = arith.addf %5, %7 : vector<128x32xf32>
    %cst_7 = arith.constant 0.000000e+00 : f32
    %9 = vector.broadcast %cst_7 : f32 to vector<128x32xf32>
    %10 = arith.maximumf %8, %9 : vector<128x32xf32>
    %c0_8 = arith.constant 0 : index
    %c0_9 = arith.constant 0 : index
    %11 = vector.load %arg5[%c0_8, %c0_9] : memref<128x32xf32, #tpu.memory_space<vmem>>, vector<128x32xf32>
    tpu.vector_store %arg5[%c0_8, %c0_9], %10 {strides = array<i32>} : memref<128x32xf32, #tpu.memory_space<vmem>>, vector<128x32xf32>,
    return
  }
  func.func @transform_0(%arg0: i32) -> (i32, i32) {
    %c0_i32 = arith.constant 0 : i32
    %c0_i32_0 = arith.constant 0 : i32
    return %arg0, %c0_i32 : i32, i32
  }
  func.func @transform_1(%arg0: i32) -> (i32, i32) {
    %c0_i32 = arith.constant 0 : i32
    %c0_i32_0 = arith.constant 0 : i32
    %c0_i32_1 = arith.constant 0 : i32
    return %c0_i32, %c0_i32_0 : i32, i32
  }
  func.func @transform_2(%arg0: i32) -> (i32, i32) {
    %c0_i32 = arith.constant 0 : i32
    %c0_i32_0 = arith.constant 0 : i32
    %c0_i32_1 = arith.constant 0 : i32
    return %c0_i32, %c0_i32_0 : i32, i32
  }
  func.func @transform_3(%arg0: i32) -> (i32, i32) {
    %c0_i32 = arith.constant 0 : i32
    %c0_i32_0 = arith.constant 0 : i32
    %c0_i32_1 = arith.constant 0 : i32
    return %c0_i32, %c0_i32_0 : i32, i32
  }
  func.func @transform_4(%arg0: i32) -> (i32, i32) {
    %c0_i32 = arith.constant 0 : i32
    %c0_i32_0 = arith.constant 0 : i32
    return %arg0, %c0_i32 : i32, i32
  }
}

module attributes {stable_mosaic.version = 11 : i64} {
  func.func @_conv_bn_kernel(%arg0: i32, %arg1: memref<128x288xbf16, #tpu.memory_space<vmem>>, %arg2: memref<288x32xbf16, #tpu.memory_space<vmem>>, %arg3: memref<1x32xf32, #tpu.memory_space<vmem>>, %arg4: memref<1x32xf32, #tpu.memory_space<vmem>>, %arg5: memref<128x32xf32, #tpu.memory_space<vmem>>) attributes {dimension_semantics = [#tpu.dimension_semantics<parallel>], iteration_bounds = array<i64: 1>, scalar_prefetch = 0 : i64, scratch_operands = 0 : i64, tpu.core_type = #tpu.core_type<tc>, window_params = [{transform_indices = @transform_0, window_bounds = array<i64: 128, 288>}, {pipeline_mode = #tpu.pipeline_mode<synchronous>, transform_indices = @transform_1, window_bounds = array<i64: 288, 32>}, {pipeline_mode = #tpu.pipeline_mode<synchronous>, transform_indices = @transform_2, window_bounds = array<i64: 1, 32>}, {pipeline_mode = #tpu.pipeline_mode<synchronous>, transform_indices = @transform_3, window_bounds = array<i64: 1, 32>}, {transform_indices = @transform_4, window_bounds = array<i64: 128, 32>}]} {
    %c0 = arith.constant 0 : index
    %c0_0 = arith.constant 0 : index
    %0 = vector.load %arg1[%c0, %c0_0] : memref<128x288xbf16, #tpu.memory_space<vmem>>, vector<128x288xbf16>
    %c0_1 = arith.constant 0 : index
    %c0_2 = arith.constant 0 : index
    %1 = vector.load %arg2[%c0_1, %c0_2] : memref<288x32xbf16, #tpu.memory_space<vmem>>, vector<288x32xbf16>
    %cst = arith.constant dense<0.000000e+00> : vector<128x32xf32>
    %2 = tpu.matmul %0, %1, %cst {dimension_numbers = #tpu.dot_dimension_numbers<[1], [0], [0], [1], [0, 0, 1, 1], [], []>} : vector<128x288xbf16>, vector<288x32xbf16>, vector<128x32xf32> -> vector<128x32xf32>
    %c0_3 = arith.constant 0 : index
    %c0_4 = arith.constant 0 : index
    %3 = vector.load %arg3[%c0_3, %c0_4] : memref<1x32xf32, #tpu.memory_space<vmem>>, vector<1x32xf32>
    %4 = vector.broadcast %3 : vector<1x32xf32> to vector<128x32xf32>
    %5 = arith.mulf %2, %4 : vector<128x32xf32>
    %c0_5 = arith.constant 0 : index
    %c0_6 = arith.constant 0 : index
    %6 = vector.load %arg4[%c0_5, %c0_6] : memref<1x32xf32, #tpu.memory_space<vmem>>, vector<1x32xf32>
    %7 = vector.broadcast %6 : vector<1x32xf32> to vector<128x32xf32>
    %8 = arith.addf %5, %7 : vector<128x32xf32>
    %cst_7 = arith.constant 0.000000e+00 : f32
    %9 = vector.broadcast %cst_7 : f32 to vector<128x32xf32>
    %10 = arith.maximumf %8, %9 : vector<128x32xf32>
    %c0_8 = arith.constant 0 : index
    %c0_9 = arith.constant 0 : index
    %11 = vector.load %arg5[%c0_8, %c0_9] : memref<128x32xf32, #tpu.memory_space<vmem>>, vector<128x32xf32>
    tpu.vector_store %arg5[%c0_8, %c0_9], %10 {strides = array<i32>} : memref<128x32xf32, #tpu.memory_space<vmem>>, vector<128x32xf32>,
    return
  }
  func.func @transform_0(%arg0: i32) -> (i32, i32) {
    %c0_i32 = arith.constant 0 : i32
    %c0_i32_0 = arith.constant 0 : i32
    return %arg0, %c0_i32 : i32, i32
  }
  func.func @transform_1(%arg0: i32) -> (i32, i32) {
    %c0_i32 = arith.constant 0 : i32
    %c0_i32_0 = arith.constant 0 : i32
    %c0_i32_1 = arith.constant 0 : i32
    return %c0_i32, %c0_i32_0 : i32, i32
  }
  func.func @transform_2(%arg0: i32) -> (i32, i32) {
    %c0_i32 = arith.constant 0 : i32
    %c0_i32_0 = arith.constant 0 : i32
    %c0_i32_1 = arith.constant 0 : i32
    return %c0_i32, %c0_i32_0 : i32, i32
  }
  func.func @transform_3(%arg0: i32) -> (i32, i32) {
    %c0_i32 = arith.constant 0 : i32
    %c0_i32_0 = arith.constant 0 : i32
    %c0_i32_1 = arith.constant 0 : i32
    return %c0_i32, %c0_i32_0 : i32, i32
  }
  func.func @transform_4(%arg0: i32) -> (i32, i32) {
    %c0_i32 = arith.constant 0 : i32
    %c0_i32_0 = arith.constant 0 : i32
    return %arg0, %c0_i32 : i32, i32
  }
}

module attributes {stable_mosaic.version = 11 : i64} {
  func.func @_conv_bn_kernel(%arg0: i32, %arg1: memref<32x288xbf16, #tpu.memory_space<vmem>>, %arg2: memref<288x64xbf16, #tpu.memory_space<vmem>>, %arg3: memref<1x64xf32, #tpu.memory_space<vmem>>, %arg4: memref<1x64xf32, #tpu.memory_space<vmem>>, %arg5: memref<32x64xf32, #tpu.memory_space<vmem>>) attributes {dimension_semantics = [#tpu.dimension_semantics<parallel>], iteration_bounds = array<i64: 1>, scalar_prefetch = 0 : i64, scratch_operands = 0 : i64, tpu.core_type = #tpu.core_type<tc>, window_params = [{transform_indices = @transform_0, window_bounds = array<i64: 32, 288>}, {pipeline_mode = #tpu.pipeline_mode<synchronous>, transform_indices = @transform_1, window_bounds = array<i64: 288, 64>}, {pipeline_mode = #tpu.pipeline_mode<synchronous>, transform_indices = @transform_2, window_bounds = array<i64: 1, 64>}, {pipeline_mode = #tpu.pipeline_mode<synchronous>, transform_indices = @transform_3, window_bounds = array<i64: 1, 64>}, {transform_indices = @transform_4, window_bounds = array<i64: 32, 64>}]} {
    %c0 = arith.constant 0 : index
    %c0_0 = arith.constant 0 : index
    %0 = vector.load %arg1[%c0, %c0_0] : memref<32x288xbf16, #tpu.memory_space<vmem>>, vector<32x288xbf16>
    %c0_1 = arith.constant 0 : index
    %c0_2 = arith.constant 0 : index
    %1 = vector.load %arg2[%c0_1, %c0_2] : memref<288x64xbf16, #tpu.memory_space<vmem>>, vector<288x64xbf16>
    %cst = arith.constant dense<0.000000e+00> : vector<32x64xf32>
    %2 = tpu.matmul %0, %1, %cst {dimension_numbers = #tpu.dot_dimension_numbers<[1], [0], [0], [1], [0, 0, 1, 1], [], []>} : vector<32x288xbf16>, vector<288x64xbf16>, vector<32x64xf32> -> vector<32x64xf32>
    %c0_3 = arith.constant 0 : index
    %c0_4 = arith.constant 0 : index
    %3 = vector.load %arg3[%c0_3, %c0_4] : memref<1x64xf32, #tpu.memory_space<vmem>>, vector<1x64xf32>
    %4 = vector.broadcast %3 : vector<1x64xf32> to vector<32x64xf32>
    %5 = arith.mulf %2, %4 : vector<32x64xf32>
    %c0_5 = arith.constant 0 : index
    %c0_6 = arith.constant 0 : index
    %6 = vector.load %arg4[%c0_5, %c0_6] : memref<1x64xf32, #tpu.memory_space<vmem>>, vector<1x64xf32>
    %7 = vector.broadcast %6 : vector<1x64xf32> to vector<32x64xf32>
    %8 = arith.addf %5, %7 : vector<32x64xf32>
    %cst_7 = arith.constant 0.000000e+00 : f32
    %9 = vector.broadcast %cst_7 : f32 to vector<32x64xf32>
    %10 = arith.maximumf %8, %9 : vector<32x64xf32>
    %c0_8 = arith.constant 0 : index
    %c0_9 = arith.constant 0 : index
    %11 = vector.load %arg5[%c0_8, %c0_9] : memref<32x64xf32, #tpu.memory_space<vmem>>, vector<32x64xf32>
    tpu.vector_store %arg5[%c0_8, %c0_9], %10 {strides = array<i32>} : memref<32x64xf32, #tpu.memory_space<vmem>>, vector<32x64xf32>,
    return
  }
  func.func @transform_0(%arg0: i32) -> (i32, i32) {
    %c0_i32 = arith.constant 0 : i32
    %c0_i32_0 = arith.constant 0 : i32
    return %arg0, %c0_i32 : i32, i32
  }
  func.func @transform_1(%arg0: i32) -> (i32, i32) {
    %c0_i32 = arith.constant 0 : i32
    %c0_i32_0 = arith.constant 0 : i32
    %c0_i32_1 = arith.constant 0 : i32
    return %c0_i32, %c0_i32_0 : i32, i32
  }
  func.func @transform_2(%arg0: i32) -> (i32, i32) {
    %c0_i32 = arith.constant 0 : i32
    %c0_i32_0 = arith.constant 0 : i32
    %c0_i32_1 = arith.constant 0 : i32
    return %c0_i32, %c0_i32_0 : i32, i32
  }
  func.func @transform_3(%arg0: i32) -> (i32, i32) {
    %c0_i32 = arith.constant 0 : i32
    %c0_i32_0 = arith.constant 0 : i32
    %c0_i32_1 = arith.constant 0 : i32
    return %c0_i32, %c0_i32_0 : i32, i32
  }
  func.func @transform_4(%arg0: i32) -> (i32, i32) {
    %c0_i32 = arith.constant 0 : i32
    %c0_i32_0 = arith.constant 0 : i32
    return %arg0, %c0_i32 : i32, i32
  }
}

module attributes {stable_mosaic.version = 11 : i64} {
  func.func @_conv_bn_kernel(%arg0: i32, %arg1: memref<32x576xbf16, #tpu.memory_space<vmem>>, %arg2: memref<576x64xbf16, #tpu.memory_space<vmem>>, %arg3: memref<1x64xf32, #tpu.memory_space<vmem>>, %arg4: memref<1x64xf32, #tpu.memory_space<vmem>>, %arg5: memref<32x64xf32, #tpu.memory_space<vmem>>) attributes {dimension_semantics = [#tpu.dimension_semantics<parallel>], iteration_bounds = array<i64: 1>, scalar_prefetch = 0 : i64, scratch_operands = 0 : i64, tpu.core_type = #tpu.core_type<tc>, window_params = [{transform_indices = @transform_0, window_bounds = array<i64: 32, 576>}, {pipeline_mode = #tpu.pipeline_mode<synchronous>, transform_indices = @transform_1, window_bounds = array<i64: 576, 64>}, {pipeline_mode = #tpu.pipeline_mode<synchronous>, transform_indices = @transform_2, window_bounds = array<i64: 1, 64>}, {pipeline_mode = #tpu.pipeline_mode<synchronous>, transform_indices = @transform_3, window_bounds = array<i64: 1, 64>}, {transform_indices = @transform_4, window_bounds = array<i64: 32, 64>}]} {
    %c0 = arith.constant 0 : index
    %c0_0 = arith.constant 0 : index
    %0 = vector.load %arg1[%c0, %c0_0] : memref<32x576xbf16, #tpu.memory_space<vmem>>, vector<32x576xbf16>
    %c0_1 = arith.constant 0 : index
    %c0_2 = arith.constant 0 : index
    %1 = vector.load %arg2[%c0_1, %c0_2] : memref<576x64xbf16, #tpu.memory_space<vmem>>, vector<576x64xbf16>
    %cst = arith.constant dense<0.000000e+00> : vector<32x64xf32>
    %2 = tpu.matmul %0, %1, %cst {dimension_numbers = #tpu.dot_dimension_numbers<[1], [0], [0], [1], [0, 0, 1, 1], [], []>} : vector<32x576xbf16>, vector<576x64xbf16>, vector<32x64xf32> -> vector<32x64xf32>
    %c0_3 = arith.constant 0 : index
    %c0_4 = arith.constant 0 : index
    %3 = vector.load %arg3[%c0_3, %c0_4] : memref<1x64xf32, #tpu.memory_space<vmem>>, vector<1x64xf32>
    %4 = vector.broadcast %3 : vector<1x64xf32> to vector<32x64xf32>
    %5 = arith.mulf %2, %4 : vector<32x64xf32>
    %c0_5 = arith.constant 0 : index
    %c0_6 = arith.constant 0 : index
    %6 = vector.load %arg4[%c0_5, %c0_6] : memref<1x64xf32, #tpu.memory_space<vmem>>, vector<1x64xf32>
    %7 = vector.broadcast %6 : vector<1x64xf32> to vector<32x64xf32>
    %8 = arith.addf %5, %7 : vector<32x64xf32>
    %cst_7 = arith.constant 0.000000e+00 : f32
    %9 = vector.broadcast %cst_7 : f32 to vector<32x64xf32>
    %10 = arith.maximumf %8, %9 : vector<32x64xf32>
    %c0_8 = arith.constant 0 : index
    %c0_9 = arith.constant 0 : index
    %11 = vector.load %arg5[%c0_8, %c0_9] : memref<32x64xf32, #tpu.memory_space<vmem>>, vector<32x64xf32>
    tpu.vector_store %arg5[%c0_8, %c0_9], %10 {strides = array<i32>} : memref<32x64xf32, #tpu.memory_space<vmem>>, vector<32x64xf32>,
    return
  }
  func.func @transform_0(%arg0: i32) -> (i32, i32) {
    %c0_i32 = arith.constant 0 : i32
    %c0_i32_0 = arith.constant 0 : i32
    return %arg0, %c0_i32 : i32, i32
  }
  func.func @transform_1(%arg0: i32) -> (i32, i32) {
    %c0_i32 = arith.constant 0 : i32
    %c0_i32_0 = arith.constant 0 : i32
    %c0_i32_1 = arith.constant 0 : i32
    return %c0_i32, %c0_i32_0 : i32, i32
  }
  func.func @transform_2(%arg0: i32) -> (i32, i32) {
    %c0_i32 = arith.constant 0 : i32
    %c0_i32_0 = arith.constant 0 : i32
    %c0_i32_1 = arith.constant 0 : i32
    return %c0_i32, %c0_i32_0 : i32, i32
  }
  func.func @transform_3(%arg0: i32) -> (i32, i32) {
    %c0_i32 = arith.constant 0 : i32
    %c0_i32_0 = arith.constant 0 : i32
    %c0_i32_1 = arith.constant 0 : i32
    return %c0_i32, %c0_i32_0 : i32, i32
  }
  func.func @transform_4(%arg0: i32) -> (i32, i32) {
    %c0_i32 = arith.constant 0 : i32
    %c0_i32_0 = arith.constant 0 : i32
    return %arg0, %c0_i32 : i32, i32
  }
}

module attributes {stable_mosaic.version = 11 : i64} {
  func.func @_conv_bn_kernel(%arg0: i32, %arg1: memref<8x603xbf16, #tpu.memory_space<vmem>>, %arg2: memref<603x128xbf16, #tpu.memory_space<vmem>>, %arg3: memref<1x128xf32, #tpu.memory_space<vmem>>, %arg4: memref<1x128xf32, #tpu.memory_space<vmem>>, %arg5: memref<8x128xf32, #tpu.memory_space<vmem>>) attributes {dimension_semantics = [#tpu.dimension_semantics<parallel>], iteration_bounds = array<i64: 1>, scalar_prefetch = 0 : i64, scratch_operands = 0 : i64, tpu.core_type = #tpu.core_type<tc>, window_params = [{transform_indices = @transform_0, window_bounds = array<i64: 8, 603>}, {pipeline_mode = #tpu.pipeline_mode<synchronous>, transform_indices = @transform_1, window_bounds = array<i64: 603, 128>}, {pipeline_mode = #tpu.pipeline_mode<synchronous>, transform_indices = @transform_2, window_bounds = array<i64: 1, 128>}, {pipeline_mode = #tpu.pipeline_mode<synchronous>, transform_indices = @transform_3, window_bounds = array<i64: 1, 128>}, {transform_indices = @transform_4, window_bounds = array<i64: 8, 128>}]} {
    %c0 = arith.constant 0 : index
    %c0_0 = arith.constant 0 : index
    %0 = vector.load %arg1[%c0, %c0_0] : memref<8x603xbf16, #tpu.memory_space<vmem>>, vector<8x603xbf16>
    %c0_1 = arith.constant 0 : index
    %c0_2 = arith.constant 0 : index
    %1 = vector.load %arg2[%c0_1, %c0_2] : memref<603x128xbf16, #tpu.memory_space<vmem>>, vector<603x128xbf16>
    %cst = arith.constant dense<0.000000e+00> : vector<8x128xf32>
    %2 = tpu.matmul %0, %1, %cst {dimension_numbers = #tpu.dot_dimension_numbers<[1], [0], [0], [1], [0, 0, 1, 1], [], []>} : vector<8x603xbf16>, vector<603x128xbf16>, vector<8x128xf32> -> vector<8x128xf32>
    %c0_3 = arith.constant 0 : index
    %c0_4 = arith.constant 0 : index
    %3 = vector.load %arg3[%c0_3, %c0_4] : memref<1x128xf32, #tpu.memory_space<vmem>>, vector<1x128xf32>
    %4 = vector.broadcast %3 : vector<1x128xf32> to vector<8x128xf32>
    %5 = arith.mulf %2, %4 : vector<8x128xf32>
    %c0_5 = arith.constant 0 : index
    %c0_6 = arith.constant 0 : index
    %6 = vector.load %arg4[%c0_5, %c0_6] : memref<1x128xf32, #tpu.memory_space<vmem>>, vector<1x128xf32>
    %7 = vector.broadcast %6 : vector<1x128xf32> to vector<8x128xf32>
    %8 = arith.addf %5, %7 : vector<8x128xf32>
    %cst_7 = arith.constant 0.000000e+00 : f32
    %9 = vector.broadcast %cst_7 : f32 to vector<8x128xf32>
    %10 = arith.maximumf %8, %9 : vector<8x128xf32>
    %c0_8 = arith.constant 0 : index
    %c0_9 = arith.constant 0 : index
    %11 = vector.load %arg5[%c0_8, %c0_9] : memref<8x128xf32, #tpu.memory_space<vmem>>, vector<8x128xf32>
    tpu.vector_store %arg5[%c0_8, %c0_9], %10 {strides = array<i32>} : memref<8x128xf32, #tpu.memory_space<vmem>>, vector<8x128xf32>,
    return
  }
  func.func @transform_0(%arg0: i32) -> (i32, i32) {
    %c0_i32 = arith.constant 0 : i32
    %c0_i32_0 = arith.constant 0 : i32
    return %arg0, %c0_i32 : i32, i32
  }
  func.func @transform_1(%arg0: i32) -> (i32, i32) {
    %c0_i32 = arith.constant 0 : i32
    %c0_i32_0 = arith.constant 0 : i32
    %c0_i32_1 = arith.constant 0 : i32
    return %c0_i32, %c0_i32_0 : i32, i32
  }
  func.func @transform_2(%arg0: i32) -> (i32, i32) {
    %c0_i32 = arith.constant 0 : i32
    %c0_i32_0 = arith.constant 0 : i32
    %c0_i32_1 = arith.constant 0 : i32
    return %c0_i32, %c0_i32_0 : i32, i32
  }
  func.func @transform_3(%arg0: i32) -> (i32, i32) {
    %c0_i32 = arith.constant 0 : i32
    %c0_i32_0 = arith.constant 0 : i32
    %c0_i32_1 = arith.constant 0 : i32
    return %c0_i32, %c0_i32_0 : i32, i32
  }
  func.func @transform_4(%arg0: i32) -> (i32, i32) {
    %c0_i32 = arith.constant 0 : i32
    %c0_i32_0 = arith.constant 0 : i32
    return %arg0, %c0_i32 : i32, i32
  }
}

module attributes {stable_mosaic.version = 11 : i64} {
  func.func @_conv_bn_kernel(%arg0: i32, %arg1: memref<8x1152xbf16, #tpu.memory_space<vmem>>, %arg2: memref<1152x128xbf16, #tpu.memory_space<vmem>>, %arg3: memref<1x128xf32, #tpu.memory_space<vmem>>, %arg4: memref<1x128xf32, #tpu.memory_space<vmem>>, %arg5: memref<8x128xf32, #tpu.memory_space<vmem>>) attributes {dimension_semantics = [#tpu.dimension_semantics<parallel>], iteration_bounds = array<i64: 1>, scalar_prefetch = 0 : i64, scratch_operands = 0 : i64, tpu.core_type = #tpu.core_type<tc>, window_params = [{transform_indices = @transform_0, window_bounds = array<i64: 8, 1152>}, {pipeline_mode = #tpu.pipeline_mode<synchronous>, transform_indices = @transform_1, window_bounds = array<i64: 1152, 128>}, {pipeline_mode = #tpu.pipeline_mode<synchronous>, transform_indices = @transform_2, window_bounds = array<i64: 1, 128>}, {pipeline_mode = #tpu.pipeline_mode<synchronous>, transform_indices = @transform_3, window_bounds = array<i64: 1, 128>}, {transform_indices = @transform_4, window_bounds = array<i64: 8, 128>}]} {
    %c0 = arith.constant 0 : index
    %c0_0 = arith.constant 0 : index
    %0 = vector.load %arg1[%c0, %c0_0] : memref<8x1152xbf16, #tpu.memory_space<vmem>>, vector<8x1152xbf16>
    %c0_1 = arith.constant 0 : index
    %c0_2 = arith.constant 0 : index
    %1 = vector.load %arg2[%c0_1, %c0_2] : memref<1152x128xbf16, #tpu.memory_space<vmem>>, vector<1152x128xbf16>
    %cst = arith.constant dense<0.000000e+00> : vector<8x128xf32>
    %2 = tpu.matmul %0, %1, %cst {dimension_numbers = #tpu.dot_dimension_numbers<[1], [0], [0], [1], [0, 0, 1, 1], [], []>} : vector<8x1152xbf16>, vector<1152x128xbf16>, vector<8x128xf32> -> vector<8x128xf32>
    %c0_3 = arith.constant 0 : index
    %c0_4 = arith.constant 0 : index
    %3 = vector.load %arg3[%c0_3, %c0_4] : memref<1x128xf32, #tpu.memory_space<vmem>>, vector<1x128xf32>
    %4 = vector.broadcast %3 : vector<1x128xf32> to vector<8x128xf32>
    %5 = arith.mulf %2, %4 : vector<8x128xf32>
    %c0_5 = arith.constant 0 : index
    %c0_6 = arith.constant 0 : index
    %6 = vector.load %arg4[%c0_5, %c0_6] : memref<1x128xf32, #tpu.memory_space<vmem>>, vector<1x128xf32>
    %7 = vector.broadcast %6 : vector<1x128xf32> to vector<8x128xf32>
    %8 = arith.addf %5, %7 : vector<8x128xf32>
    %cst_7 = arith.constant 0.000000e+00 : f32
    %9 = vector.broadcast %cst_7 : f32 to vector<8x128xf32>
    %10 = arith.maximumf %8, %9 : vector<8x128xf32>
    %c0_8 = arith.constant 0 : index
    %c0_9 = arith.constant 0 : index
    %11 = vector.load %arg5[%c0_8, %c0_9] : memref<8x128xf32, #tpu.memory_space<vmem>>, vector<8x128xf32>
    tpu.vector_store %arg5[%c0_8, %c0_9], %10 {strides = array<i32>} : memref<8x128xf32, #tpu.memory_space<vmem>>, vector<8x128xf32>,
    return
  }
  func.func @transform_0(%arg0: i32) -> (i32, i32) {
    %c0_i32 = arith.constant 0 : i32
    %c0_i32_0 = arith.constant 0 : i32
    return %arg0, %c0_i32 : i32, i32
  }
  func.func @transform_1(%arg0: i32) -> (i32, i32) {
    %c0_i32 = arith.constant 0 : i32
    %c0_i32_0 = arith.constant 0 : i32
    %c0_i32_1 = arith.constant 0 : i32
    return %c0_i32, %c0_i32_0 : i32, i32
  }
  func.func @transform_2(%arg0: i32) -> (i32, i32) {
    %c0_i32 = arith.constant 0 : i32
    %c0_i32_0 = arith.constant 0 : i32
    %c0_i32_1 = arith.constant 0 : i32
    return %c0_i32, %c0_i32_0 : i32, i32
  }
  func.func @transform_3(%arg0: i32) -> (i32, i32) {
    %c0_i32 = arith.constant 0 : i32
    %c0_i32_0 = arith.constant 0 : i32
    %c0_i32_1 = arith.constant 0 : i32
    return %c0_i32, %c0_i32_0 : i32, i32
  }
  func.func @transform_4(%arg0: i32) -> (i32, i32) {
    %c0_i32 = arith.constant 0 : i32
    %c0_i32_0 = arith.constant 0 : i32
    return %arg0, %c0_i32 : i32, i32
  }
}

module attributes {stable_mosaic.version = 11 : i64} {
  func.func @_conv_bn_kernel(%arg0: i32, %arg1: memref<32x1152xbf16, #tpu.memory_space<vmem>>, %arg2: memref<1152x64xbf16, #tpu.memory_space<vmem>>, %arg3: memref<1x64xf32, #tpu.memory_space<vmem>>, %arg4: memref<1x64xf32, #tpu.memory_space<vmem>>, %arg5: memref<32x64xf32, #tpu.memory_space<vmem>>) attributes {dimension_semantics = [#tpu.dimension_semantics<parallel>], iteration_bounds = array<i64: 1>, scalar_prefetch = 0 : i64, scratch_operands = 0 : i64, tpu.core_type = #tpu.core_type<tc>, window_params = [{transform_indices = @transform_0, window_bounds = array<i64: 32, 1152>}, {pipeline_mode = #tpu.pipeline_mode<synchronous>, transform_indices = @transform_1, window_bounds = array<i64: 1152, 64>}, {pipeline_mode = #tpu.pipeline_mode<synchronous>, transform_indices = @transform_2, window_bounds = array<i64: 1, 64>}, {pipeline_mode = #tpu.pipeline_mode<synchronous>, transform_indices = @transform_3, window_bounds = array<i64: 1, 64>}, {transform_indices = @transform_4, window_bounds = array<i64: 32, 64>}]} {
    %c0 = arith.constant 0 : index
    %c0_0 = arith.constant 0 : index
    %0 = vector.load %arg1[%c0, %c0_0] : memref<32x1152xbf16, #tpu.memory_space<vmem>>, vector<32x1152xbf16>
    %c0_1 = arith.constant 0 : index
    %c0_2 = arith.constant 0 : index
    %1 = vector.load %arg2[%c0_1, %c0_2] : memref<1152x64xbf16, #tpu.memory_space<vmem>>, vector<1152x64xbf16>
    %cst = arith.constant dense<0.000000e+00> : vector<32x64xf32>
    %2 = tpu.matmul %0, %1, %cst {dimension_numbers = #tpu.dot_dimension_numbers<[1], [0], [0], [1], [0, 0, 1, 1], [], []>} : vector<32x1152xbf16>, vector<1152x64xbf16>, vector<32x64xf32> -> vector<32x64xf32>
    %c0_3 = arith.constant 0 : index
    %c0_4 = arith.constant 0 : index
    %3 = vector.load %arg3[%c0_3, %c0_4] : memref<1x64xf32, #tpu.memory_space<vmem>>, vector<1x64xf32>
    %4 = vector.broadcast %3 : vector<1x64xf32> to vector<32x64xf32>
    %5 = arith.mulf %2, %4 : vector<32x64xf32>
    %c0_5 = arith.constant 0 : index
    %c0_6 = arith.constant 0 : index
    %6 = vector.load %arg4[%c0_5, %c0_6] : memref<1x64xf32, #tpu.memory_space<vmem>>, vector<1x64xf32>
    %7 = vector.broadcast %6 : vector<1x64xf32> to vector<32x64xf32>
    %8 = arith.addf %5, %7 : vector<32x64xf32>
    %cst_7 = arith.constant 0.000000e+00 : f32
    %9 = vector.broadcast %cst_7 : f32 to vector<32x64xf32>
    %10 = arith.maximumf %8, %9 : vector<32x64xf32>
    %c0_8 = arith.constant 0 : index
    %c0_9 = arith.constant 0 : index
    %11 = vector.load %arg5[%c0_8, %c0_9] : memref<32x64xf32, #tpu.memory_space<vmem>>, vector<32x64xf32>
    tpu.vector_store %arg5[%c0_8, %c0_9], %10 {strides = array<i32>} : memref<32x64xf32, #tpu.memory_space<vmem>>, vector<32x64xf32>,
    return
  }
  func.func @transform_0(%arg0: i32) -> (i32, i32) {
    %c0_i32 = arith.constant 0 : i32
    %c0_i32_0 = arith.constant 0 : i32
    return %arg0, %c0_i32 : i32, i32
  }
  func.func @transform_1(%arg0: i32) -> (i32, i32) {
    %c0_i32 = arith.constant 0 : i32
    %c0_i32_0 = arith.constant 0 : i32
    %c0_i32_1 = arith.constant 0 : i32
    return %c0_i32, %c0_i32_0 : i32, i32
  }
  func.func @transform_2(%arg0: i32) -> (i32, i32) {
    %c0_i32 = arith.constant 0 : i32
    %c0_i32_0 = arith.constant 0 : i32
    %c0_i32_1 = arith.constant 0 : i32
    return %c0_i32, %c0_i32_0 : i32, i32
  }
  func.func @transform_3(%arg0: i32) -> (i32, i32) {
    %c0_i32 = arith.constant 0 : i32
    %c0_i32_0 = arith.constant 0 : i32
    %c0_i32_1 = arith.constant 0 : i32
    return %c0_i32, %c0_i32_0 : i32, i32
  }
  func.func @transform_4(%arg0: i32) -> (i32, i32) {
    %c0_i32 = arith.constant 0 : i32
    %c0_i32_0 = arith.constant 0 : i32
    return %arg0, %c0_i32 : i32, i32
  }
}

module attributes {stable_mosaic.version = 11 : i64} {
  func.func @_conv_bn_kernel(%arg0: i32, %arg1: memref<128x576xbf16, #tpu.memory_space<vmem>>, %arg2: memref<576x32xbf16, #tpu.memory_space<vmem>>, %arg3: memref<1x32xf32, #tpu.memory_space<vmem>>, %arg4: memref<1x32xf32, #tpu.memory_space<vmem>>, %arg5: memref<128x32xf32, #tpu.memory_space<vmem>>) attributes {dimension_semantics = [#tpu.dimension_semantics<parallel>], iteration_bounds = array<i64: 1>, scalar_prefetch = 0 : i64, scratch_operands = 0 : i64, tpu.core_type = #tpu.core_type<tc>, window_params = [{transform_indices = @transform_0, window_bounds = array<i64: 128, 576>}, {pipeline_mode = #tpu.pipeline_mode<synchronous>, transform_indices = @transform_1, window_bounds = array<i64: 576, 32>}, {pipeline_mode = #tpu.pipeline_mode<synchronous>, transform_indices = @transform_2, window_bounds = array<i64: 1, 32>}, {pipeline_mode = #tpu.pipeline_mode<synchronous>, transform_indices = @transform_3, window_bounds = array<i64: 1, 32>}, {transform_indices = @transform_4, window_bounds = array<i64: 128, 32>}]} {
    %c0 = arith.constant 0 : index
    %c0_0 = arith.constant 0 : index
    %0 = vector.load %arg1[%c0, %c0_0] : memref<128x576xbf16, #tpu.memory_space<vmem>>, vector<128x576xbf16>
    %c0_1 = arith.constant 0 : index
    %c0_2 = arith.constant 0 : index
    %1 = vector.load %arg2[%c0_1, %c0_2] : memref<576x32xbf16, #tpu.memory_space<vmem>>, vector<576x32xbf16>
    %cst = arith.constant dense<0.000000e+00> : vector<128x32xf32>
    %2 = tpu.matmul %0, %1, %cst {dimension_numbers = #tpu.dot_dimension_numbers<[1], [0], [0], [1], [0, 0, 1, 1], [], []>} : vector<128x576xbf16>, vector<576x32xbf16>, vector<128x32xf32> -> vector<128x32xf32>
    %c0_3 = arith.constant 0 : index
    %c0_4 = arith.constant 0 : index
    %3 = vector.load %arg3[%c0_3, %c0_4] : memref<1x32xf32, #tpu.memory_space<vmem>>, vector<1x32xf32>
    %4 = vector.broadcast %3 : vector<1x32xf32> to vector<128x32xf32>
    %5 = arith.mulf %2, %4 : vector<128x32xf32>
    %c0_5 = arith.constant 0 : index
    %c0_6 = arith.constant 0 : index
    %6 = vector.load %arg4[%c0_5, %c0_6] : memref<1x32xf32, #tpu.memory_space<vmem>>, vector<1x32xf32>
    %7 = vector.broadcast %6 : vector<1x32xf32> to vector<128x32xf32>
    %8 = arith.addf %5, %7 : vector<128x32xf32>
    %cst_7 = arith.constant 0.000000e+00 : f32
    %9 = vector.broadcast %cst_7 : f32 to vector<128x32xf32>
    %10 = arith.maximumf %8, %9 : vector<128x32xf32>
    %c0_8 = arith.constant 0 : index
    %c0_9 = arith.constant 0 : index
    %11 = vector.load %arg5[%c0_8, %c0_9] : memref<128x32xf32, #tpu.memory_space<vmem>>, vector<128x32xf32>
    tpu.vector_store %arg5[%c0_8, %c0_9], %10 {strides = array<i32>} : memref<128x32xf32, #tpu.memory_space<vmem>>, vector<128x32xf32>,
    return
  }
  func.func @transform_0(%arg0: i32) -> (i32, i32) {
    %c0_i32 = arith.constant 0 : i32
    %c0_i32_0 = arith.constant 0 : i32
    return %arg0, %c0_i32 : i32, i32
  }
  func.func @transform_1(%arg0: i32) -> (i32, i32) {
    %c0_i32 = arith.constant 0 : i32
    %c0_i32_0 = arith.constant 0 : i32
    %c0_i32_1 = arith.constant 0 : i32
    return %c0_i32, %c0_i32_0 : i32, i32
  }
  func.func @transform_2(%arg0: i32) -> (i32, i32) {
    %c0_i32 = arith.constant 0 : i32
    %c0_i32_0 = arith.constant 0 : i32
    %c0_i32_1 = arith.constant 0 : i32
    return %c0_i32, %c0_i32_0 : i32, i32
  }
  func.func @transform_3(%arg0: i32) -> (i32, i32) {
    %c0_i32 = arith.constant 0 : i32
    %c0_i32_0 = arith.constant 0 : i32
    %c0_i32_1 = arith.constant 0 : i32
    return %c0_i32, %c0_i32_0 : i32, i32
  }
  func.func @transform_4(%arg0: i32) -> (i32, i32) {
    %c0_i32 = arith.constant 0 : i32
    %c0_i32_0 = arith.constant 0 : i32
    return %arg0, %c0_i32 : i32, i32
  }
}

module attributes {stable_mosaic.version = 11 : i64} {
  func.func @_conv_bn_kernel(%arg0: i32, %arg1: memref<256x288xbf16, #tpu.memory_space<vmem>>, %arg2: memref<288x16xbf16, #tpu.memory_space<vmem>>, %arg3: memref<1x16xf32, #tpu.memory_space<vmem>>, %arg4: memref<1x16xf32, #tpu.memory_space<vmem>>, %arg5: memref<256x16xf32, #tpu.memory_space<vmem>>) attributes {dimension_semantics = [#tpu.dimension_semantics<parallel>], iteration_bounds = array<i64: 2>, scalar_prefetch = 0 : i64, scratch_operands = 0 : i64, tpu.core_type = #tpu.core_type<tc>, window_params = [{transform_indices = @transform_0, window_bounds = array<i64: 256, 288>}, {pipeline_mode = #tpu.pipeline_mode<synchronous>, transform_indices = @transform_1, window_bounds = array<i64: 288, 16>}, {pipeline_mode = #tpu.pipeline_mode<synchronous>, transform_indices = @transform_2, window_bounds = array<i64: 1, 16>}, {pipeline_mode = #tpu.pipeline_mode<synchronous>, transform_indices = @transform_3, window_bounds = array<i64: 1, 16>}, {transform_indices = @transform_4, window_bounds = array<i64: 256, 16>}]} {
    %c0 = arith.constant 0 : index
    %c0_0 = arith.constant 0 : index
    %0 = vector.load %arg1[%c0, %c0_0] : memref<256x288xbf16, #tpu.memory_space<vmem>>, vector<256x288xbf16>
    %c0_1 = arith.constant 0 : index
    %c0_2 = arith.constant 0 : index
    %1 = vector.load %arg2[%c0_1, %c0_2] : memref<288x16xbf16, #tpu.memory_space<vmem>>, vector<288x16xbf16>
    %cst = arith.constant dense<0.000000e+00> : vector<256x16xf32>
    %2 = tpu.matmul %0, %1, %cst {dimension_numbers = #tpu.dot_dimension_numbers<[1], [0], [0], [1], [0, 0, 1, 1], [], []>} : vector<256x288xbf16>, vector<288x16xbf16>, vector<256x16xf32> -> vector<256x16xf32>
    %c0_3 = arith.constant 0 : index
    %c0_4 = arith.constant 0 : index
    %3 = vector.load %arg3[%c0_3, %c0_4] : memref<1x16xf32, #tpu.memory_space<vmem>>, vector<1x16xf32>
    %4 = vector.broadcast %3 : vector<1x16xf32> to vector<256x16xf32>
    %5 = arith.mulf %2, %4 : vector<256x16xf32>
    %c0_5 = arith.constant 0 : index
    %c0_6 = arith.constant 0 : index
    %6 = vector.load %arg4[%c0_5, %c0_6] : memref<1x16xf32, #tpu.memory_space<vmem>>, vector<1x16xf32>
    %7 = vector.broadcast %6 : vector<1x16xf32> to vector<256x16xf32>
    %8 = arith.addf %5, %7 : vector<256x16xf32>
    %cst_7 = arith.constant 0.000000e+00 : f32
    %9 = vector.broadcast %cst_7 : f32 to vector<256x16xf32>
    %10 = arith.maximumf %8, %9 : vector<256x16xf32>
    %c0_8 = arith.constant 0 : index
    %c0_9 = arith.constant 0 : index
    %11 = vector.load %arg5[%c0_8, %c0_9] : memref<256x16xf32, #tpu.memory_space<vmem>>, vector<256x16xf32>
    tpu.vector_store %arg5[%c0_8, %c0_9], %10 {strides = array<i32>} : memref<256x16xf32, #tpu.memory_space<vmem>>, vector<256x16xf32>,
    return
  }
  func.func @transform_0(%arg0: i32) -> (i32, i32) {
    %c0_i32 = arith.constant 0 : i32
    %c0_i32_0 = arith.constant 0 : i32
    return %arg0, %c0_i32 : i32, i32
  }
  func.func @transform_1(%arg0: i32) -> (i32, i32) {
    %c0_i32 = arith.constant 0 : i32
    %c0_i32_0 = arith.constant 0 : i32
    %c0_i32_1 = arith.constant 0 : i32
    return %c0_i32, %c0_i32_0 : i32, i32
  }
  func.func @transform_2(%arg0: i32) -> (i32, i32) {
    %c0_i32 = arith.constant 0 : i32
    %c0_i32_0 = arith.constant 0 : i32
    %c0_i32_1 = arith.constant 0 : i32
    return %c0_i32, %c0_i32_0 : i32, i32
  }
  func.func @transform_3(%arg0: i32) -> (i32, i32) {
    %c0_i32 = arith.constant 0 : i32
    %c0_i32_0 = arith.constant 0 : i32
    %c0_i32_1 = arith.constant 0 : i32
    return %c0_i32, %c0_i32_0 : i32, i32
  }
  func.func @transform_4(%arg0: i32) -> (i32, i32) {
    %c0_i32 = arith.constant 0 : i32
    %c0_i32_0 = arith.constant 0 : i32
    return %arg0, %c0_i32 : i32, i32
  }
}

module attributes {stable_mosaic.version = 11 : i64} {
  func.func @_conv_bn_kernel(%arg0: i32, %arg1: memref<256x144xbf16, #tpu.memory_space<vmem>>, %arg2: memref<144x1xbf16, #tpu.memory_space<vmem>>, %arg3: memref<1x1xf32, #tpu.memory_space<vmem>>, %arg4: memref<1x1xf32, #tpu.memory_space<vmem>>, %arg5: memref<256x1xf32, #tpu.memory_space<vmem>>) attributes {dimension_semantics = [#tpu.dimension_semantics<parallel>], iteration_bounds = array<i64: 2>, scalar_prefetch = 0 : i64, scratch_operands = 0 : i64, tpu.core_type = #tpu.core_type<tc>, window_params = [{transform_indices = @transform_0, window_bounds = array<i64: 256, 144>}, {pipeline_mode = #tpu.pipeline_mode<synchronous>, transform_indices = @transform_1, window_bounds = array<i64: 144, 1>}, {pipeline_mode = #tpu.pipeline_mode<synchronous>, transform_indices = @transform_2, window_bounds = array<i64: 1, 1>}, {pipeline_mode = #tpu.pipeline_mode<synchronous>, transform_indices = @transform_3, window_bounds = array<i64: 1, 1>}, {transform_indices = @transform_4, window_bounds = array<i64: 256, 1>}]} {
    %c0 = arith.constant 0 : index
    %c0_0 = arith.constant 0 : index
    %0 = vector.load %arg1[%c0, %c0_0] : memref<256x144xbf16, #tpu.memory_space<vmem>>, vector<256x144xbf16>
    %c0_1 = arith.constant 0 : index
    %c0_2 = arith.constant 0 : index
    %1 = vector.load %arg2[%c0_1, %c0_2] : memref<144x1xbf16, #tpu.memory_space<vmem>>, vector<144x1xbf16>
    %cst = arith.constant dense<0.000000e+00> : vector<256x1xf32>
    %2 = tpu.matmul %0, %1, %cst {dimension_numbers = #tpu.dot_dimension_numbers<[1], [0], [0], [1], [0, 0, 1, 1], [], []>} : vector<256x144xbf16>, vector<144x1xbf16>, vector<256x1xf32> -> vector<256x1xf32>
    %c0_3 = arith.constant 0 : index
    %c0_4 = arith.constant 0 : index
    %3 = vector.load %arg3[%c0_3, %c0_4] : memref<1x1xf32, #tpu.memory_space<vmem>>, vector<1x1xf32>
    %4 = vector.broadcast %3 : vector<1x1xf32> to vector<256x1xf32>
    %5 = arith.mulf %2, %4 : vector<256x1xf32>
    %c0_5 = arith.constant 0 : index
    %c0_6 = arith.constant 0 : index
    %6 = vector.load %arg4[%c0_5, %c0_6] : memref<1x1xf32, #tpu.memory_space<vmem>>, vector<1x1xf32>
    %7 = vector.broadcast %6 : vector<1x1xf32> to vector<256x1xf32>
    %8 = arith.addf %5, %7 : vector<256x1xf32>
    %c0_7 = arith.constant 0 : index
    %c0_8 = arith.constant 0 : index
    %9 = vector.load %arg5[%c0_7, %c0_8] : memref<256x1xf32, #tpu.memory_space<vmem>>, vector<256x1xf32>
    tpu.vector_store %arg5[%c0_7, %c0_8], %8 {strides = array<i32>} : memref<256x1xf32, #tpu.memory_space<vmem>>, vector<256x1xf32>,
    return
  }
  func.func @transform_0(%arg0: i32) -> (i32, i32) {
    %c0_i32 = arith.constant 0 : i32
    %c0_i32_0 = arith.constant 0 : i32
    return %arg0, %c0_i32 : i32, i32
  }
  func.func @transform_1(%arg0: i32) -> (i32, i32) {
    %c0_i32 = arith.constant 0 : i32
    %c0_i32_0 = arith.constant 0 : i32
    %c0_i32_1 = arith.constant 0 : i32
    return %c0_i32, %c0_i32_0 : i32, i32
  }
  func.func @transform_2(%arg0: i32) -> (i32, i32) {
    %c0_i32 = arith.constant 0 : i32
    %c0_i32_0 = arith.constant 0 : i32
    %c0_i32_1 = arith.constant 0 : i32
    return %c0_i32, %c0_i32_0 : i32, i32
  }
  func.func @transform_3(%arg0: i32) -> (i32, i32) {
    %c0_i32 = arith.constant 0 : i32
    %c0_i32_0 = arith.constant 0 : i32
    %c0_i32_1 = arith.constant 0 : i32
    return %c0_i32, %c0_i32_0 : i32, i32
  }
  func.func @transform_4(%arg0: i32) -> (i32, i32) {
    %c0_i32 = arith.constant 0 : i32
    %c0_i32_0 = arith.constant 0 : i32
    return %arg0, %c0_i32 : i32, i32
  }
}

</mosaic_0001>

<bundles_post_ra>
// kernel: small_unet2_forward.17
= control target key start
LH: loop header
LB: loop body
LE: loop exit
PB: predicated region body
PF: predicated region fallthrough
CT: control target
= control target key end

     0   :  { %s896_s15 = smov 0   ;;  %s1094_s0 = inlined_call_operand.vmem [shape: bf16[512,9], index: 0, kind: input, shape index: {}]   ;;  %s1095_s1 = inlined_call_operand.vmem [shape: bf16[9,16], index: 1, kind: input, shape index: {}]   ;;  %s1096_s2 = inlined_call_operand.vmem [shape: f32[1,16], index: 2, kind: input, shape index: {}]   ;;  %s1097_s3 = inlined_call_operand.vmem [shape: f32[1,16], index: 3, kind: input, shape index: {}]   ;;  %s1098_s4 = inlined_call_operand.vmem [shape: f32[512,16], index: 4, kind: output, shape index: {}]  }
   0x1 LB: > { %s737_s16 = sadd.s32 4294967295, %s868_s15   ;;  %p741_p0 = scmp.ge.s32.totalorder %s868_s15, 1  ;;  %s868_s15 = sphi %s896_s15, %s14_s15  }
   0x2   : > { %p163_p1 = scmp.lt.s32.totalorder %s868_s15, 3 }
   0x4   : > { %p164_p2 = pnand %p741_p0, %p163_p1 }
   0x5   : > { %s742_s19 = sshll.u32 (!%p164_p2), %s737_s16, 5 }
   0x6   : > { %167 = sbr.rel (%p164_p2) target bundleno = 250 (0xfa), region = 36  ;;  %p190_p3 = scmp.lt.s32.totalorder (!%p164_p2), %s742_s19, 63 }
   0xb   : > { %v845_v0 = vld [vmem:[%s1095_s1] sm:$0x1f]   ;;  %vm370_vm0 = vcmask 1043456   ;;  %vm371_vm1 = vcmask 1044480   ;;  %v870_v1 = vmov 65535   ;;  %s1100_s19 = smov (!%p190_p3, %s742_s19), 63 }
   0xc   : > { %v372_v2 = vsel %vm370_vm0, 4294967295, %v870_v1  ;;  %s743_s20 = sshll.u32 %s1100_s19, 2  ;;  %vm321_vm2 = vcmask 72704   ;;  %v950_v21 = vld [vmem:[%s1096_s2] ss:$0 sm:$0xff]  ;;  %s745_s28 = sshll.u32 %s1100_s19, 3 }
   0xd   : > { %v373_v3 = vsel %vm371_vm1, %v372_v2, 0  ;;  %s913_s23 = scalar_lea.vmem %s1094_s0, %s743_s20  ;;  %v955_v23 = vld [vmem:[%s1097_s3] ss:$0 sm:$0xff]  ;;  %s965_s5 = scalar_lea.vmem %s1098_s4, %s745_s28  ;;  %vm648_vm3 = vcmask 130048  }
   0xe   : > { %v375_v4 = vand.u32 %v845_v0, %v373_v3  ;;  %v846_v5 = vld [vmem:[%s913_s23] sm:$0xff]   ;;  %v848_v7 = vld [vmem:[%s913_s23 + $0x8] sm:$0xff]   ;;  %v850_v9 = vld [vmem:[%s913_s23 + $0x10] sm:$0xff]  }
   0xf   : > { %v847_v6 = vld [vmem:[%s913_s23 + $0x40] sm:$0xff]   ;;  %802 = vmatprep.mubr.msk.bf16.mxu0 %vm321_vm2, %v846_v5  ;;  %v849_v8 = vld [vmem:[%s913_s23 + $0x48] sm:$0xff]   ;;  %v851_v10 = vld [vmem:[%s913_s23 + $0x50] sm:$0xff]  }
  0x10   : > { %800 = vmatprep.subr.bf16.mxu0 %v375_v4  ;;  %834 = vmatprep.subr.bf16.mxu1 %v375_v4  ;;  %v852_v11 = vld [vmem:[%s913_s23 + $0x18] sm:$0xff]   ;;  %v854_v13 = vld [vmem:[%s913_s23 + $0x20] sm:$0xff]   ;;  %v856_v15 = vld [vmem:[%s913_s23 + $0x28] sm:$0xff]  }
  0x11   : > { %801 = vmatpush3.bf16.msra.mxu0 %v375_v4  ;;  %835 = vmatpush3.bf16.msra.mxu1 %v375_v4  ;;  %v853_v12 = vld [vmem:[%s913_s23 + $0x58] sm:$0xff]   ;;  %v855_v14 = vld [vmem:[%s913_s23 + $0x60] sm:$0xff]   ;;  %v857_v16 = vld [vmem:[%s913_s23 + $0x68] sm:$0xff]  }
  0x12   : > { %818 = vmatprep.mubr.msk.bf16.mxu1 %vm321_vm2, %v847_v6  ;;  %v858_v17 = vld [vmem:[%s913_s23 + $0x30] sm:$0xff]   ;;  %v860_v19 = vld [vmem:[%s913_s23 + $0x38] sm:$0xff]  }
  0x13   : > { %v859_v18 = vld [vmem:[%s913_s23 + $0x70] sm:$0xff]   ;;  %v861_v20 = vld [vmem:[%s913_s23 + $0x78] sm:$0xff]  }
  0x14   : > { %803 = vmatmul.mubr.msk.bf16.vlgmr.msra.gmra.mxu0 %vm321_vm2, %v848_v7  ;;  %819 = vmatmul.mubr.msk.bf16.vlgmr.msra.gmra.mxu1 %vm321_vm2, %v849_v8 }
  0x15   : > { %806 = vmatprep.mubr.msk.bf16.mxu0 %vm321_vm2, %v850_v9  ;;  %822 = vmatprep.mubr.msk.bf16.mxu1 %vm321_vm2, %v851_v10 }
  0x1c   : > { %807 = vmatmul.mubr.msk.bf16.gmra.mxu0 %vm321_vm2, %v852_v11  ;;  %823 = vmatmul.mubr.msk.bf16.gmra.mxu1 %vm321_vm2, %v853_v12 }
  0x1d   : > { %810 = vmatprep.mubr.msk.bf16.mxu0 %vm321_vm2, %v854_v13  ;;  %826 = vmatprep.mubr.msk.bf16.mxu1 %vm321_vm2, %v855_v14 }
  0x24   : > { %811 = vmatmul.mubr.msk.bf16.gmra.mxu0 %vm321_vm2, %v856_v15  ;;  %827 = vmatmul.mubr.msk.bf16.gmra.mxu1 %vm321_vm2, %v857_v16 }
  0x25   : > { %814 = vmatprep.mubr.msk.bf16.mxu0 %vm321_vm2, %v858_v17  ;;  %830 = vmatprep.mubr.msk.bf16.mxu1 %vm321_vm2, %v859_v18 }
  0x2c   : > { %815 = vmatmul.mubr.msk.bf16.gmra.mxu0 %vm321_vm2, %v860_v19  ;;  %831 = vmatmul.mubr.msk.bf16.gmra.mxu1 %vm321_vm2, %v861_v20 }
  0xd4   : > { %v804_v22 = vpop.f32.mrf.mxu0  ;;  %v820_v25 = vpop.f32.mrf.mxu1 }
  0xd5   : > { %v547_v24 = vmul.f32 %v804_v22, %v950_v21  ;;  %v563_v26 = vmul.f32 %v820_v25, %v950_v21 }
  0xd6   : > { %v411_v27 = vpop.f32.mrf.mxu0  ;;  %v475_v30 = vpop.f32.mrf.mxu1 }
  0xd7   : > { %v586_v28 = vadd.f32 %v955_v23, %v547_v24  ;;  %v545_v29 = vmul.f32 %v950_v21, %v411_v27  ;;  %v602_v31 = vadd.f32 %v955_v23, %v563_v26  ;;  %v561_v32 = vmul.f32 %v950_v21, %v475_v30 }
  0xd8   : > { %v805_v33 = vpop.f32.mrf.mxu0  ;;  %v821_v37 = vpop.f32.mrf.mxu1 }
  0xd9   : > { %v618_v34 = vmax.f32 %v586_v28, 0.0  ;;  %v584_v35 = vadd.f32 %v955_v23, %v545_v29  ;;  %v548_v36 = vmul.f32 %v805_v33, %v950_v21  ;;  %v634_v38 = vmax.f32 %v602_v31, 0.0 }
  0xda   : > { %v600_v39 = vadd.f32 %v955_v23, %v561_v32  ;;  %v564_v40 = vmul.f32 %v821_v37, %v950_v21  ;;  %v414_v41 = vpop.f32.mrf.mxu0  ;;  %v478_v45 = vpop.f32.mrf.mxu1 }
  0xdb   : > { %651 = vst.msk [vmem:[%s965_s5 + $0x10] sm:$0xff] %vm648_vm3, %v618_v34  ;;  %v616_v42 = vmax.f32 %v584_v35, 0.0  ;;  %v587_v43 = vadd.f32 %v955_v23, %v548_v36  ;;  %v546_v44 = vmul.f32 %v950_v21, %v414_v41  ;;  %667 = vst.msk [vmem:[%s965_s5 + $0x90] sm:$0xff] %vm648_vm3, %v634_v38  ;;  %v562_v48 = vmul.f32 %v950_v21, %v478_v45 }
  0xdc   : > { %v632_v46 = vmax.f32 %v600_v39, 0.0  ;;  %v603_v47 = vadd.f32 %v955_v23, %v564_v40  ;;  %v808_v49 = vpop.f32.mrf.mxu0  ;;  %v824_v53 = vpop.f32.mrf.mxu1 }
  0xdd   : > { %649 = vst.msk [vmem:[%s965_s5] sm:$0xff] %vm648_vm3, %v616_v42  ;;  %v619_v50 = vmax.f32 %v587_v43, 0.0  ;;  %v585_v51 = vadd.f32 %v955_v23, %v546_v44  ;;  %v551_v52 = vmul.f32 %v808_v49, %v950_v21  ;;  %v601_v55 = vadd.f32 %v955_v23, %v562_v48 }
  0xde   : > { %665 = vst.msk [vmem:[%s965_s5 + $0x80] sm:$0xff] %vm648_vm3, %v632_v46  ;;  %v635_v54 = vmax.f32 %v603_v47, 0.0  ;;  %v567_v56 = vmul.f32 %v824_v53, %v950_v21  ;;  %v427_v57 = vpop.f32.mrf.mxu0  ;;  %v491_v61 = vpop.f32.mrf.mxu1 }
  0xdf   : > { %652 = vst.msk [vmem:[%s965_s5 + $0x18] sm:$0xff] %vm648_vm3, %v619_v50  ;;  %v617_v58 = vmax.f32 %v585_v51, 0.0  ;;  %v590_v59 = vadd.f32 %v955_v23, %v551_v52  ;;  %v549_v60 = vmul.f32 %v950_v21, %v427_v57  ;;  %v633_v62 = vmax.f32 %v601_v55, 0.0 }
  0xe0   : > { %668 = vst.msk [vmem:[%s965_s5 + $0x98] sm:$0xff] %vm648_vm3, %v635_v54  ;;  %v606_v63 = vadd.f32 %v955_v23, %v567_v56  ;;  %v565_v0 = vmul.f32 %v950_v21, %v491_v61  ;;  %v809_v1 = vpop.f32.mrf.mxu0  ;;  %v825_v5 = vpop.f32.mrf.mxu1 }
  0xe1   : > { %650 = vst.msk [vmem:[%s965_s5 + $0x8] sm:$0xff] %vm648_vm3, %v617_v58  ;;  %v622_v2 = vmax.f32 %v590_v59, 0.0  ;;  %v588_v3 = vadd.f32 %v955_v23, %v549_v60  ;;  %v552_v4 = vmul.f32 %v809_v1, %v950_v21  ;;  %666 = vst.msk [vmem:[%s965_s5 + $0x88] sm:$0xff] %vm648_vm3, %v633_v62  ;;  %v568_v8 = vmul.f32 %v825_v5, %v950_v21 }
  0xe2   : > { %v638_v6 = vmax.f32 %v606_v63, 0.0  ;;  %v604_v7 = vadd.f32 %v955_v23, %v565_v0  ;;  %v430_v9 = vpop.f32.mrf.mxu0  ;;  %v494_v13 = vpop.f32.mrf.mxu1 }
  0xe3   : > { %655 = vst.msk [vmem:[%s965_s5 + $0x30] sm:$0xff] %vm648_vm3, %v622_v2  ;;  %v620_v10 = vmax.f32 %v588_v3, 0.0  ;;  %v591_v11 = vadd.f32 %v955_v23, %v552_v4  ;;  %v550_v12 = vmul.f32 %v950_v21, %v430_v9  ;;  %v607_v15 = vadd.f32 %v955_v23, %v568_v8 }
  0xe4   : > { %671 = vst.msk [vmem:[%s965_s5 + $0xb0] sm:$0xff] %vm648_vm3, %v638_v6  ;;  %v636_v14 = vmax.f32 %v604_v7, 0.0  ;;  %v566_v16 = vmul.f32 %v950_v21, %v494_v13  ;;  %v812_v17 = vpop.f32.mrf.mxu0  ;;  %v828_v22 = vpop.f32.mrf.mxu1 }
  0xe5   : > { %653 = vst.msk [vmem:[%s965_s5 + $0x20] sm:$0xff] %vm648_vm3, %v620_v10  ;;  %v623_v18 = vmax.f32 %v591_v11, 0.0  ;;  %v589_v19 = vadd.f32 %v955_v23, %v550_v12  ;;  %v555_v20 = vmul.f32 %v812_v17, %v950_v21  ;;  %v639_v24 = vmax.f32 %v607_v15, 0.0 }
  0xe6   : > { %669 = vst.msk [vmem:[%s965_s5 + $0xa0] sm:$0xff] %vm648_vm3, %v636_v14  ;;  %v605_v25 = vadd.f32 %v955_v23, %v566_v16  ;;  %v571_v26 = vmul.f32 %v828_v22, %v950_v21  ;;  %v443_v27 = vpop.f32.mrf.mxu0  ;;  %v507_v31 = vpop.f32.mrf.mxu1 }
  0xe7   : > { %656 = vst.msk [vmem:[%s965_s5 + $0x38] sm:$0xff] %vm648_vm3, %v623_v18  ;;  %v621_v28 = vmax.f32 %v589_v19, 0.0  ;;  %v594_v29 = vadd.f32 %v955_v23, %v555_v20  ;;  %v553_v30 = vmul.f32 %v950_v21, %v443_v27  ;;  %672 = vst.msk [vmem:[%s965_s5 + $0xb8] sm:$0xff] %vm648_vm3, %v639_v24  ;;  %v569_v34 = vmul.f32 %v950_v21, %v507_v31 }
  0xe8   : > { %v637_v32 = vmax.f32 %v605_v25, 0.0  ;;  %v610_v33 = vadd.f32 %v955_v23, %v571_v26  ;;  %v813_v35 = vpop.f32.mrf.mxu0  ;;  %v829_v39 = vpop.f32.mrf.mxu1 }
  0xe9   : > { %654 = vst.msk [vmem:[%s965_s5 + $0x28] sm:$0xff] %vm648_vm3, %v621_v28  ;;  %v626_v36 = vmax.f32 %v594_v29, 0.0  ;;  %v592_v37 = vadd.f32 %v955_v23, %v553_v30  ;;  %v556_v38 = vmul.f32 %v813_v35, %v950_v21  ;;  %v608_v41 = vadd.f32 %v955_v23, %v569_v34 }
  0xea   : > { %670 = vst.msk [vmem:[%s965_s5 + $0xa8] sm:$0xff] %vm648_vm3, %v637_v32  ;;  %v642_v40 = vmax.f32 %v610_v33, 0.0  ;;  %v572_v42 = vmul.f32 %v829_v39, %v950_v21  ;;  %v446_v43 = vpop.f32.mrf.mxu0  ;;  %v510_v47 = vpop.f32.mrf.mxu1 }
  0xeb   : > { %659 = vst.msk [vmem:[%s965_s5 + $0x50] sm:$0xff] %vm648_vm3, %v626_v36  ;;  %v624_v44 = vmax.f32 %v592_v37, 0.0  ;;  %v595_v45 = vadd.f32 %v955_v23, %v556_v38  ;;  %v554_v46 = vmul.f32 %v950_v21, %v446_v43  ;;  %v640_v48 = vmax.f32 %v608_v41, 0.0 }
  0xec   : > { %675 = vst.msk [vmem:[%s965_s5 + $0xd0] sm:$0xff] %vm648_vm3, %v642_v40  ;;  %v611_v49 = vadd.f32 %v955_v23, %v572_v42  ;;  %v570_v50 = vmul.f32 %v950_v21, %v510_v47  ;;  %v816_v51 = vpop.f32.mrf.mxu0  ;;  %v832_v55 = vpop.f32.mrf.mxu1 }
  0xed   : > { %657 = vst.msk [vmem:[%s965_s5 + $0x40] sm:$0xff] %vm648_vm3, %v624_v44  ;;  %v627_v52 = vmax.f32 %v595_v45, 0.0  ;;  %v593_v53 = vadd.f32 %v955_v23, %v554_v46  ;;  %v559_v54 = vmul.f32 %v816_v51, %v950_v21  ;;  %673 = vst.msk [vmem:[%s965_s5 + $0xc0] sm:$0xff] %vm648_vm3, %v640_v48  ;;  %v575_v58 = vmul.f32 %v832_v55, %v950_v21 }
  0xee   : > { %v643_v56 = vmax.f32 %v611_v49, 0.0  ;;  %v609_v57 = vadd.f32 %v955_v23, %v570_v50  ;;  %v459_v59 = vpop.f32.mrf.mxu0  ;;  %v523_v63 = vpop.f32.mrf.mxu1 }
  0xef   : > { %660 = vst.msk [vmem:[%s965_s5 + $0x58] sm:$0xff] %vm648_vm3, %v627_v52  ;;  %v625_v60 = vmax.f32 %v593_v53, 0.0  ;;  %v598_v61 = vadd.f32 %v955_v23, %v559_v54  ;;  %v557_v62 = vmul.f32 %v950_v21, %v459_v59  ;;  %v614_v1 = vadd.f32 %v955_v23, %v575_v58 }
  0xf0   : > { %676 = vst.msk [vmem:[%s965_s5 + $0xd8] sm:$0xff] %vm648_vm3, %v643_v56  ;;  %v641_v0 = vmax.f32 %v609_v57, 0.0  ;;  %v573_v2 = vmul.f32 %v950_v21, %v523_v63  ;;  %v817_v3 = vpop.f32.mrf.mxu0  ;;  %v833_v7 = vpop.f32.mrf.mxu1 }
  0xf1   : > { %658 = vst.msk [vmem:[%s965_s5 + $0x48] sm:$0xff] %vm648_vm3, %v625_v60  ;;  %v630_v4 = vmax.f32 %v598_v61, 0.0  ;;  %v596_v5 = vadd.f32 %v955_v23, %v557_v62  ;;  %v560_v6 = vmul.f32 %v817_v3, %v950_v21  ;;  %v646_v8 = vmax.f32 %v614_v1, 0.0 }
  0xf2   : > { %674 = vst.msk [vmem:[%s965_s5 + $0xc8] sm:$0xff] %vm648_vm3, %v641_v0  ;;  %v612_v9 = vadd.f32 %v955_v23, %v573_v2  ;;  %v576_v10 = vmul.f32 %v833_v7, %v950_v21  ;;  %v462_v11 = vpop.f32.mrf.mxu0  ;;  %v526_v15 = vpop.f32.mrf.mxu1 }
  0xf3   : > { %663 = vst.msk [vmem:[%s965_s5 + $0x70] sm:$0xff] %vm648_vm3, %v630_v4  ;;  %v628_v12 = vmax.f32 %v596_v5, 0.0  ;;  %v599_v13 = vadd.f32 %v955_v23, %v560_v6  ;;  %v558_v14 = vmul.f32 %v950_v21, %v462_v11  ;;  %679 = vst.msk [vmem:[%s965_s5 + $0xf0] sm:$0xff] %vm648_vm3, %v646_v8  ;;  %v574_v18 = vmul.f32 %v950_v21, %v526_v15 }
  0xf4   : > { %v644_v16 = vmax.f32 %v612_v9, 0.0  ;;  %v615_v17 = vadd.f32 %v955_v23, %v576_v10 }
  0xf5   : > { %661 = vst.msk [vmem:[%s965_s5 + $0x60] sm:$0xff] %vm648_vm3, %v628_v12  ;;  %v631_v19 = vmax.f32 %v599_v13, 0.0  ;;  %v597_v20 = vadd.f32 %v955_v23, %v558_v14  ;;  %v613_v24 = vadd.f32 %v955_v23, %v574_v18 }
  0xf6   : > { %677 = vst.msk [vmem:[%s965_s5 + $0xe0] sm:$0xff] %vm648_vm3, %v644_v16  ;;  %v647_v22 = vmax.f32 %v615_v17, 0.0 }
  0xf7   : > { %664 = vst.msk [vmem:[%s965_s5 + $0x78] sm:$0xff] %vm648_vm3, %v631_v19  ;;  %v629_v25 = vmax.f32 %v597_v20, 0.0  ;;  %v645_v26 = vmax.f32 %v613_v24, 0.0 }
  0xf8   : > { %680 = vst.msk [vmem:[%s965_s5 + $0xf8] sm:$0xff] %vm648_vm3, %v647_v22 }
  0xf9   : > { %662 = vst.msk [vmem:[%s965_s5 + $0x68] sm:$0xff] %vm648_vm3, %v629_v25  ;;  %678 = vst.msk [vmem:[%s965_s5 + $0xe8] sm:$0xff] %vm648_vm3, %v645_v26 }
  0xfa PF: > { %s14_s15 = sadd.s32 1, %s868_s15  }
  0xfb   : > { %p11_p4 = scmp.ge.s32.totalorder %s14_s15, 4  }
  0xfd   :  { %13 = sbr.rel (!%p11_p4) target bundleno = 1 (0x1), region = 66 }

// kernel: small_unet2_forward.18
= control target key start
LH: loop header
LB: loop body
LE: loop exit
PB: predicated region body
PF: predicated region fallthrough
CT: control target
= control target key end

     0   :  { %s1051_s15 = smov 0   ;;  %s1292_s0 = inlined_call_operand.vmem [shape: bf16[512,144], index: 0, kind: input, shape index: {}]   ;;  %s1293_s1 = inlined_call_operand.vmem [shape: bf16[144,16], index: 1, kind: input, shape index: {}]   ;;  %s1294_s2 = inlined_call_operand.vmem [shape: f32[1,16], index: 2, kind: input, shape index: {}]   ;;  %s1295_s3 = inlined_call_operand.vmem [shape: f32[1,16], index: 3, kind: input, shape index: {}]   ;;  %s1296_s4 = inlined_call_operand.vmem [shape: f32[512,16], index: 4, kind: output, shape index: {}]  }
   0x1 LB: > { %s861_s16 = sadd.s32 4294967295, %s1023_s15   ;;  %p865_p0 = scmp.ge.s32.totalorder %s1023_s15, 1  ;;  %s1023_s15 = sphi %s1051_s15, %s14_s15  }
   0x2   : > { %p164_p1 = scmp.lt.s32.totalorder %s1023_s15, 3 }
   0x4   : > { %p165_p2 = pnand %p865_p0, %p164_p1 }
   0x5   : > { %s866_s19 = sshll.u32 (!%p165_p2), %s861_s16, 5 }
   0x6   : > { %168 = sbr.rel (%p165_p2) target bundleno = 308 (0x134), region = 36  ;;  %p192_p3 = scmp.lt.s32.totalorder (!%p165_p2), %s866_s19, 63 }
   0xb   : > { %v960_v0 = vld [vmem:[%s1293_s1 + $0x38] sm:$0xff]   ;;  %v1025_v1 = vmov 0   ;;  %v961_v2 = vld [vmem:[%s1293_s1 + $0x30] sm:$0xff]   ;;  %s1298_s19 = smov (!%p192_p3, %s866_s19), 63  ;;  %v962_v3 = vld [vmem:[%s1293_s1 + $0x28] sm:$0xff]   ;;  %vm453_vm0 = vcmask 130048  }
   0xc   : > { %502 = vmatprep.subr.bf16.mxu0 %v1025_v1  ;;  %933 = vmatprep.subr.bf16.mxu1 %v1025_v1  ;;  %s932_s24 = sshll.u32 %s1298_s19, 3  ;;  %v963_v4 = vld [vmem:[%s1293_s1 + $0x20] sm:$0xff]   ;;  %v964_v7 = vld [vmem:[%s1293_s1 + $0x18] sm:$0xff]   ;;  %v965_v8 = vld [vmem:[%s1293_s1 + $0x10] sm:$0xff]  }
   0xd   : > { %503 = vmatpush1.bf16.msra.mxu0 %v960_v0  ;;  %942 = vmatpush1.bf16.msra.mxu1 %v960_v0  ;;  %s1076_s27 = scalar_lea.vmem %s1292_s0, %s932_s24  ;;  %v966_v9 = vld [vmem:[%s1293_s1 + $0x8] sm:$0xff]   ;;  %v967_v10 = vld [vmem:[%s1293_s1] sm:$0xff]   ;;  %s1163_s22 = scalar_lea.vmem %s1296_s4, %s932_s24 }
   0xe   : > { %504 = vmatprep.subr.bf16.mxu0 %v1025_v1  ;;  %934 = vmatprep.subr.bf16.mxu1 %v1025_v1  ;;  %v971_v5 = vld [vmem:[%s1076_s27 + $0x4] ss:$8 sps:$4 sm:$0xff]   ;;  %v969_v12 = vld [vmem:[%s1076_s27] ss:$8 sps:$4 sm:$0xff]   ;;  %v975_v14 = vld [vmem:[%s1076_s27 + $0x14] ss:$8 sps:$4 sm:$0xff]  }
   0xf   : > { %v974_v6 = vld [vmem:[%s1076_s27 + $0x84] ss:$8 sps:$4 sm:$0xff]   ;;  %912 = vmatprep.mubr.msk.bf16.mxu0 %vm453_vm0, %v971_v5  ;;  %v972_v13 = vld [vmem:[%s1076_s27 + $0x80] ss:$8 sps:$4 sm:$0xff]   ;;  %v977_v15 = vld [vmem:[%s1076_s27 + $0x94] ss:$8 sps:$4 sm:$0xff]  }
  0x10   : > { %920 = vmatprep.mubr.msk.bf16.mxu1 %vm453_vm0, %v974_v6  ;;  %v968_v11 = vld [vmem:[%s1293_s1 + $0x40] sm:$0xff]   ;;  %v979_v16 = vld [vmem:[%s1076_s27 + $0x10] ss:$8 sps:$4 sm:$0xff]   ;;  %v987_v22 = vld [vmem:[%s1076_s27 + $0x34] ss:$8 sps:$4 sm:$0xff]  }
  0x11   : > { %505 = vmatpush1.bf16.msra.mxu0 %v961_v2  ;;  %943 = vmatpush1.bf16.msra.mxu1 %v961_v2  ;;  %v980_v17 = vld [vmem:[%s1076_s27 + $0x90] ss:$8 sps:$4 sm:$0xff]   ;;  %v981_v18 = vld [vmem:[%s1076_s27 + $0x24] ss:$8 sps:$4 sm:$0xff]   ;;  %v985_v20 = vld [vmem:[%s1076_s27 + $0x20] ss:$8 sps:$4 sm:$0xff]  }
  0x12   : > { %506 = vmatprep.subr.bf16.mxu0 %v1025_v1  ;;  %935 = vmatprep.subr.bf16.mxu1 %v1025_v1  ;;  %v983_v19 = vld [vmem:[%s1076_s27 + $0xa4] ss:$8 sps:$4 sm:$0xff]   ;;  %v986_v21 = vld [vmem:[%s1076_s27 + $0xa0] ss:$8 sps:$4 sm:$0xff]   ;;  %v989_v23 = vld [vmem:[%s1076_s27 + $0xb4] ss:$8 sps:$4 sm:$0xff]  }
  0x13   : > { %v991_v24 = vld [vmem:[%s1076_s27 + $0x30] ss:$8 sps:$4 sm:$0xff]   ;;  %v993_v26 = vld [vmem:[%s1076_s27 + $0x44] ss:$8 sps:$4 sm:$0xff]   ;;  %v997_v28 = vld [vmem:[%s1076_s27 + $0x40] ss:$8 sps:$4 sm:$0xff]  }
  0x14   : > { %v992_v25 = vld [vmem:[%s1076_s27 + $0xb0] ss:$8 sps:$4 sm:$0xff]   ;;  %v995_v27 = vld [vmem:[%s1076_s27 + $0xc4] ss:$8 sps:$4 sm:$0xff]   ;;  %v998_v29 = vld [vmem:[%s1076_s27 + $0xc0] ss:$8 sps:$4 sm:$0xff]  }
  0x15   : > { %507 = vmatpush1.bf16.msra.mxu0 %v962_v3  ;;  %944 = vmatpush1.bf16.msra.mxu1 %v962_v3  ;;  %v999_v30 = vld [vmem:[%s1076_s27 + $0x54] ss:$8 sps:$4 sm:$0xff]   ;;  %v1003_v32 = vld [vmem:[%s1076_s27 + $0x50] ss:$8 sps:$4 sm:$0xff]   ;;  %v1005_v34 = vld [vmem:[%s1076_s27 + $0x64] ss:$8 sps:$4 sm:$0xff]  }
  0x16   : > { %508 = vmatprep.subr.bf16.mxu0 %v1025_v1  ;;  %936 = vmatprep.subr.bf16.mxu1 %v1025_v1  ;;  %v1001_v31 = vld [vmem:[%s1076_s27 + $0xd4] ss:$8 sps:$4 sm:$0xff]   ;;  %v1004_v33 = vld [vmem:[%s1076_s27 + $0xd0] ss:$8 sps:$4 sm:$0xff]   ;;  %v1007_v35 = vld [vmem:[%s1076_s27 + $0xe4] ss:$8 sps:$4 sm:$0xff]  }
  0x17   : > { %v1009_v36 = vld [vmem:[%s1076_s27 + $0x60] ss:$8 sps:$4 sm:$0xff]   ;;  %v1011_v38 = vld [vmem:[%s1076_s27 + $0x74] ss:$8 sps:$4 sm:$0xff]   ;;  %v1015_v40 = vld [vmem:[%s1076_s27 + $0x70] ss:$8 sps:$4 sm:$0xff]  }
  0x18   : > { %v1010_v37 = vld [vmem:[%s1076_s27 + $0xe0] ss:$8 sps:$4 sm:$0xff]   ;;  %v1013_v39 = vld [vmem:[%s1076_s27 + $0xf4] ss:$8 sps:$4 sm:$0xff]   ;;  %v1016_v41 = vld [vmem:[%s1076_s27 + $0xf0] ss:$8 sps:$4 sm:$0xff]  }
  0x19   : > { %509 = vmatpush1.bf16.msra.mxu0 %v963_v4  ;;  %945 = vmatpush1.bf16.msra.mxu1 %v963_v4  ;;  %v1147_v42 = vld [vmem:[%s1294_s2] ss:$0 sm:$0xff] }
  0x1a   : > { %510 = vmatprep.subr.bf16.mxu0 %v1025_v1  ;;  %937 = vmatprep.subr.bf16.mxu1 %v1025_v1  ;;  %v1152_v44 = vld [vmem:[%s1295_s3] ss:$0 sm:$0xff] }
  0x1d   : > { %511 = vmatpush1.bf16.msra.mxu0 %v964_v7  ;;  %946 = vmatpush1.bf16.msra.mxu1 %v964_v7 }
  0x1e   : > { %512 = vmatprep.subr.bf16.mxu0 %v1025_v1  ;;  %938 = vmatprep.subr.bf16.mxu1 %v1025_v1 }
  0x21   : > { %513 = vmatpush1.bf16.msra.mxu0 %v965_v8  ;;  %947 = vmatpush1.bf16.msra.mxu1 %v965_v8 }
  0x22   : > { %514 = vmatprep.subr.bf16.mxu0 %v1025_v1  ;;  %939 = vmatprep.subr.bf16.mxu1 %v1025_v1 }
  0x25   : > { %515 = vmatpush1.bf16.msra.mxu0 %v966_v9  ;;  %948 = vmatpush1.bf16.msra.mxu1 %v966_v9 }
  0x26   : > { %516 = vmatprep.subr.bf16.mxu0 %v1025_v1  ;;  %940 = vmatprep.subr.bf16.mxu1 %v1025_v1 }
  0x29   : > { %517 = vmatpush1.bf16.msra.mxu0 %v967_v10  ;;  %949 = vmatpush1.bf16.msra.mxu1 %v967_v10 }
  0x2a   : > { %532 = vmatprep.subr.bf16.mxu0 %v1025_v1  ;;  %941 = vmatprep.subr.bf16.mxu1 %v1025_v1 }
  0x2d   : > { %533 = vmatpush2.bf16.msra.mxu0 %v968_v11  ;;  %950 = vmatpush2.bf16.msra.mxu1 %v968_v11 }
  0x30   : > { %535 = vmatmul.mubr.bf16.vlgmr.msra.gmra.mxu0 %v969_v12  ;;  %599 = vmatmul.mubr.bf16.vlgmr.msra.gmra.mxu1 %v972_v13 }
  0x31   : > { %913 = vmatprep.mubr.msk.bf16.mxu0 %vm453_vm0, %v975_v14  ;;  %921 = vmatprep.mubr.msk.bf16.mxu1 %vm453_vm0, %v977_v15 }
  0x38   : > { %543 = vmatmul.mubr.bf16.gmra.mxu0 %v979_v16  ;;  %607 = vmatmul.mubr.bf16.gmra.mxu1 %v980_v17 }
  0x39   : > { %914 = vmatprep.mubr.msk.bf16.mxu0 %vm453_vm0, %v981_v18  ;;  %922 = vmatprep.mubr.msk.bf16.mxu1 %vm453_vm0, %v983_v19 }
  0x40   : > { %551 = vmatmul.mubr.bf16.gmra.mxu0 %v985_v20  ;;  %615 = vmatmul.mubr.bf16.gmra.mxu1 %v986_v21 }
  0x41   : > { %915 = vmatprep.mubr.msk.bf16.mxu0 %vm453_vm0, %v987_v22  ;;  %923 = vmatprep.mubr.msk.bf16.mxu1 %vm453_vm0, %v989_v23 }
  0x48   : > { %559 = vmatmul.mubr.bf16.gmra.mxu0 %v991_v24  ;;  %623 = vmatmul.mubr.bf16.gmra.mxu1 %v992_v25 }
  0x49   : > { %916 = vmatprep.mubr.msk.bf16.mxu0 %vm453_vm0, %v993_v26  ;;  %924 = vmatprep.mubr.msk.bf16.mxu1 %vm453_vm0, %v995_v27 }
  0x50   : > { %567 = vmatmul.mubr.bf16.gmra.mxu0 %v997_v28  ;;  %631 = vmatmul.mubr.bf16.gmra.mxu1 %v998_v29 }
  0x51   : > { %917 = vmatprep.mubr.msk.bf16.mxu0 %vm453_vm0, %v999_v30  ;;  %925 = vmatprep.mubr.msk.bf16.mxu1 %vm453_vm0, %v1001_v31 }
  0x58   : > { %575 = vmatmul.mubr.bf16.gmra.mxu0 %v1003_v32  ;;  %639 = vmatmul.mubr.bf16.gmra.mxu1 %v1004_v33 }
  0x59   : > { %918 = vmatprep.mubr.msk.bf16.mxu0 %vm453_vm0, %v1005_v34  ;;  %926 = vmatprep.mubr.msk.bf16.mxu1 %vm453_vm0, %v1007_v35 }
  0x60   : > { %583 = vmatmul.mubr.bf16.gmra.mxu0 %v1009_v36  ;;  %647 = vmatmul.mubr.bf16.gmra.mxu1 %v1010_v37 }
  0x61   : > { %919 = vmatprep.mubr.msk.bf16.mxu0 %vm453_vm0, %v1011_v38  ;;  %927 = vmatprep.mubr.msk.bf16.mxu1 %vm453_vm0, %v1013_v39 }
  0x68   : > { %591 = vmatmul.mubr.bf16.gmra.mxu0 %v1015_v40  ;;  %655 = vmatmul.mubr.bf16.gmra.mxu1 %v1016_v41 }
  0xf0   : > { %v536_v43 = vpop.f32.mrf.mxu0  ;;  %v600_v45 = vpop.f32.mrf.mxu1 }
  0xf1   : > { %v670_v46 = vmul.f32 %v1147_v42, %v536_v43  ;;  %v686_v47 = vmul.f32 %v1147_v42, %v600_v45 }
  0xf2   : > { %v538_v48 = vpop.f32.mrf.mxu0  ;;  %v602_v49 = vpop.f32.mrf.mxu1 }
  0xf3   : > { %v709_v50 = vadd.f32 %v1152_v44, %v670_v46  ;;  %v725_v51 = vadd.f32 %v1152_v44, %v686_v47 }
  0xf4   : > { %v539_v52 = vpop.f32.mrf.mxu0  ;;  %v603_v53 = vpop.f32.mrf.mxu1 }
  0xf5   : > { %v741_v54 = vmax.f32 %v709_v50, 0.0  ;;  %v757_v55 = vmax.f32 %v725_v51, 0.0  ;;  %v671_v56 = vmul.f32 %v1147_v42, %v539_v52  ;;  %v687_v57 = vmul.f32 %v1147_v42, %v603_v53 }
  0xf6   : > { %v541_v58 = vpop.f32.mrf.mxu0  ;;  %v605_v59 = vpop.f32.mrf.mxu1 }
  0xf7   : > { %773 = vst.msk [vmem:[%s1163_s22] sm:$0xff] %vm453_vm0, %v741_v54  ;;  %789 = vst.msk [vmem:[%s1163_s22 + $0x80] sm:$0xff] %vm453_vm0, %v757_v55  ;;  %v710_v60 = vadd.f32 %v1152_v44, %v671_v56  ;;  %v726_v61 = vadd.f32 %v1152_v44, %v687_v57 }
  0xf8   : > { %v544_v62 = vpop.f32.mrf.mxu0  ;;  %v608_v63 = vpop.f32.mrf.mxu1 }
  0xf9   : > { %v742_v0 = vmax.f32 %v710_v60, 0.0  ;;  %v758_v1 = vmax.f32 %v726_v61, 0.0  ;;  %v672_v2 = vmul.f32 %v1147_v42, %v544_v62  ;;  %v688_v3 = vmul.f32 %v1147_v42, %v608_v63 }
  0xfa   : > { %v546_v4 = vpop.f32.mrf.mxu0  ;;  %v610_v5 = vpop.f32.mrf.mxu1 }
  0xfb   : > { %774 = vst.msk [vmem:[%s1163_s22 + $0x8] sm:$0xff] %vm453_vm0, %v742_v0  ;;  %790 = vst.msk [vmem:[%s1163_s22 + $0x88] sm:$0xff] %vm453_vm0, %v758_v1  ;;  %v711_v6 = vadd.f32 %v1152_v44, %v672_v2  ;;  %v727_v7 = vadd.f32 %v1152_v44, %v688_v3 }
  0xfc   : > { %v547_v8 = vpop.f32.mrf.mxu0  ;;  %v611_v9 = vpop.f32.mrf.mxu1 }
  0xfd   : > { %v743_v10 = vmax.f32 %v711_v6, 0.0  ;;  %v759_v11 = vmax.f32 %v727_v7, 0.0  ;;  %v673_v12 = vmul.f32 %v1147_v42, %v547_v8  ;;  %v689_v13 = vmul.f32 %v1147_v42, %v611_v9 }
  0xfe   : > { %v549_v14 = vpop.f32.mrf.mxu0  ;;  %v613_v15 = vpop.f32.mrf.mxu1 }
  0xff   : > { %775 = vst.msk [vmem:[%s1163_s22 + $0x10] sm:$0xff] %vm453_vm0, %v743_v10  ;;  %791 = vst.msk [vmem:[%s1163_s22 + $0x90] sm:$0xff] %vm453_vm0, %v759_v11  ;;  %v712_v16 = vadd.f32 %v1152_v44, %v673_v12  ;;  %v728_v17 = vadd.f32 %v1152_v44, %v689_v13 }
 0x100   : > { %v552_v18 = vpop.f32.mrf.mxu0  ;;  %v616_v19 = vpop.f32.mrf.mxu1 }
 0x101   : > { %v744_v20 = vmax.f32 %v712_v16, 0.0  ;;  %v760_v21 = vmax.f32 %v728_v17, 0.0  ;;  %v674_v22 = vmul.f32 %v1147_v42, %v552_v18  ;;  %v690_v23 = vmul.f32 %v1147_v42, %v616_v19 }
 0x102   : > { %v554_v24 = vpop.f32.mrf.mxu0  ;;  %v618_v25 = vpop.f32.mrf.mxu1 }
 0x103   : > { %776 = vst.msk [vmem:[%s1163_s22 + $0x18] sm:$0xff] %vm453_vm0, %v744_v20  ;;  %792 = vst.msk [vmem:[%s1163_s22 + $0x98] sm:$0xff] %vm453_vm0, %v760_v21  ;;  %v713_v26 = vadd.f32 %v1152_v44, %v674_v22  ;;  %v729_v27 = vadd.f32 %v1152_v44, %v690_v23 }
 0x104   : > { %v555_v28 = vpop.f32.mrf.mxu0  ;;  %v619_v29 = vpop.f32.mrf.mxu1 }
 0x105   : > { %v745_v30 = vmax.f32 %v713_v26, 0.0  ;;  %v761_v31 = vmax.f32 %v729_v27, 0.0  ;;  %v675_v32 = vmul.f32 %v1147_v42, %v555_v28  ;;  %v691_v33 = vmul.f32 %v1147_v42, %v619_v29 }
 0x106   : > { %v557_v34 = vpop.f32.mrf.mxu0  ;;  %v621_v35 = vpop.f32.mrf.mxu1 }
 0x107   : > { %777 = vst.msk [vmem:[%s1163_s22 + $0x20] sm:$0xff] %vm453_vm0, %v745_v30  ;;  %793 = vst.msk [vmem:[%s1163_s22 + $0xa0] sm:$0xff] %vm453_vm0, %v761_v31  ;;  %v714_v36 = vadd.f32 %v1152_v44, %v675_v32  ;;  %v730_v37 = vadd.f32 %v1152_v44, %v691_v33 }
 0x108   : > { %v560_v38 = vpop.f32.mrf.mxu0  ;;  %v624_v39 = vpop.f32.mrf.mxu1 }
 0x109   : > { %v746_v40 = vmax.f32 %v714_v36, 0.0  ;;  %v762_v41 = vmax.f32 %v730_v37, 0.0  ;;  %v676_v43 = vmul.f32 %v1147_v42, %v560_v38  ;;  %v692_v45 = vmul.f32 %v1147_v42, %v624_v39 }
 0x10a   : > { %v562_v46 = vpop.f32.mrf.mxu0  ;;  %v626_v47 = vpop.f32.mrf.mxu1 }
 0x10b   : > { %778 = vst.msk [vmem:[%s1163_s22 + $0x28] sm:$0xff] %vm453_vm0, %v746_v40  ;;  %794 = vst.msk [vmem:[%s1163_s22 + $0xa8] sm:$0xff] %vm453_vm0, %v762_v41  ;;  %v715_v48 = vadd.f32 %v1152_v44, %v676_v43  ;;  %v731_v49 = vadd.f32 %v1152_v44, %v692_v45 }
 0x10c   : > { %v563_v50 = vpop.f32.mrf.mxu0  ;;  %v627_v51 = vpop.f32.mrf.mxu1 }
 0x10d   : > { %v747_v52 = vmax.f32 %v715_v48, 0.0  ;;  %v763_v53 = vmax.f32 %v731_v49, 0.0  ;;  %v677_v54 = vmul.f32 %v1147_v42, %v563_v50  ;;  %v693_v55 = vmul.f32 %v1147_v42, %v627_v51 }
 0x10e   : > { %v565_v56 = vpop.f32.mrf.mxu0  ;;  %v629_v57 = vpop.f32.mrf.mxu1 }
 0x10f   : > { %779 = vst.msk [vmem:[%s1163_s22 + $0x30] sm:$0xff] %vm453_vm0, %v747_v52  ;;  %795 = vst.msk [vmem:[%s1163_s22 + $0xb0] sm:$0xff] %vm453_vm0, %v763_v53  ;;  %v716_v58 = vadd.f32 %v1152_v44, %v677_v54  ;;  %v732_v59 = vadd.f32 %v1152_v44, %v693_v55 }
 0x110   : > { %v568_v60 = vpop.f32.mrf.mxu0  ;;  %v632_v61 = vpop.f32.mrf.mxu1 }
 0x111   : > { %v748_v62 = vmax.f32 %v716_v58, 0.0  ;;  %v764_v63 = vmax.f32 %v732_v59, 0.0  ;;  %v678_v0 = vmul.f32 %v1147_v42, %v568_v60  ;;  %v694_v1 = vmul.f32 %v1147_v42, %v632_v61 }
 0x112   : > { %v570_v2 = vpop.f32.mrf.mxu0  ;;  %v634_v3 = vpop.f32.mrf.mxu1 }
 0x113   : > { %780 = vst.msk [vmem:[%s1163_s22 + $0x38] sm:$0xff] %vm453_vm0, %v748_v62  ;;  %796 = vst.msk [vmem:[%s1163_s22 + $0xb8] sm:$0xff] %vm453_vm0, %v764_v63  ;;  %v717_v4 = vadd.f32 %v1152_v44, %v678_v0  ;;  %v733_v5 = vadd.f32 %v1152_v44, %v694_v1 }
 0x114   : > { %v571_v6 = vpop.f32.mrf.mxu0  ;;  %v635_v7 = vpop.f32.mrf.mxu1 }
 0x115   : > { %v749_v8 = vmax.f32 %v717_v4, 0.0  ;;  %v765_v9 = vmax.f32 %v733_v5, 0.0  ;;  %v679_v10 = vmul.f32 %v1147_v42, %v571_v6  ;;  %v695_v11 = vmul.f32 %v1147_v42, %v635_v7 }
 0x116   : > { %v573_v12 = vpop.f32.mrf.mxu0  ;;  %v637_v13 = vpop.f32.mrf.mxu1 }
 0x117   : > { %781 = vst.msk [vmem:[%s1163_s22 + $0x40] sm:$0xff] %vm453_vm0, %v749_v8  ;;  %797 = vst.msk [vmem:[%s1163_s22 + $0xc0] sm:$0xff] %vm453_vm0, %v765_v9  ;;  %v718_v14 = vadd.f32 %v1152_v44, %v679_v10  ;;  %v734_v15 = vadd.f32 %v1152_v44, %v695_v11 }
 0x118   : > { %v576_v16 = vpop.f32.mrf.mxu0  ;;  %v640_v17 = vpop.f32.mrf.mxu1 }
 0x119   : > { %v750_v18 = vmax.f32 %v718_v14, 0.0  ;;  %v766_v19 = vmax.f32 %v734_v15, 0.0  ;;  %v680_v20 = vmul.f32 %v1147_v42, %v576_v16  ;;  %v696_v21 = vmul.f32 %v1147_v42, %v640_v17 }
 0x11a   : > { %v578_v22 = vpop.f32.mrf.mxu0  ;;  %v642_v23 = vpop.f32.mrf.mxu1 }
 0x11b   : > { %782 = vst.msk [vmem:[%s1163_s22 + $0x48] sm:$0xff] %vm453_vm0, %v750_v18  ;;  %798 = vst.msk [vmem:[%s1163_s22 + $0xc8] sm:$0xff] %vm453_vm0, %v766_v19  ;;  %v719_v24 = vadd.f32 %v1152_v44, %v680_v20  ;;  %v735_v25 = vadd.f32 %v1152_v44, %v696_v21 }
 0x11c   : > { %v579_v26 = vpop.f32.mrf.mxu0  ;;  %v643_v27 = vpop.f32.mrf.mxu1 }
 0x11d   : > { %v751_v28 = vmax.f32 %v719_v24, 0.0  ;;  %v767_v29 = vmax.f32 %v735_v25, 0.0  ;;  %v681_v30 = vmul.f32 %v1147_v42, %v579_v26  ;;  %v697_v31 = vmul.f32 %v1147_v42, %v643_v27 }
 0x11e   : > { %v581_v32 = vpop.f32.mrf.mxu0  ;;  %v645_v33 = vpop.f32.mrf.mxu1 }
 0x11f   : > { %783 = vst.msk [vmem:[%s1163_s22 + $0x50] sm:$0xff] %vm453_vm0, %v751_v28  ;;  %799 = vst.msk [vmem:[%s1163_s22 + $0xd0] sm:$0xff] %vm453_vm0, %v767_v29  ;;  %v720_v34 = vadd.f32 %v1152_v44, %v681_v30  ;;  %v736_v35 = vadd.f32 %v1152_v44, %v697_v31 }
 0x120   : > { %v584_v36 = vpop.f32.mrf.mxu0  ;;  %v648_v37 = vpop.f32.mrf.mxu1 }
 0x121   : > { %v752_v38 = vmax.f32 %v720_v34, 0.0  ;;  %v768_v39 = vmax.f32 %v736_v35, 0.0  ;;  %v682_v40 = vmul.f32 %v1147_v42, %v584_v36  ;;  %v698_v41 = vmul.f32 %v1147_v42, %v648_v37 }
 0x122   : > { %v586_v43 = vpop.f32.mrf.mxu0  ;;  %v650_v45 = vpop.f32.mrf.mxu1 }
 0x123   : > { %784 = vst.msk [vmem:[%s1163_s22 + $0x58] sm:$0xff] %vm453_vm0, %v752_v38  ;;  %800 = vst.msk [vmem:[%s1163_s22 + $0xd8] sm:$0xff] %vm453_vm0, %v768_v39  ;;  %v721_v46 = vadd.f32 %v1152_v44, %v682_v40  ;;  %v737_v47 = vadd.f32 %v1152_v44, %v698_v41 }
 0x124   : > { %v587_v48 = vpop.f32.mrf.mxu0  ;;  %v651_v49 = vpop.f32.mrf.mxu1 }
 0x125   : > { %v753_v50 = vmax.f32 %v721_v46, 0.0  ;;  %v769_v51 = vmax.f32 %v737_v47, 0.0  ;;  %v683_v52 = vmul.f32 %v1147_v42, %v587_v48  ;;  %v699_v53 = vmul.f32 %v1147_v42, %v651_v49 }
 0x126   : > { %v589_v54 = vpop.f32.mrf.mxu0  ;;  %v653_v55 = vpop.f32.mrf.mxu1 }
 0x127   : > { %785 = vst.msk [vmem:[%s1163_s22 + $0x60] sm:$0xff] %vm453_vm0, %v753_v50  ;;  %801 = vst.msk [vmem:[%s1163_s22 + $0xe0] sm:$0xff] %vm453_vm0, %v769_v51  ;;  %v722_v56 = vadd.f32 %v1152_v44, %v683_v52  ;;  %v738_v57 = vadd.f32 %v1152_v44, %v699_v53 }
 0x128   : > { %v592_v58 = vpop.f32.mrf.mxu0  ;;  %v656_v59 = vpop.f32.mrf.mxu1 }
 0x129   : > { %v754_v60 = vmax.f32 %v722_v56, 0.0  ;;  %v770_v61 = vmax.f32 %v738_v57, 0.0  ;;  %v684_v62 = vmul.f32 %v1147_v42, %v592_v58  ;;  %v700_v63 = vmul.f32 %v1147_v42, %v656_v59 }
 0x12a   : > { %v594_v0 = vpop.f32.mrf.mxu0  ;;  %v658_v1 = vpop.f32.mrf.mxu1 }
 0x12b   : > { %786 = vst.msk [vmem:[%s1163_s22 + $0x68] sm:$0xff] %vm453_vm0, %v754_v60  ;;  %802 = vst.msk [vmem:[%s1163_s22 + $0xe8] sm:$0xff] %vm453_vm0, %v770_v61  ;;  %v723_v2 = vadd.f32 %v1152_v44, %v684_v62  ;;  %v739_v3 = vadd.f32 %v1152_v44, %v700_v63 }
 0x12c   : > { %v595_v4 = vpop.f32.mrf.mxu0  ;;  %v659_v5 = vpop.f32.mrf.mxu1 }
 0x12d   : > { %v755_v6 = vmax.f32 %v723_v2, 0.0  ;;  %v771_v7 = vmax.f32 %v739_v3, 0.0  ;;  %v685_v8 = vmul.f32 %v1147_v42, %v595_v4  ;;  %v701_v9 = vmul.f32 %v1147_v42, %v659_v5 }
 0x12e   : > { %v597_v10 = vpop.f32.mrf.mxu0  ;;  %v661_v11 = vpop.f32.mrf.mxu1 }
 0x12f   : > { %787 = vst.msk [vmem:[%s1163_s22 + $0x70] sm:$0xff] %vm453_vm0, %v755_v6  ;;  %803 = vst.msk [vmem:[%s1163_s22 + $0xf0] sm:$0xff] %vm453_vm0, %v771_v7  ;;  %v724_v12 = vadd.f32 %v1152_v44, %v685_v8  ;;  %v740_v13 = vadd.f32 %v1152_v44, %v701_v9 }
 0x131   : > { %v756_v14 = vmax.f32 %v724_v12, 0.0  ;;  %v772_v15 = vmax.f32 %v740_v13, 0.0 }
 0x133   : > { %788 = vst.msk [vmem:[%s1163_s22 + $0x78] sm:$0xff] %vm453_vm0, %v756_v14  ;;  %804 = vst.msk [vmem:[%s1163_s22 + $0xf8] sm:$0xff] %vm453_vm0, %v772_v15 }
 0x134 PF: > { %s14_s15 = sadd.s32 1, %s1023_s15  }
 0x135   : > { %p11_p4 = scmp.ge.s32.totalorder %s14_s15, 4  }
 0x137   :  { %13 = sbr.rel (!%p11_p4) target bundleno = 1 (0x1), region = 66 }

// kernel: small_unet2_forward.19
= control target key start
LH: loop header
LB: loop body
LE: loop exit
PB: predicated region body
PF: predicated region fallthrough
CT: control target
= control target key end

     0   :  { %v470_v0 = vmov 0   ;;  %vm178_vm0 = vcmask 130048   ;;  %vm362_vm1 = vcmask 261120   ;;  %s685_s1 = inlined_call_operand.vmem [shape: bf16[144,32], index: 1, kind: input, shape index: {}]   ;;  %s686_s0 = inlined_call_operand.vmem [shape: bf16[128,144], index: 0, kind: input, shape index: {}]   ;;  %s687_s2 = inlined_call_operand.vmem [shape: f32[1,32], index: 2, kind: input, shape index: {}]   ;;  %s688_s3 = inlined_call_operand.vmem [shape: f32[1,32], index: 3, kind: input, shape index: {}]   ;;  %s689_s4 = inlined_call_operand.vmem [shape: f32[128,32], index: 4, kind: output, shape index: {}]  }
   0x1   :  { %203 = vmatprep.subr.bf16.mxu0 %v470_v0  ;;  %418 = vmatprep.subr.bf16.mxu1 %v470_v0  ;;  %v437_v1 = vld [vmem:[%s685_s1 + $0x38] sm:$0xff]   ;;  %v438_v2 = vld [vmem:[%s685_s1 + $0x30] sm:$0xff]   ;;  %v439_v3 = vld [vmem:[%s685_s1 + $0x28] sm:$0xff]  }
   0x2   :  { %204 = vmatpush1.bf16.msra.mxu0 %v437_v1  ;;  %427 = vmatpush1.bf16.msra.mxu1 %v437_v1  ;;  %v440_v4 = vld [vmem:[%s685_s1 + $0x20] sm:$0xff]   ;;  %v441_v7 = vld [vmem:[%s685_s1 + $0x18] sm:$0xff]   ;;  %v442_v8 = vld [vmem:[%s685_s1 + $0x10] sm:$0xff]  }
   0x3   :  { %205 = vmatprep.subr.bf16.mxu0 %v470_v0  ;;  %419 = vmatprep.subr.bf16.mxu1 %v470_v0  ;;  %v448_v5 = vld [vmem:[%s686_s0 + $0x4] ss:$8 sps:$4 sm:$0xff]   ;;  %v446_v12 = vld [vmem:[%s686_s0] ss:$8 sps:$4 sm:$0xff]   ;;  %v452_v14 = vld [vmem:[%s686_s0 + $0x14] ss:$8 sps:$4 sm:$0xff]  }
   0x4   :  { %v451_v6 = vld [vmem:[%s686_s0 + $0x44] ss:$8 sps:$4 sm:$0xff]   ;;  %408 = vmatprep.mubr.msk.bf16.mxu0 %vm178_vm0, %v448_v5  ;;  %v449_v13 = vld [vmem:[%s686_s0 + $0x40] ss:$8 sps:$4 sm:$0xff]   ;;  %v454_v15 = vld [vmem:[%s686_s0 + $0x54] ss:$8 sps:$4 sm:$0xff]  }
   0x5   :  { %412 = vmatprep.mubr.msk.bf16.mxu1 %vm178_vm0, %v451_v6  ;;  %v443_v9 = vld [vmem:[%s685_s1 + $0x8] sm:$0xff]   ;;  %v444_v10 = vld [vmem:[%s685_s1] sm:$0xff]   ;;  %v456_v16 = vld [vmem:[%s686_s0 + $0x10] ss:$8 sps:$4 sm:$0xff]  }
   0x6   :  { %206 = vmatpush1.bf16.msra.mxu0 %v438_v2  ;;  %428 = vmatpush1.bf16.msra.mxu1 %v438_v2  ;;  %v445_v11 = vld [vmem:[%s685_s1 + $0x40] sm:$0xff]   ;;  %v457_v17 = vld [vmem:[%s686_s0 + $0x50] ss:$8 sps:$4 sm:$0xff]   ;;  %v464_v22 = vld [vmem:[%s686_s0 + $0x34] ss:$8 sps:$4 sm:$0xff]  }
   0x7   :  { %207 = vmatprep.subr.bf16.mxu0 %v470_v0  ;;  %420 = vmatprep.subr.bf16.mxu1 %v470_v0  ;;  %v458_v18 = vld [vmem:[%s686_s0 + $0x24] ss:$8 sps:$4 sm:$0xff]   ;;  %v462_v20 = vld [vmem:[%s686_s0 + $0x20] ss:$8 sps:$4 sm:$0xff]   ;;  %v466_v23 = vld [vmem:[%s686_s0 + $0x74] ss:$8 sps:$4 sm:$0xff]  }
   0x8   :  { %v460_v19 = vld [vmem:[%s686_s0 + $0x64] ss:$8 sps:$4 sm:$0xff]   ;;  %v463_v21 = vld [vmem:[%s686_s0 + $0x60] ss:$8 sps:$4 sm:$0xff]   ;;  %v468_v24 = vld [vmem:[%s686_s0 + $0x30] ss:$8 sps:$4 sm:$0xff]  }
   0x9   :  { %v469_v25 = vld [vmem:[%s686_s0 + $0x70] ss:$8 sps:$4 sm:$0xff]   ;;  %v582_v26 = vld [vmem:[%s687_s2] ss:$0 sm:$0xff] }
   0xa   :  { %208 = vmatpush1.bf16.msra.mxu0 %v439_v3  ;;  %429 = vmatpush1.bf16.msra.mxu1 %v439_v3  ;;  %v587_v28 = vld [vmem:[%s688_s3] ss:$0 sm:$0xff] }
   0xb   :  { %209 = vmatprep.subr.bf16.mxu0 %v470_v0  ;;  %421 = vmatprep.subr.bf16.mxu1 %v470_v0 }
   0xe   :  { %210 = vmatpush1.bf16.msra.mxu0 %v440_v4  ;;  %430 = vmatpush1.bf16.msra.mxu1 %v440_v4 }
   0xf   :  { %211 = vmatprep.subr.bf16.mxu0 %v470_v0  ;;  %422 = vmatprep.subr.bf16.mxu1 %v470_v0 }
  0x12   :  { %212 = vmatpush1.bf16.msra.mxu0 %v441_v7  ;;  %431 = vmatpush1.bf16.msra.mxu1 %v441_v7 }
  0x13   :  { %213 = vmatprep.subr.bf16.mxu0 %v470_v0  ;;  %423 = vmatprep.subr.bf16.mxu1 %v470_v0 }
  0x16   :  { %214 = vmatpush1.bf16.msra.mxu0 %v442_v8  ;;  %432 = vmatpush1.bf16.msra.mxu1 %v442_v8 }
  0x17   :  { %215 = vmatprep.subr.bf16.mxu0 %v470_v0  ;;  %424 = vmatprep.subr.bf16.mxu1 %v470_v0 }
  0x1a   :  { %216 = vmatpush1.bf16.msra.mxu0 %v443_v9  ;;  %433 = vmatpush1.bf16.msra.mxu1 %v443_v9 }
  0x1b   :  { %217 = vmatprep.subr.bf16.mxu0 %v470_v0  ;;  %425 = vmatprep.subr.bf16.mxu1 %v470_v0 }
  0x1e   :  { %218 = vmatpush1.bf16.msra.mxu0 %v444_v10  ;;  %434 = vmatpush1.bf16.msra.mxu1 %v444_v10 }
  0x1f   :  { %233 = vmatprep.subr.bf16.mxu0 %v470_v0  ;;  %426 = vmatprep.subr.bf16.mxu1 %v470_v0 }
  0x22   :  { %234 = vmatpush2.bf16.msra.mxu0 %v445_v11  ;;  %435 = vmatpush2.bf16.msra.mxu1 %v445_v11 }
  0x25   :  { %236 = vmatmul.mubr.bf16.vlgmr.msra.gmra.mxu0 %v446_v12  ;;  %268 = vmatmul.mubr.bf16.vlgmr.msra.gmra.mxu1 %v449_v13 }
  0x26   :  { %409 = vmatprep.mubr.msk.bf16.mxu0 %vm178_vm0, %v452_v14  ;;  %413 = vmatprep.mubr.msk.bf16.mxu1 %vm178_vm0, %v454_v15 }
  0x2d   :  { %244 = vmatmul.mubr.bf16.gmra.mxu0 %v456_v16  ;;  %276 = vmatmul.mubr.bf16.gmra.mxu1 %v457_v17 }
  0x2e   :  { %410 = vmatprep.mubr.msk.bf16.mxu0 %vm178_vm0, %v458_v18  ;;  %414 = vmatprep.mubr.msk.bf16.mxu1 %vm178_vm0, %v460_v19 }
  0x35   :  { %252 = vmatmul.mubr.bf16.gmra.mxu0 %v462_v20  ;;  %284 = vmatmul.mubr.bf16.gmra.mxu1 %v463_v21 }
  0x36   :  { %411 = vmatprep.mubr.msk.bf16.mxu0 %vm178_vm0, %v464_v22  ;;  %415 = vmatprep.mubr.msk.bf16.mxu1 %vm178_vm0, %v466_v23 }
  0x3d   :  { %260 = vmatmul.mubr.bf16.gmra.mxu0 %v468_v24  ;;  %292 = vmatmul.mubr.bf16.gmra.mxu1 %v469_v25 }
  0xe5   :  { %v237_v27 = vpop.f32.mrf.mxu0  ;;  %v269_v29 = vpop.f32.mrf.mxu1 }
  0xe6   :  { %v307_v30 = vmul.f32 %v582_v26, %v237_v27  ;;  %v315_v31 = vmul.f32 %v582_v26, %v269_v29 }
  0xe7   :  { %v239_v32 = vpop.f32.mrf.mxu0  ;;  %v271_v33 = vpop.f32.mrf.mxu1 }
  0xe8   :  { %v330_v34 = vadd.f32 %v587_v28, %v307_v30  ;;  %v338_v35 = vadd.f32 %v587_v28, %v315_v31 }
  0xe9   :  { %v240_v36 = vpop.f32.mrf.mxu0  ;;  %v272_v37 = vpop.f32.mrf.mxu1 }
  0xea   :  { %v346_v38 = vmax.f32 %v330_v34, 0.0  ;;  %v354_v39 = vmax.f32 %v338_v35, 0.0  ;;  %v308_v40 = vmul.f32 %v582_v26, %v240_v36  ;;  %v316_v41 = vmul.f32 %v582_v26, %v272_v37 }
  0xeb   :  { %v242_v42 = vpop.f32.mrf.mxu0  ;;  %v274_v43 = vpop.f32.mrf.mxu1 }
  0xec   :  { %363 = vst.msk [vmem:[%s689_s4] sm:$0xff] %vm362_vm1, %v346_v38  ;;  %371 = vst.msk [vmem:[%s689_s4 + $0x40] sm:$0xff] %vm362_vm1, %v354_v39  ;;  %v331_v44 = vadd.f32 %v587_v28, %v308_v40  ;;  %v339_v45 = vadd.f32 %v587_v28, %v316_v41 }
  0xed   :  { %v245_v46 = vpop.f32.mrf.mxu0  ;;  %v277_v47 = vpop.f32.mrf.mxu1 }
  0xee   :  { %v347_v48 = vmax.f32 %v331_v44, 0.0  ;;  %v355_v49 = vmax.f32 %v339_v45, 0.0  ;;  %v309_v50 = vmul.f32 %v582_v26, %v245_v46  ;;  %v317_v51 = vmul.f32 %v582_v26, %v277_v47 }
  0xef   :  { %v247_v52 = vpop.f32.mrf.mxu0  ;;  %v279_v53 = vpop.f32.mrf.mxu1 }
  0xf0   :  { %364 = vst.msk [vmem:[%s689_s4 + $0x8] sm:$0xff] %vm362_vm1, %v347_v48  ;;  %372 = vst.msk [vmem:[%s689_s4 + $0x48] sm:$0xff] %vm362_vm1, %v355_v49  ;;  %v332_v54 = vadd.f32 %v587_v28, %v309_v50  ;;  %v340_v55 = vadd.f32 %v587_v28, %v317_v51 }
  0xf1   :  { %v248_v56 = vpop.f32.mrf.mxu0  ;;  %v280_v57 = vpop.f32.mrf.mxu1 }
  0xf2   :  { %v348_v58 = vmax.f32 %v332_v54, 0.0  ;;  %v356_v59 = vmax.f32 %v340_v55, 0.0  ;;  %v310_v60 = vmul.f32 %v582_v26, %v248_v56  ;;  %v318_v61 = vmul.f32 %v582_v26, %v280_v57 }
  0xf3   :  { %v250_v62 = vpop.f32.mrf.mxu0  ;;  %v282_v63 = vpop.f32.mrf.mxu1 }
  0xf4   :  { %365 = vst.msk [vmem:[%s689_s4 + $0x10] sm:$0xff] %vm362_vm1, %v348_v58  ;;  %373 = vst.msk [vmem:[%s689_s4 + $0x50] sm:$0xff] %vm362_vm1, %v356_v59  ;;  %v333_v0 = vadd.f32 %v587_v28, %v310_v60  ;;  %v341_v1 = vadd.f32 %v587_v28, %v318_v61 }
  0xf5   :  { %v253_v2 = vpop.f32.mrf.mxu0  ;;  %v285_v3 = vpop.f32.mrf.mxu1 }
  0xf6   :  { %v349_v4 = vmax.f32 %v333_v0, 0.0  ;;  %v357_v5 = vmax.f32 %v341_v1, 0.0  ;;  %v311_v6 = vmul.f32 %v582_v26, %v253_v2  ;;  %v319_v7 = vmul.f32 %v582_v26, %v285_v3 }
  0xf7   :  { %v255_v8 = vpop.f32.mrf.mxu0  ;;  %v287_v9 = vpop.f32.mrf.mxu1 }
  0xf8   :  { %366 = vst.msk [vmem:[%s689_s4 + $0x18] sm:$0xff] %vm362_vm1, %v349_v4  ;;  %374 = vst.msk [vmem:[%s689_s4 + $0x58] sm:$0xff] %vm362_vm1, %v357_v5  ;;  %v334_v10 = vadd.f32 %v587_v28, %v311_v6  ;;  %v342_v11 = vadd.f32 %v587_v28, %v319_v7 }
  0xf9   :  { %v256_v12 = vpop.f32.mrf.mxu0  ;;  %v288_v13 = vpop.f32.mrf.mxu1 }
  0xfa   :  { %v350_v14 = vmax.f32 %v334_v10, 0.0  ;;  %v358_v15 = vmax.f32 %v342_v11, 0.0  ;;  %v312_v16 = vmul.f32 %v582_v26, %v256_v12  ;;  %v320_v17 = vmul.f32 %v582_v26, %v288_v13 }
  0xfb   :  { %v258_v18 = vpop.f32.mrf.mxu0  ;;  %v290_v19 = vpop.f32.mrf.mxu1 }
  0xfc   :  { %367 = vst.msk [vmem:[%s689_s4 + $0x20] sm:$0xff] %vm362_vm1, %v350_v14  ;;  %375 = vst.msk [vmem:[%s689_s4 + $0x60] sm:$0xff] %vm362_vm1, %v358_v15  ;;  %v335_v20 = vadd.f32 %v587_v28, %v312_v16  ;;  %v343_v21 = vadd.f32 %v587_v28, %v320_v17 }
  0xfd   :  { %v261_v22 = vpop.f32.mrf.mxu0  ;;  %v293_v23 = vpop.f32.mrf.mxu1 }
  0xfe   :  { %v351_v24 = vmax.f32 %v335_v20, 0.0  ;;  %v359_v25 = vmax.f32 %v343_v21, 0.0  ;;  %v313_v27 = vmul.f32 %v582_v26, %v261_v22  ;;  %v321_v29 = vmul.f32 %v582_v26, %v293_v23 }
  0xff   :  { %v263_v30 = vpop.f32.mrf.mxu0  ;;  %v295_v31 = vpop.f32.mrf.mxu1 }
 0x100   :  { %368 = vst.msk [vmem:[%s689_s4 + $0x28] sm:$0xff] %vm362_vm1, %v351_v24  ;;  %376 = vst.msk [vmem:[%s689_s4 + $0x68] sm:$0xff] %vm362_vm1, %v359_v25  ;;  %v336_v32 = vadd.f32 %v587_v28, %v313_v27  ;;  %v344_v33 = vadd.f32 %v587_v28, %v321_v29 }
 0x101   :  { %v264_v34 = vpop.f32.mrf.mxu0  ;;  %v296_v35 = vpop.f32.mrf.mxu1 }
 0x102   :  { %v352_v36 = vmax.f32 %v336_v32, 0.0  ;;  %v360_v37 = vmax.f32 %v344_v33, 0.0  ;;  %v314_v38 = vmul.f32 %v582_v26, %v264_v34  ;;  %v322_v39 = vmul.f32 %v582_v26, %v296_v35 }
 0x103   :  { %v266_v40 = vpop.f32.mrf.mxu0  ;;  %v298_v41 = vpop.f32.mrf.mxu1 }
 0x104   :  { %369 = vst.msk [vmem:[%s689_s4 + $0x30] sm:$0xff] %vm362_vm1, %v352_v36  ;;  %377 = vst.msk [vmem:[%s689_s4 + $0x70] sm:$0xff] %vm362_vm1, %v360_v37  ;;  %v337_v42 = vadd.f32 %v587_v28, %v314_v38  ;;  %v345_v43 = vadd.f32 %v587_v28, %v322_v39 }
 0x106   :  { %v353_v44 = vmax.f32 %v337_v42, 0.0  ;;  %v361_v45 = vmax.f32 %v345_v43, 0.0 }
 0x108   :  { %370 = vst.msk [vmem:[%s689_s4 + $0x38] sm:$0xff] %vm362_vm1, %v353_v44  ;;  %378 = vst.msk [vmem:[%s689_s4 + $0x78] sm:$0xff] %vm362_vm1, %v361_v45 }

// kernel: small_unet2_forward.20
= control target key start
LH: loop header
LB: loop body
LE: loop exit
PB: predicated region body
PF: predicated region fallthrough
CT: control target
= control target key end

     0   :  { %vm314_vm0 = vcmask 261120   ;;  %s1116_s1 = inlined_call_operand.vmem [shape: bf16[288,32], index: 1, kind: input, shape index: {}]   ;;  %s1117_s0 = inlined_call_operand.vmem [shape: bf16[128,288], index: 0, kind: input, shape index: {}]   ;;  %s1118_s2 = inlined_call_operand.vmem [shape: f32[1,32], index: 2, kind: input, shape index: {}]   ;;  %s1119_s3 = inlined_call_operand.vmem [shape: f32[1,32], index: 3, kind: input, shape index: {}]   ;;  %s1120_s4 = inlined_call_operand.vmem [shape: f32[128,32], index: 4, kind: output, shape index: {}]  }
   0x1   :  { %v777_v0 = vld [vmem:[%s1116_s1 + $0x78] sm:$0xff]   ;;  %v779_v2 = vld [vmem:[%s1116_s1 + $0x70] sm:$0xff]   ;;  %v781_v4 = vld [vmem:[%s1116_s1 + $0x68] sm:$0xff]  }
   0x2   :  { %v778_v1 = vld [vmem:[%s1116_s1 + $0x38] sm:$0xff]   ;;  %667 = vmatprep.subr.bf16.mxu0 %v777_v0  ;;  %761 = vmatprep.subr.bf16.mxu1 %v777_v0  ;;  %v780_v3 = vld [vmem:[%s1116_s1 + $0x30] sm:$0xff]   ;;  %v782_v5 = vld [vmem:[%s1116_s1 + $0x28] sm:$0xff]  }
   0x3   :  { %668 = vmatpush3.bf16.msra.mxu0 %v778_v1  ;;  %769 = vmatpush3.bf16.msra.mxu1 %v778_v1  ;;  %v783_v6 = vld [vmem:[%s1116_s1 + $0x60] sm:$0xff]   ;;  %v785_v8 = vld [vmem:[%s1116_s1 + $0x58] sm:$0xff]   ;;  %v787_v10 = vld [vmem:[%s1116_s1 + $0x50] sm:$0xff]  }
   0x4   :  { %669 = vmatprep.subr.bf16.mxu0 %v779_v2  ;;  %762 = vmatprep.subr.bf16.mxu1 %v779_v2  ;;  %v784_v7 = vld [vmem:[%s1116_s1 + $0x20] sm:$0xff]   ;;  %v786_v9 = vld [vmem:[%s1116_s1 + $0x18] sm:$0xff]   ;;  %v788_v13 = vld [vmem:[%s1116_s1 + $0x10] sm:$0xff]  }
   0x5   :  { %v795_v11 = vld [vmem:[%s1117_s0 + $0x4] ss:$12 sps:$4 sm:$0xff]   ;;  %v798_v12 = vld [vmem:[%s1117_s0 + $0x94] ss:$12 sps:$4 sm:$0xff]   ;;  %v789_v14 = vld [vmem:[%s1116_s1 + $0x48] sm:$0xff]  }
   0x6   :  { %371 = vmatprep.mubr.bf16.mxu0 %v795_v11  ;;  %419 = vmatprep.mubr.bf16.mxu1 %v798_v12  ;;  %v790_v15 = vld [vmem:[%s1116_s1 + $0x8] sm:$0xff]   ;;  %v791_v16 = vld [vmem:[%s1116_s1 + $0x40] sm:$0xff]   ;;  %v796_v20 = vld [vmem:[%s1117_s0 + $0x90] ss:$12 sps:$4 sm:$0xff]  }
   0x7   :  { %670 = vmatpush3.bf16.msra.mxu0 %v780_v3  ;;  %770 = vmatpush3.bf16.msra.mxu1 %v780_v3  ;;  %v792_v17 = vld [vmem:[%s1116_s1] sm:$0xff]   ;;  %v799_v19 = vld [vmem:[%s1116_s1 + $0x88] sm:$0xff]   ;;  %v810_v28 = vld [vmem:[%s1117_s0 + $0x30] ss:$12 sps:$4 sm:$0xff]  }
   0x8   :  { %671 = vmatprep.subr.bf16.mxu0 %v781_v4  ;;  %763 = vmatprep.subr.bf16.mxu1 %v781_v4  ;;  %v793_v18 = vld [vmem:[%s1117_s0] ss:$12 sps:$4 sm:$0xff]   ;;  %v800_v21 = vld [vmem:[%s1117_s0 + $0x1c] ss:$12 sps:$4 sm:$0xff]   ;;  %v804_v24 = vld [vmem:[%s1117_s0 + $0x18] ss:$12 sps:$4 sm:$0xff]  }
   0x9   :  { %v802_v22 = vld [vmem:[%s1117_s0 + $0xac] ss:$12 sps:$4 sm:$0xff]   ;;  %v806_v23 = vld [vmem:[%s1116_s1 + $0x80] sm:$0xff]   ;;  %v805_v25 = vld [vmem:[%s1117_s0 + $0xa8] ss:$12 sps:$4 sm:$0xff]  }
   0xa   :  { %v807_v26 = vld [vmem:[%s1117_s0 + $0x34] ss:$12 sps:$4 sm:$0xff]   ;;  %v812_v30 = vld [vmem:[%s1117_s0 + $0x4c] ss:$12 sps:$4 sm:$0xff]   ;;  %v816_v33 = vld [vmem:[%s1117_s0 + $0x50] ss:$12 sps:$4 sm:$0xff]  }
   0xb   :  { %672 = vmatpush3.bf16.msra.mxu0 %v782_v5  ;;  %771 = vmatpush3.bf16.msra.mxu1 %v782_v5  ;;  %v809_v27 = vld [vmem:[%s1117_s0 + $0x8] ss:$12 sps:$4 sm:$0xff]   ;;  %v811_v29 = vld [vmem:[%s1117_s0 + $0x20] ss:$12 sps:$4 sm:$0xff]   ;;  %v814_v31 = vld [vmem:[%s1117_s0 + $0x38] ss:$12 sps:$4 sm:$0xff]  }
   0xc   :  { %673 = vmatprep.subr.bf16.mxu0 %v783_v6  ;;  %764 = vmatprep.subr.bf16.mxu1 %v783_v6  ;;  %v815_v32 = vld [vmem:[%s1117_s0 + $0x48] ss:$12 sps:$4 sm:$0xff]   ;;  %v817_v34 = vld [vmem:[%s1117_s0 + $0x64] ss:$12 sps:$4 sm:$0xff]   ;;  %v820_v36 = vld [vmem:[%s1117_s0 + $0x60] ss:$12 sps:$4 sm:$0xff]  }
   0xd   :  { %v819_v35 = vld [vmem:[%s1117_s0 + $0x68] ss:$12 sps:$4 sm:$0xff]   ;;  %v821_v37 = vld [vmem:[%s1117_s0 + $0x80] ss:$12 sps:$4 sm:$0xff]   ;;  %v824_v39 = vld [vmem:[%s1117_s0 + $0x98] ss:$12 sps:$4 sm:$0xff]  }
   0xe   :  { %v822_v38 = vld [vmem:[%s1117_s0 + $0x7c] ss:$12 sps:$4 sm:$0xff]   ;;  %v825_v40 = vld [vmem:[%s1117_s0 + $0x78] ss:$12 sps:$4 sm:$0xff]   ;;  %v1005_v61 = vld [vmem:[%s1118_s2] ss:$0 sm:$0xff] }
   0xf   :  { %674 = vmatpush3.bf16.msra.mxu0 %v784_v7  ;;  %772 = vmatpush3.bf16.msra.mxu1 %v784_v7  ;;  %v826_v41 = vld [vmem:[%s1117_s0 + $0xb0] ss:$12 sps:$4 sm:$0xff]   ;;  %v1010_v0 = vld [vmem:[%s1119_s3] ss:$0 sm:$0xff] }
  0x10   :  { %675 = vmatprep.subr.bf16.mxu0 %v785_v8  ;;  %765 = vmatprep.subr.bf16.mxu1 %v785_v8 }
  0x13   :  { %676 = vmatpush3.bf16.msra.mxu0 %v786_v9  ;;  %773 = vmatpush3.bf16.msra.mxu1 %v786_v9 }
  0x14   :  { %677 = vmatprep.subr.bf16.mxu0 %v787_v10  ;;  %766 = vmatprep.subr.bf16.mxu1 %v787_v10 }
  0x17   :  { %678 = vmatpush3.bf16.msra.mxu0 %v788_v13  ;;  %774 = vmatpush3.bf16.msra.mxu1 %v788_v13 }
  0x18   :  { %679 = vmatprep.subr.bf16.mxu0 %v789_v14  ;;  %767 = vmatprep.subr.bf16.mxu1 %v789_v14 }
  0x1b   :  { %680 = vmatpush3.bf16.msra.mxu0 %v790_v15  ;;  %775 = vmatpush3.bf16.msra.mxu1 %v790_v15 }
  0x1c   :  { %681 = vmatprep.subr.bf16.mxu0 %v791_v16  ;;  %768 = vmatprep.subr.bf16.mxu1 %v791_v16 }
  0x1f   :  { %682 = vmatpush3.bf16.msra.mxu0 %v792_v17  ;;  %776 = vmatpush3.bf16.msra.mxu1 %v792_v17 }
  0x20   :  { %741 = vmatprep.subr.bf16.mxu1 %v799_v19 }
  0x22   :  { %372 = vmatmul.mubr.bf16.vlgmr.msra.gmra.mxu0 %v793_v18  ;;  %420 = vmatmul.mubr.bf16.vlgmr.msra.gmra.mxu1 %v796_v20 }
  0x23   :  { %742 = vmatpush3.bf16.msra.mxu1 %v799_v19  ;;  %379 = vmatprep.mubr.bf16.mxu0 %v800_v21 }
  0x24   :  { %427 = vmatprep.mubr.bf16.mxu1 %v802_v22  ;;  %743 = vmatprep.subr.bf16.mxu1 %v806_v23 }
  0x27   :  { %744 = vmatpush3.bf16.msra.mxu1 %v806_v23 }
  0x2a   :  { %380 = vmatmul.mubr.bf16.gmra.mxu0 %v804_v24  ;;  %428 = vmatmul.mubr.bf16.gmra.mxu1 %v805_v25 }
  0x2b   :  { %387 = vmatprep.mubr.bf16.mxu0 %v807_v26  ;;  %745 = vmatprep.mubr.msk.bf16.mxu1 %vm314_vm0, %v809_v27 }
  0x32   :  { %388 = vmatmul.mubr.bf16.gmra.mxu0 %v810_v28  ;;  %746 = vmatmul.mubr.msk.bf16.vlgmr.msra.gmra.mxu1 %vm314_vm0, %v811_v29 }
  0x33   :  { %395 = vmatprep.mubr.bf16.mxu0 %v812_v30  ;;  %749 = vmatprep.mubr.msk.bf16.mxu1 %vm314_vm0, %v814_v31 }
  0x3a   :  { %396 = vmatmul.mubr.bf16.gmra.mxu0 %v815_v32  ;;  %750 = vmatmul.mubr.msk.bf16.gmra.mxu1 %vm314_vm0, %v816_v33 }
  0x3b   :  { %403 = vmatprep.mubr.bf16.mxu0 %v817_v34  ;;  %753 = vmatprep.mubr.msk.bf16.mxu1 %vm314_vm0, %v819_v35 }
  0x42   :  { %404 = vmatmul.mubr.bf16.gmra.mxu0 %v820_v36  ;;  %754 = vmatmul.mubr.msk.bf16.gmra.mxu1 %vm314_vm0, %v821_v37 }
  0x43   :  { %411 = vmatprep.mubr.bf16.mxu0 %v822_v38  ;;  %757 = vmatprep.mubr.msk.bf16.mxu1 %vm314_vm0, %v824_v39 }
  0x4a   :  { %412 = vmatmul.mubr.bf16.gmra.mxu0 %v825_v40  ;;  %758 = vmatmul.mubr.msk.bf16.gmra.mxu1 %vm314_vm0, %v826_v41 }
  0xe2   :  { %v683_v42 = vpop.f32.mrf.mxu0  ;;  %v986_v43 = vpop.f32.mrf.mxu1 }
  0xe4   :  { %v684_v44 = vpop.f32.mrf.mxu0  ;;  %v988_v45 = vpop.f32.mrf.mxu1 }
  0xe5   :  { %v685_v62 = vadd.f32 %v684_v44, %v683_v42 }
  0xe6   :  { %v686_v46 = vpop.f32.mrf.mxu0  ;;  %v990_v47 = vpop.f32.mrf.mxu1 }
  0xe8   :  { %v687_v48 = vpop.f32.mrf.mxu0  ;;  %v992_v49 = vpop.f32.mrf.mxu1 }
  0xe9   :  { %v688_v11 = vadd.f32 %v687_v48, %v686_v46 }
  0xea   :  { %v689_v50 = vpop.f32.mrf.mxu0  ;;  %v994_v51 = vpop.f32.mrf.mxu1 }
  0xec   :  { %v690_v52 = vpop.f32.mrf.mxu0  ;;  %v996_v53 = vpop.f32.mrf.mxu1 }
  0xed   :  { %v691_v58 = vadd.f32 %v690_v52, %v689_v50 }
  0xee   :  { %v692_v54 = vpop.f32.mrf.mxu0  ;;  %v998_v55 = vpop.f32.mrf.mxu1 }
  0xf0   :  { %v693_v56 = vpop.f32.mrf.mxu0  ;;  %v1000_v57 = vpop.f32.mrf.mxu1 }
  0xf1   :  { %v694_v3 = vadd.f32 %v693_v56, %v692_v54 }
  0xf2   :  { %v695_v59 = vpop.f32.mrf.mxu0  ;;  %v747_v60 = vpop.f32.mrf.mxu1 }
  0xf3   :  { %v479_v63 = vadd.f32 %v747_v60, %v691_v58 }
  0xf4   :  { %v696_v1 = vpop.f32.mrf.mxu0  ;;  %v470_v2 = vpop.f32.mrf.mxu1 }
  0xf5   :  { %v542_v4 = vmul.f32 %v1005_v61, %v479_v63  ;;  %v471_v5 = vadd.f32 %v685_v62, %v470_v2  ;;  %v697_v20 = vadd.f32 %v696_v1, %v695_v59 }
  0xf6   :  { %v698_v6 = vpop.f32.mrf.mxu0  ;;  %v748_v7 = vpop.f32.mrf.mxu1 }
  0xf7   :  { %v565_v8 = vadd.f32 %v1010_v0, %v542_v4  ;;  %v540_v9 = vmul.f32 %v1005_v61, %v471_v5  ;;  %v482_v10 = vadd.f32 %v748_v7, %v694_v3  ;;  %v727_v7 = vadd.f32 %v996_v53, %v994_v51 }
  0xf8   :  { %v699_v12 = vpop.f32.mrf.mxu0  ;;  %v473_v13 = vpop.f32.mrf.mxu1  ;;  %v721_v53 = vadd.f32 %v988_v45, %v986_v43 }
  0xf9   :  { %v581_v14 = vmax.f32 %v565_v8, 0.0  ;;  %v563_v15 = vadd.f32 %v1010_v0, %v540_v9  ;;  %v543_v16 = vmul.f32 %v1005_v61, %v482_v10  ;;  %v474_v17 = vadd.f32 %v688_v11, %v473_v13 }
  0xfa   :  { %v701_v18 = vpop.f32.mrf.mxu0  ;;  %v751_v19 = vpop.f32.mrf.mxu1  ;;  %v700_v32 = vadd.f32 %v699_v12, %v698_v6 }
  0xfb   :  { %597 = vst.msk [vmem:[%s1120_s4 + $0x10] sm:$0xff] %vm314_vm0, %v581_v14  ;;  %v579_v21 = vmax.f32 %v563_v15, 0.0  ;;  %v566_v22 = vadd.f32 %v1010_v0, %v543_v16  ;;  %v541_v23 = vmul.f32 %v1005_v61, %v474_v17  ;;  %v730_v15 = vadd.f32 %v1000_v57, %v998_v55 }
  0xfc   :  { %v702_v24 = vpop.f32.mrf.mxu0  ;;  %v486_v25 = vpop.f32.mrf.mxu1 }
  0xfd   :  { %595 = vst.msk [vmem:[%s1120_s4] sm:$0xff] %vm314_vm0, %v579_v21  ;;  %v582_v26 = vmax.f32 %v566_v22, 0.0  ;;  %v703_v27 = vadd.f32 %v702_v24, %v701_v18  ;;  %v487_v28 = vadd.f32 %v697_v20, %v486_v25  ;;  %v564_v29 = vadd.f32 %v1010_v0, %v541_v23 }
  0xfe   :  { %v704_v30 = vpop.f32.mrf.mxu0  ;;  %v752_v31 = vpop.f32.mrf.mxu1  ;;  %v724_v25 = vadd.f32 %v992_v49, %v990_v47 }
  0xff   :  { %598 = vst.msk [vmem:[%s1120_s4 + $0x18] sm:$0xff] %vm314_vm0, %v582_v26  ;;  %v495_v33 = vadd.f32 %v751_v19, %v703_v27  ;;  %v544_v34 = vmul.f32 %v1005_v61, %v487_v28  ;;  %v580_v35 = vmax.f32 %v564_v29, 0.0 }
 0x100   :  { %v705_v36 = vpop.f32.mrf.mxu0  ;;  %v489_v37 = vpop.f32.mrf.mxu1 }
 0x101   :  { %v546_v38 = vmul.f32 %v1005_v61, %v495_v33  ;;  %v567_v39 = vadd.f32 %v1010_v0, %v544_v34  ;;  %v706_v40 = vadd.f32 %v705_v36, %v704_v30  ;;  %v490_v41 = vadd.f32 %v700_v32, %v489_v37  ;;  %596 = vst.msk [vmem:[%s1120_s4 + $0x8] sm:$0xff] %vm314_vm0, %v580_v35 }
 0x102   :  { %v707_v42 = vpop.f32.mrf.mxu0  ;;  %v755_v44 = vpop.f32.mrf.mxu1 }
 0x103   :  { %v569_v46 = vadd.f32 %v1010_v0, %v546_v38  ;;  %v583_v48 = vmax.f32 %v567_v39, 0.0  ;;  %v498_v50 = vadd.f32 %v752_v31, %v706_v40  ;;  %v545_v52 = vmul.f32 %v1005_v61, %v490_v41 }
 0x104   :  { %v708_v54 = vpop.f32.mrf.mxu0  ;;  %v502_v56 = vpop.f32.mrf.mxu1 }
 0x105   :  { %v585_v58 = vmax.f32 %v569_v46, 0.0  ;;  %599 = vst.msk [vmem:[%s1120_s4 + $0x20] sm:$0xff] %vm314_vm0, %v583_v48  ;;  %v547_v59 = vmul.f32 %v1005_v61, %v498_v50  ;;  %v568_v60 = vadd.f32 %v1010_v0, %v545_v52  ;;  %v709_v62 = vadd.f32 %v708_v54, %v707_v42 }
 0x106   :  { %v710_v63 = vpop.f32.mrf.mxu0  ;;  %v756_v1 = vpop.f32.mrf.mxu1 }
 0x107   :  { %601 = vst.msk [vmem:[%s1120_s4 + $0x30] sm:$0xff] %vm314_vm0, %v585_v58  ;;  %v570_v2 = vadd.f32 %v1010_v0, %v547_v59  ;;  %v584_v3 = vmax.f32 %v568_v60, 0.0  ;;  %v503_v4 = vadd.f32 %v709_v62, %v502_v56 }
 0x108   :  { %v711_v5 = vpop.f32.mrf.mxu0  ;;  %v505_v6 = vpop.f32.mrf.mxu1 }
 0x109   :  { %v586_v8 = vmax.f32 %v570_v2, 0.0  ;;  %600 = vst.msk [vmem:[%s1120_s4 + $0x28] sm:$0xff] %vm314_vm0, %v584_v3  ;;  %v548_v9 = vmul.f32 %v1005_v61, %v503_v4  ;;  %v712_v10 = vadd.f32 %v711_v5, %v710_v63 }
 0x10a   :  { %v713_v11 = vpop.f32.mrf.mxu0  ;;  %v759_v12 = vpop.f32.mrf.mxu1 }
 0x10b   :  { %602 = vst.msk [vmem:[%s1120_s4 + $0x38] sm:$0xff] %vm314_vm0, %v586_v8  ;;  %v571_v13 = vadd.f32 %v1010_v0, %v548_v9  ;;  %v506_v14 = vadd.f32 %v712_v10, %v505_v6  ;;  %v527_v51 = vadd.f32 %v759_v12, %v727_v7 }
 0x10c   :  { %v714_v16 = vpop.f32.mrf.mxu0  ;;  %v518_v17 = vpop.f32.mrf.mxu1 }
 0x10d   :  { %v587_v18 = vmax.f32 %v571_v13, 0.0  ;;  %v549_v19 = vmul.f32 %v1005_v61, %v506_v14  ;;  %v554_v20 = vmul.f32 %v1005_v61, %v527_v51  ;;  %v715_v21 = vadd.f32 %v714_v16, %v713_v11 }
 0x10e   :  { %v519_v22 = vadd.f32 %v721_v53, %v518_v17  ;;  %v716_v23 = vpop.f32.mrf.mxu0  ;;  %v760_v24 = vpop.f32.mrf.mxu1 }
 0x10f   :  { %603 = vst.msk [vmem:[%s1120_s4 + $0x40] sm:$0xff] %vm314_vm0, %v587_v18  ;;  %v572_v43 = vadd.f32 %v1010_v0, %v549_v19  ;;  %v577_v45 = vadd.f32 %v1010_v0, %v554_v20  ;;  %v511_v55 = vadd.f32 %v755_v44, %v715_v21  ;;  %v530_v57 = vadd.f32 %v760_v24, %v730_v15 }
 0x110   :  { %v552_v26 = vmul.f32 %v1005_v61, %v519_v22  ;;  %v717_v27 = vpop.f32.mrf.mxu0  ;;  %v521_v28 = vpop.f32.mrf.mxu1 }
 0x111   :  { %v588_v29 = vmax.f32 %v572_v43, 0.0  ;;  %v593_v30 = vmax.f32 %v577_v45, 0.0  ;;  %v550_v31 = vmul.f32 %v1005_v61, %v511_v55  ;;  %v555_v32 = vmul.f32 %v1005_v61, %v530_v57 }
 0x112   :  { %v575_v33 = vadd.f32 %v1010_v0, %v552_v26  ;;  %v718_v34 = vadd.f32 %v717_v27, %v716_v23  ;;  %v522_v35 = vadd.f32 %v724_v25, %v521_v28 }
 0x113   :  { %604 = vst.msk [vmem:[%s1120_s4 + $0x48] sm:$0xff] %vm314_vm0, %v588_v29  ;;  %609 = vst.msk [vmem:[%s1120_s4 + $0x70] sm:$0xff] %vm314_vm0, %v593_v30  ;;  %v573_v47 = vadd.f32 %v1010_v0, %v550_v31  ;;  %v578_v49 = vadd.f32 %v1010_v0, %v555_v32 }
 0x114   :  { %v591_v36 = vmax.f32 %v575_v33, 0.0  ;;  %v514_v37 = vadd.f32 %v756_v1, %v718_v34  ;;  %v553_v38 = vmul.f32 %v1005_v61, %v522_v35 }
 0x115   :  { %v589_v39 = vmax.f32 %v573_v47, 0.0  ;;  %v594_v40 = vmax.f32 %v578_v49, 0.0 }
 0x116   :  { %607 = vst.msk [vmem:[%s1120_s4 + $0x60] sm:$0xff] %vm314_vm0, %v591_v36  ;;  %v551_v41 = vmul.f32 %v1005_v61, %v514_v37  ;;  %v576_v42 = vadd.f32 %v1010_v0, %v553_v38 }
 0x117   :  { %605 = vst.msk [vmem:[%s1120_s4 + $0x50] sm:$0xff] %vm314_vm0, %v589_v39  ;;  %610 = vst.msk [vmem:[%s1120_s4 + $0x78] sm:$0xff] %vm314_vm0, %v594_v40 }
 0x118   :  { %v574_v44 = vadd.f32 %v1010_v0, %v551_v41  ;;  %v592_v46 = vmax.f32 %v576_v42, 0.0 }
 0x11a   :  { %v590_v48 = vmax.f32 %v574_v44, 0.0  ;;  %608 = vst.msk [vmem:[%s1120_s4 + $0x68] sm:$0xff] %vm314_vm0, %v592_v46 }
 0x11c   :  { %606 = vst.msk [vmem:[%s1120_s4 + $0x58] sm:$0xff] %vm314_vm0, %v590_v48 }

// kernel: sub.4
= control target key start
LH: loop header
LB: loop body
LE: loop exit
PB: predicated region body
PF: predicated region fallthrough
CT: control target
= control target key end

     0   :  { %v12_v3 = vmov 0.0   ;;  %s37_s0 = inlined_call_operand.vmem [shape: f32[2], index: 0, kind: input, shape index: {}]   ;;  %s38_s1 = inlined_call_operand.vmem [shape: f32[2], index: 1, kind: input, shape index: {}]   ;;  %s39_s2 = inlined_call_operand.vmem [shape: bf16[2], index: 2, kind: output, shape index: {}]  }
   0x1   :  { %v3_v0 = vld [vmem:[%s37_s0] sm:$0x1] }
   0x2   :  { %v4_v1 = vld [vmem:[%s38_s1] sm:$0x1] }
   0x3   :  { %v7_v2 = vsub.f32 %v3_v0, %v4_v1 }
   0x5   :  { %v9_v4 = vpack.c.bf16 %v12_v3, %v7_v2 }
   0x7   :  { %10 = vst [vmem:[%s39_s2] sm:$0x1] %v9_v4 }

// kernel: small_unet2_forward.21
= control target key start
LH: loop header
LB: loop body
LE: loop exit
PB: predicated region body
PF: predicated region fallthrough
CT: control target
= control target key end

     0   :  { %vm200_vm0 = vcmask 261120   ;;  %vm331_vm1 = vcmask 523264   ;;  %s553_s1 = inlined_call_operand.vmem [shape: bf16[288,64], index: 1, kind: input, shape index: {}]   ;;  %s554_s0 = inlined_call_operand.vmem [shape: bf16[32,288], index: 0, kind: input, shape index: {}]   ;;  %s555_s2 = inlined_call_operand.vmem [shape: f32[1,64], index: 2, kind: input, shape index: {}]   ;;  %s556_s3 = inlined_call_operand.vmem [shape: f32[1,64], index: 3, kind: input, shape index: {}]   ;;  %s557_s4 = inlined_call_operand.vmem [shape: f32[32,64], index: 4, kind: output, shape index: {}]  }
   0x1   :  { %v408_v0 = vld [vmem:[%s553_s1 + $0x78] sm:$0xff]   ;;  %v410_v2 = vld [vmem:[%s553_s1 + $0x70] sm:$0xff]   ;;  %v412_v4 = vld [vmem:[%s553_s1 + $0x68] sm:$0xff]  }
   0x2   :  { %v409_v1 = vld [vmem:[%s553_s1 + $0x38] sm:$0xff]   ;;  %368 = vmatprep.subr.bf16.mxu0 %v408_v0  ;;  %v411_v3 = vld [vmem:[%s553_s1 + $0x30] sm:$0xff]   ;;  %v413_v5 = vld [vmem:[%s553_s1 + $0x28] sm:$0xff]  }
   0x3   :  { %369 = vmatpush3.bf16.msra.mxu0 %v409_v1  ;;  %v414_v6 = vld [vmem:[%s553_s1 + $0x60] sm:$0xff]   ;;  %v416_v8 = vld [vmem:[%s553_s1 + $0x58] sm:$0xff]   ;;  %v422_v9 = vld [vmem:[%s553_s1 + $0x88] sm:$0xff]  }
   0x4   :  { %370 = vmatprep.subr.bf16.mxu0 %v410_v2  ;;  %v415_v7 = vld [vmem:[%s553_s1 + $0x20] sm:$0xff]   ;;  %v417_v10 = vld [vmem:[%s553_s1 + $0x18] sm:$0xff]   ;;  %v418_v11 = vld [vmem:[%s553_s1 + $0x50] sm:$0xff]   ;;  %400 = vmatprep.subr.bf16.mxu1 %v422_v9 }
   0x5   :  { %v419_v12 = vld [vmem:[%s553_s1 + $0x10] sm:$0xff]   ;;  %401 = vmatpush3.bf16.msra.mxu1 %v422_v9  ;;  %v425_v13 = vld [vmem:[%s553_s1 + $0x80] sm:$0xff]   ;;  %v420_v14 = vld [vmem:[%s553_s1 + $0x48] sm:$0xff]  }
   0x6   :  { %402 = vmatprep.subr.bf16.mxu1 %v425_v13  ;;  %v428_v15 = vld [vmem:[%s554_s0 + $0x4] ss:$12 sps:$4 sm:$0xff]   ;;  %v429_v16 = vld [vmem:[%s554_s0 + $0x8] ss:$12 sps:$4 sm:$0xff]   ;;  %v430_v17 = vld [vmem:[%s554_s0 + $0x20] ss:$12 sps:$4 sm:$0xff]  }
   0x7   :  { %371 = vmatpush3.bf16.msra.mxu0 %v411_v3  ;;  %239 = vmatprep.mubr.bf16.mxu0 %v428_v15  ;;  %v421_v18 = vld [vmem:[%s553_s1 + $0x8] sm:$0xff]   ;;  %v423_v19 = vld [vmem:[%s553_s1 + $0x40] sm:$0xff]  }
   0x8   :  { %372 = vmatprep.subr.bf16.mxu0 %v412_v4  ;;  %404 = vmatprep.mubr.msk.bf16.mxu1 %vm200_vm0, %v429_v16  ;;  %v424_v20 = vld [vmem:[%s553_s1] sm:$0xff]   ;;  %v431_v22 = vld [vmem:[%s554_s0 + $0x1c] ss:$12 sps:$4 sm:$0xff]  }
   0x9   :  { %403 = vmatpush3.bf16.msra.mxu1 %v425_v13  ;;  %v426_v21 = vld [vmem:[%s554_s0] ss:$12 sps:$4 sm:$0xff]   ;;  %v433_v23 = vld [vmem:[%s554_s0 + $0x18] ss:$12 sps:$4 sm:$0xff]  }
   0xa   :  { %v366_v31 = vld [vmem:[%s555_s2] ss:$0 sm:$0xff] }
   0xb   :  { %373 = vmatpush3.bf16.msra.mxu0 %v413_v5  ;;  %v367_v33 = vld [vmem:[%s556_s3] ss:$0 sm:$0xff] }
   0xc   :  { %374 = vmatprep.subr.bf16.mxu0 %v414_v6  ;;  %405 = vmatmul.mubr.msk.bf16.vlgmr.msra.gmra.mxu1 %vm200_vm0, %v430_v17 }
   0xf   :  { %375 = vmatpush3.bf16.msra.mxu0 %v415_v7 }
  0x10   :  { %376 = vmatprep.subr.bf16.mxu0 %v416_v8 }
  0x13   :  { %377 = vmatpush3.bf16.msra.mxu0 %v417_v10 }
  0x14   :  { %378 = vmatprep.subr.bf16.mxu0 %v418_v11 }
  0x17   :  { %379 = vmatpush3.bf16.msra.mxu0 %v419_v12 }
  0x18   :  { %380 = vmatprep.subr.bf16.mxu0 %v420_v14 }
  0x1b   :  { %381 = vmatpush3.bf16.msra.mxu0 %v421_v18 }
  0x1c   :  { %382 = vmatprep.subr.bf16.mxu0 %v423_v19 }
  0x1f   :  { %383 = vmatpush3.bf16.msra.mxu0 %v424_v20 }
  0x22   :  { %240 = vmatmul.mubr.bf16.vlgmr.msra.gmra.mxu0 %v426_v21 }
  0x23   :  { %247 = vmatprep.mubr.bf16.mxu0 %v431_v22 }
  0x2a   :  { %248 = vmatmul.mubr.bf16.gmra.mxu0 %v433_v23 }
  0xcc   :  { %v406_v24 = vpop.f32.mrf.mxu1 }
  0xce   :  { %v290_v25 = vpop.f32.mrf.mxu1 }
  0xd0   :  { %v407_v28 = vpop.f32.mrf.mxu1 }
  0xd2   :  { %v293_v35 = vpop.f32.mrf.mxu1 }
  0xe2   :  { %v384_v26 = vpop.f32.mrf.mxu0 }
  0xe4   :  { %v385_v27 = vpop.f32.mrf.mxu0 }
  0xe5   :  { %v386_v29 = vadd.f32 %v385_v27, %v384_v26 }
  0xe6   :  { %v387_v30 = vpop.f32.mrf.mxu0 }
  0xe7   :  { %v291_v32 = vadd.f32 %v386_v29, %v290_v25 }
  0xe8   :  { %v388_v34 = vpop.f32.mrf.mxu0 }
  0xe9   :  { %v312_v36 = vmul.f32 %v366_v31, %v291_v32  ;;  %v389_v37 = vadd.f32 %v388_v34, %v387_v30 }
  0xea   :  { %v390_v38 = vpop.f32.mrf.mxu0 }
  0xeb   :  { %v323_v39 = vadd.f32 %v367_v33, %v312_v36  ;;  %v294_v40 = vadd.f32 %v389_v37, %v293_v35 }
  0xec   :  { %v391_v41 = vpop.f32.mrf.mxu0 }
  0xed   :  { %v327_v42 = vmax.f32 %v323_v39, 0.0  ;;  %v313_v43 = vmul.f32 %v366_v31, %v294_v40  ;;  %v392_v44 = vadd.f32 %v391_v41, %v390_v38 }
  0xee   :  { %v393_v45 = vpop.f32.mrf.mxu0 }
  0xef   :  { %332 = vst.msk [vmem:[%s557_s4] sm:$0xff] %vm331_vm1, %v327_v42  ;;  %v324_v46 = vadd.f32 %v367_v33, %v313_v43  ;;  %v299_v47 = vadd.f32 %v406_v24, %v392_v44 }
  0xf0   :  { %v394_v48 = vpop.f32.mrf.mxu0 }
  0xf1   :  { %v328_v49 = vmax.f32 %v324_v46, 0.0  ;;  %v314_v50 = vmul.f32 %v366_v31, %v299_v47  ;;  %v395_v51 = vadd.f32 %v394_v48, %v393_v45 }
  0xf3   :  { %333 = vst.msk [vmem:[%s557_s4 + $0x8] sm:$0xff] %vm331_vm1, %v328_v49  ;;  %v325_v52 = vadd.f32 %v367_v33, %v314_v50  ;;  %v302_v53 = vadd.f32 %v407_v28, %v395_v51 }
  0xf5   :  { %v329_v54 = vmax.f32 %v325_v52, 0.0  ;;  %v315_v55 = vmul.f32 %v366_v31, %v302_v53 }
  0xf7   :  { %334 = vst.msk [vmem:[%s557_s4 + $0x10] sm:$0xff] %vm331_vm1, %v329_v54  ;;  %v326_v56 = vadd.f32 %v367_v33, %v315_v55 }
  0xf9   :  { %v330_v57 = vmax.f32 %v326_v56, 0.0 }
  0xfb   :  { %335 = vst.msk [vmem:[%s557_s4 + $0x18] sm:$0xff] %vm331_vm1, %v330_v57 }

// kernel: small_unet2_forward.22
= control target key start
LH: loop header
LB: loop body
LE: loop exit
PB: predicated region body
PF: predicated region fallthrough
CT: control target
= control target key end

     0   :  { %vm368_vm0 = vcmask 523264   ;;  %s917_s1 = inlined_call_operand.vmem [shape: bf16[576,64], index: 1, kind: input, shape index: {}]   ;;  %s918_s0 = inlined_call_operand.vmem [shape: bf16[32,576], index: 0, kind: input, shape index: {}]   ;;  %s919_s2 = inlined_call_operand.vmem [shape: f32[1,64], index: 2, kind: input, shape index: {}]   ;;  %s920_s3 = inlined_call_operand.vmem [shape: f32[1,64], index: 3, kind: input, shape index: {}]   ;;  %s921_s4 = inlined_call_operand.vmem [shape: f32[32,64], index: 4, kind: output, shape index: {}]  }
   0x1   :  { %v680_v0 = vld [vmem:[%s917_s1 + $0x78] sm:$0xff]   ;;  %v684_v4 = vld [vmem:[%s917_s1 + $0x70] sm:$0xff]   ;;  %v688_v8 = vld [vmem:[%s917_s1 + $0x68] sm:$0xff]  }
   0x2   :  { %v681_v1 = vld [vmem:[%s917_s1 + $0xf8] sm:$0xff]   ;;  %606 = vmatprep.subr.bf16.mxu0 %v680_v0  ;;  %v685_v5 = vld [vmem:[%s917_s1 + $0xf0] sm:$0xff]   ;;  %v689_v9 = vld [vmem:[%s917_s1 + $0xe8] sm:$0xff]  }
   0x3   :  { %v682_v2 = vld [vmem:[%s917_s1 + $0x38] sm:$0xff]   ;;  %634 = vmatprep.subr.bf16.mxu1 %v681_v1  ;;  %v686_v6 = vld [vmem:[%s917_s1 + $0x30] sm:$0xff]   ;;  %v690_v10 = vld [vmem:[%s917_s1 + $0x28] sm:$0xff]  }
   0x4   :  { %v683_v3 = vld [vmem:[%s917_s1 + $0xb8] sm:$0xff]   ;;  %607 = vmatpush3.bf16.msra.mxu0 %v682_v2  ;;  %v687_v7 = vld [vmem:[%s917_s1 + $0xb0] sm:$0xff]   ;;  %v691_v11 = vld [vmem:[%s917_s1 + $0xa8] sm:$0xff]  }
   0x5   :  { %635 = vmatpush3.bf16.msra.mxu1 %v683_v3  ;;  %608 = vmatprep.subr.bf16.mxu0 %v684_v4  ;;  %v692_v12 = vld [vmem:[%s917_s1 + $0x60] sm:$0xff]   ;;  %v696_v16 = vld [vmem:[%s917_s1 + $0x58] sm:$0xff]   ;;  %v700_v20 = vld [vmem:[%s917_s1 + $0x50] sm:$0xff]  }
   0x6   :  { %636 = vmatprep.subr.bf16.mxu1 %v685_v5  ;;  %v693_v13 = vld [vmem:[%s917_s1 + $0xe0] sm:$0xff]   ;;  %v697_v17 = vld [vmem:[%s917_s1 + $0xd8] sm:$0xff]   ;;  %v701_v21 = vld [vmem:[%s917_s1 + $0xd0] sm:$0xff]  }
   0x7   :  { %v694_v14 = vld [vmem:[%s917_s1 + $0x20] sm:$0xff]   ;;  %v698_v18 = vld [vmem:[%s917_s1 + $0x18] sm:$0xff]   ;;  %v702_v22 = vld [vmem:[%s917_s1 + $0x10] sm:$0xff]  }
   0x8   :  { %609 = vmatpush3.bf16.msra.mxu0 %v686_v6  ;;  %v695_v15 = vld [vmem:[%s917_s1 + $0xa0] sm:$0xff]   ;;  %v699_v19 = vld [vmem:[%s917_s1 + $0x98] sm:$0xff]   ;;  %v703_v23 = vld [vmem:[%s917_s1 + $0x90] sm:$0xff]  }
   0x9   :  { %637 = vmatpush3.bf16.msra.mxu1 %v687_v7  ;;  %610 = vmatprep.subr.bf16.mxu0 %v688_v8  ;;  %v704_v24 = vld [vmem:[%s917_s1 + $0x48] sm:$0xff]   ;;  %v708_v28 = vld [vmem:[%s917_s1 + $0x40] sm:$0xff]   ;;  %v718_v36 = vld [vmem:[%s917_s1 + $0x118] sm:$0xff]  }
   0xa   :  { %638 = vmatprep.subr.bf16.mxu1 %v689_v9  ;;  %v705_v25 = vld [vmem:[%s917_s1 + $0xc8] sm:$0xff]   ;;  %v709_v29 = vld [vmem:[%s917_s1 + $0xc0] sm:$0xff]   ;;  %v719_v37 = vld [vmem:[%s917_s1 + $0x110] sm:$0xff]  }
   0xb   :  { %v706_v26 = vld [vmem:[%s917_s1 + $0x8] sm:$0xff]   ;;  %v710_v30 = vld [vmem:[%s917_s1] sm:$0xff]  }
   0xc   :  { %611 = vmatpush3.bf16.msra.mxu0 %v690_v10  ;;  %v707_v27 = vld [vmem:[%s917_s1 + $0x88] sm:$0xff]   ;;  %v711_v31 = vld [vmem:[%s917_s1 + $0x80] sm:$0xff]  }
   0xd   :  { %639 = vmatpush3.bf16.msra.mxu1 %v691_v11  ;;  %612 = vmatprep.subr.bf16.mxu0 %v692_v12  ;;  %v712_v32 = vld [vmem:[%s918_s0] ss:$20 sps:$4 sm:$0xff]   ;;  %v714_v33 = vld [vmem:[%s918_s0 + $0x4] ss:$20 sps:$4 sm:$0xff]   ;;  %v715_v34 = vld [vmem:[%s918_s0 + $0x8] ss:$20 sps:$4 sm:$0xff]  }
   0xe   :  { %640 = vmatprep.subr.bf16.mxu1 %v693_v13  ;;  %v717_v35 = vld [vmem:[%s918_s0 + $0xc] ss:$20 sps:$4 sm:$0xff]   ;;  %407 = vmatprep.mubr.bf16.mxu0 %v714_v33  ;;  %v722_v39 = vld [vmem:[%s918_s0 + $0x34] ss:$20 sps:$4 sm:$0xff]   ;;  %v725_v42 = vld [vmem:[%s918_s0 + $0x30] ss:$20 sps:$4 sm:$0xff]  }
   0xf   :  { %456 = vmatprep.mubr.bf16.mxu1 %v717_v35  ;;  %v720_v38 = vld [vmem:[%s918_s0 + $0x2c] ss:$20 sps:$4 sm:$0xff]   ;;  %v724_v40 = vld [vmem:[%s918_s0 + $0x28] ss:$20 sps:$4 sm:$0xff]   ;;  %v728_v43 = vld [vmem:[%s918_s0 + $0x10] ss:$20 sps:$4 sm:$0xff]  }
  0x10   :  { %613 = vmatpush3.bf16.msra.mxu0 %v694_v14  ;;  %v726_v41 = vld [vmem:[%s917_s1 + $0x108] sm:$0xff]   ;;  %v727_v44 = vld [vmem:[%s917_s1 + $0x100] sm:$0xff]  }
  0x11   :  { %641 = vmatpush3.bf16.msra.mxu1 %v695_v15  ;;  %614 = vmatprep.subr.bf16.mxu0 %v696_v16  ;;  %v729_v45 = vld [vmem:[%s918_s0 + $0x38] ss:$20 sps:$4 sm:$0xff]   ;;  %v604_v6 = vld [vmem:[%s919_s2] ss:$0 sm:$0xff] }
  0x12   :  { %642 = vmatprep.subr.bf16.mxu1 %v697_v17  ;;  %v605_v11 = vld [vmem:[%s920_s3] ss:$0 sm:$0xff] }
  0x14   :  { %615 = vmatpush3.bf16.msra.mxu0 %v698_v18 }
  0x15   :  { %643 = vmatpush3.bf16.msra.mxu1 %v699_v19  ;;  %616 = vmatprep.subr.bf16.mxu0 %v700_v20 }
  0x16   :  { %644 = vmatprep.subr.bf16.mxu1 %v701_v21 }
  0x18   :  { %617 = vmatpush3.bf16.msra.mxu0 %v702_v22 }
  0x19   :  { %645 = vmatpush3.bf16.msra.mxu1 %v703_v23  ;;  %618 = vmatprep.subr.bf16.mxu0 %v704_v24 }
  0x1a   :  { %646 = vmatprep.subr.bf16.mxu1 %v705_v25 }
  0x1c   :  { %619 = vmatpush3.bf16.msra.mxu0 %v706_v26 }
  0x1d   :  { %647 = vmatpush3.bf16.msra.mxu1 %v707_v27  ;;  %620 = vmatprep.subr.bf16.mxu0 %v708_v28 }
  0x1e   :  { %648 = vmatprep.subr.bf16.mxu1 %v709_v29 }
  0x20   :  { %621 = vmatpush3.bf16.msra.mxu0 %v710_v30 }
  0x21   :  { %649 = vmatpush3.bf16.msra.mxu1 %v711_v31  ;;  %668 = vmatprep.subr.bf16.mxu0 %v718_v36 }
  0x23   :  { %408 = vmatmul.mubr.bf16.vlgmr.msra.gmra.mxu0 %v712_v32 }
  0x24   :  { %457 = vmatmul.mubr.bf16.vlgmr.msra.gmra.mxu1 %v715_v34  ;;  %669 = vmatpush3.bf16.msra.mxu0 %v718_v36 }
  0x25   :  { %670 = vmatprep.subr.bf16.mxu0 %v719_v37  ;;  %415 = vmatprep.mubr.bf16.mxu0 %v720_v38 }
  0x26   :  { %464 = vmatprep.mubr.bf16.mxu1 %v722_v39 }
  0x28   :  { %671 = vmatpush3.bf16.msra.mxu0 %v719_v37 }
  0x29   :  { %672 = vmatprep.subr.bf16.mxu0 %v726_v41 }
  0x2b   :  { %416 = vmatmul.mubr.bf16.gmra.mxu0 %v724_v40 }
  0x2c   :  { %465 = vmatmul.mubr.bf16.gmra.mxu1 %v725_v42  ;;  %676 = vmatprep.mubr.msk.bf16.mxu0 %vm368_vm0, %v728_v43 }
  0x2d   :  { %673 = vmatpush3.bf16.msra.mxu0 %v726_v41 }
  0x2e   :  { %674 = vmatprep.subr.bf16.mxu0 %v727_v44 }
  0x31   :  { %675 = vmatpush3.bf16.msra.mxu0 %v727_v44 }
  0x34   :  { %677 = vmatmul.mubr.msk.bf16.vlgmr.msra.gmra.mxu0 %vm368_vm0, %v729_v45 }
  0xe3   :  { %v622_v46 = vpop.f32.mrf.mxu0 }
  0xe4   :  { %v650_v47 = vpop.f32.mrf.mxu1 }
  0xe5   :  { %v623_v48 = vpop.f32.mrf.mxu0 }
  0xe6   :  { %v651_v49 = vpop.f32.mrf.mxu1  ;;  %v624_v62 = vadd.f32 %v623_v48, %v622_v46 }
  0xe7   :  { %v625_v50 = vpop.f32.mrf.mxu0  ;;  %v652_v63 = vadd.f32 %v651_v49, %v650_v47 }
  0xe8   :  { %v653_v51 = vpop.f32.mrf.mxu1 }
  0xe9   :  { %v626_v52 = vpop.f32.mrf.mxu0  ;;  %v459_v10 = vadd.f32 %v652_v63, %v624_v62 }
  0xea   :  { %v654_v53 = vpop.f32.mrf.mxu1  ;;  %v627_v7 = vadd.f32 %v626_v52, %v625_v50 }
  0xeb   :  { %v628_v54 = vpop.f32.mrf.mxu0  ;;  %v655_v8 = vadd.f32 %v654_v53, %v653_v51 }
  0xec   :  { %v656_v55 = vpop.f32.mrf.mxu1 }
  0xed   :  { %v629_v56 = vpop.f32.mrf.mxu0  ;;  %v462_v20 = vadd.f32 %v655_v8, %v627_v7 }
  0xee   :  { %v657_v57 = vpop.f32.mrf.mxu1  ;;  %v630_v58 = vadd.f32 %v629_v56, %v628_v54 }
  0xef   :  { %v658_v59 = vadd.f32 %v657_v57, %v656_v55  ;;  %v631_v60 = vpop.f32.mrf.mxu0 }
  0xf0   :  { %v659_v61 = vpop.f32.mrf.mxu1 }
  0xf1   :  { %v632_v0 = vpop.f32.mrf.mxu0  ;;  %v467_v4 = vadd.f32 %v658_v59, %v630_v58 }
  0xf2   :  { %v660_v1 = vpop.f32.mrf.mxu1  ;;  %v633_v2 = vadd.f32 %v632_v0, %v631_v60 }
  0xf3   :  { %v661_v3 = vadd.f32 %v660_v1, %v659_v61 }
  0xf4   :  { %v678_v5 = vpop.f32.mrf.mxu0 }
  0xf5   :  { %v516_v9 = vadd.f32 %v678_v5, %v467_v4  ;;  %v470_v15 = vadd.f32 %v661_v3, %v633_v2 }
  0xf6   :  { %v507_v12 = vpop.f32.mrf.mxu0 }
  0xf7   :  { %v531_v13 = vmul.f32 %v604_v6, %v516_v9  ;;  %v508_v14 = vadd.f32 %v507_v12, %v459_v10 }
  0xf8   :  { %v679_v16 = vpop.f32.mrf.mxu0 }
  0xf9   :  { %v542_v17 = vadd.f32 %v605_v11, %v531_v13  ;;  %v529_v18 = vmul.f32 %v604_v6, %v508_v14  ;;  %v519_v19 = vadd.f32 %v679_v16, %v470_v15 }
  0xfa   :  { %v510_v21 = vpop.f32.mrf.mxu0 }
  0xfb   :  { %v546_v22 = vmax.f32 %v542_v17, 0.0  ;;  %v540_v23 = vadd.f32 %v605_v11, %v529_v18  ;;  %v532_v24 = vmul.f32 %v604_v6, %v519_v19  ;;  %v511_v25 = vadd.f32 %v510_v21, %v462_v20 }
  0xfd   :  { %550 = vst.msk [vmem:[%s921_s4 + $0x10] sm:$0xff] %vm368_vm0, %v546_v22  ;;  %v544_v26 = vmax.f32 %v540_v23, 0.0  ;;  %v543_v27 = vadd.f32 %v605_v11, %v532_v24  ;;  %v530_v28 = vmul.f32 %v604_v6, %v511_v25 }
  0xff   :  { %548 = vst.msk [vmem:[%s921_s4] sm:$0xff] %vm368_vm0, %v544_v26  ;;  %v547_v29 = vmax.f32 %v543_v27, 0.0  ;;  %v541_v30 = vadd.f32 %v605_v11, %v530_v28 }
 0x101   :  { %551 = vst.msk [vmem:[%s921_s4 + $0x18] sm:$0xff] %vm368_vm0, %v547_v29  ;;  %v545_v31 = vmax.f32 %v541_v30, 0.0 }
 0x103   :  { %549 = vst.msk [vmem:[%s921_s4 + $0x8] sm:$0xff] %vm368_vm0, %v545_v31 }

// kernel: small_unet2_forward.23
= control target key start
LH: loop header
LB: loop body
LE: loop exit
PB: predicated region body
PF: predicated region fallthrough
CT: control target
= control target key end

     0   :  { %vm345_vm0 = vcmask 1044480   ;;  %vm346_vm1 = vcmask 1045504   ;;  %v653_v30 = vmov 65535   ;;  %v654_v39 = vmov 0.0   ;;  %s813_s1 = inlined_call_operand.vmem [shape: bf16[603,128], index: 1, kind: input, shape index: {}]   ;;  %s814_s0 = inlined_call_operand.vmem [shape: bf16[8,603], index: 0, kind: input, shape index: {}]   ;;  %s815_s2 = inlined_call_operand.vmem [shape: f32[1,128], index: 2, kind: input, shape index: {}]   ;;  %s816_s3 = inlined_call_operand.vmem [shape: f32[1,128], index: 3, kind: input, shape index: {}]   ;;  %s817_s4 = inlined_call_operand.vmem [shape: f32[8,128], index: 4, kind: output, shape index: {}]  }
   0x1   :  { %v610_v0 = vld [vmem:[%s813_s1 + $0x78] sm:$0xff]   ;;  %v614_v4 = vld [vmem:[%s813_s1 + $0x70] sm:$0xff]   ;;  %v618_v8 = vld [vmem:[%s813_s1 + $0x68] sm:$0xff]   ;;  %v347_v31 = vsel %vm345_vm0, 4294967295, %v653_v30  ;;  %vm655_vm2 = vmmov 0   ;;  %vm341_vm3 = vcmask 744448  }
   0x2   :  { %v611_v1 = vld [vmem:[%s813_s1 + $0xf8] sm:$0xff]   ;;  %540 = vmatprep.subr.bf16.mxu0 %v610_v0  ;;  %v615_v5 = vld [vmem:[%s813_s1 + $0xf0] sm:$0xff]   ;;  %v619_v9 = vld [vmem:[%s813_s1 + $0xe8] sm:$0xff]   ;;  %v348_v35 = vsel %vm346_vm1, %v347_v31, 0 }
   0x3   :  { %v612_v2 = vld [vmem:[%s813_s1 + $0x38] sm:$0xff]   ;;  %562 = vmatprep.subr.bf16.mxu1 %v611_v1  ;;  %v616_v6 = vld [vmem:[%s813_s1 + $0x30] sm:$0xff]   ;;  %v620_v10 = vld [vmem:[%s813_s1 + $0x28] sm:$0xff]  }
   0x4   :  { %v613_v3 = vld [vmem:[%s813_s1 + $0xb8] sm:$0xff]   ;;  %541 = vmatpush3.bf16.msra.mxu0 %v612_v2  ;;  %v617_v7 = vld [vmem:[%s813_s1 + $0xb0] sm:$0xff]   ;;  %v621_v11 = vld [vmem:[%s813_s1 + $0xa8] sm:$0xff]  }
   0x5   :  { %563 = vmatpush3.bf16.msra.mxu1 %v613_v3  ;;  %542 = vmatprep.subr.bf16.mxu0 %v614_v4  ;;  %v622_v12 = vld [vmem:[%s813_s1 + $0x60] sm:$0xff]   ;;  %v626_v16 = vld [vmem:[%s813_s1 + $0x58] sm:$0xff]   ;;  %v630_v20 = vld [vmem:[%s813_s1 + $0x50] sm:$0xff]  }
   0x6   :  { %564 = vmatprep.subr.bf16.mxu1 %v615_v5  ;;  %v623_v13 = vld [vmem:[%s813_s1 + $0xe0] sm:$0xff]   ;;  %v627_v17 = vld [vmem:[%s813_s1 + $0xd8] sm:$0xff]   ;;  %v631_v21 = vld [vmem:[%s813_s1 + $0xd0] sm:$0xff]  }
   0x7   :  { %v624_v14 = vld [vmem:[%s813_s1 + $0x20] sm:$0xff]   ;;  %v628_v18 = vld [vmem:[%s813_s1 + $0x18] sm:$0xff]   ;;  %v632_v22 = vld [vmem:[%s813_s1 + $0x10] sm:$0xff]  }
   0x8   :  { %543 = vmatpush3.bf16.msra.mxu0 %v616_v6  ;;  %v625_v15 = vld [vmem:[%s813_s1 + $0xa0] sm:$0xff]   ;;  %v629_v19 = vld [vmem:[%s813_s1 + $0x98] sm:$0xff]   ;;  %v633_v23 = vld [vmem:[%s813_s1 + $0x90] sm:$0xff]  }
   0x9   :  { %565 = vmatpush3.bf16.msra.mxu1 %v617_v7  ;;  %544 = vmatprep.subr.bf16.mxu0 %v618_v8  ;;  %v634_v24 = vld [vmem:[%s813_s1 + $0x48] sm:$0xff]   ;;  %v638_v28 = vld [vmem:[%s813_s1 + $0x40] sm:$0xff]   ;;  %v649_v45 = vld [vmem:[%s813_s1 + $0x118] sm:$0xff]  }
   0xa   :  { %566 = vmatprep.subr.bf16.mxu1 %v619_v9  ;;  %v635_v25 = vld [vmem:[%s813_s1 + $0xc8] sm:$0xff]   ;;  %v639_v29 = vld [vmem:[%s813_s1 + $0xc0] sm:$0xff]   ;;  %v650_v46 = vld [vmem:[%s813_s1 + $0x110] sm:$0xff]  }
   0xb   :  { %v636_v26 = vld [vmem:[%s813_s1 + $0x8] sm:$0xff]   ;;  %v640_v32 = vld [vmem:[%s813_s1] sm:$0xff]   ;;  %v644_v49 = vld [vmem:[%s814_s0 + $0x10] ss:$0 sps:$4 sm:$0xff]  }
   0xc   :  { %545 = vmatpush3.bf16.msra.mxu0 %v620_v10  ;;  %v637_v27 = vld [vmem:[%s813_s1 + $0x88] sm:$0xff]   ;;  %v641_v33 = vld [vmem:[%s813_s1 + $0x80] sm:$0xff]  }
   0xd   :  { %567 = vmatpush3.bf16.msra.mxu1 %v621_v11  ;;  %546 = vmatprep.subr.bf16.mxu0 %v622_v12  ;;  %v18_v34 = vld [vmem:[%s814_s0] sm:$0xff]  ;;  %v19_v38 = vld [vmem:[%s814_s0 + $0x8] sm:$0xff] }
   0xe   :  { %568 = vmatprep.subr.bf16.mxu1 %v623_v13  ;;  %v494_v36 = vcombine.low %v18_v34, %v18_v34  ;;  %v495_v37 = vcombine.high %v18_v34, %v18_v34  ;;  %v496_v40 = vcombine.low %v19_v38, %v19_v38  ;;  %v497_v41 = vcombine.high %v19_v38, %v19_v38  ;;  %v647_v42 = vld [vmem:[%s813_s1 + $0x128] sm:$0x3f]   ;;  %v648_v44 = vld [vmem:[%s813_s1 + $0x120] sm:$0xff]  }
   0xf   :  { %v350_v43 = vand.u32 %v647_v42, %v348_v35  ;;  %v651_v47 = vld [vmem:[%s813_s1 + $0x108] sm:$0xff]   ;;  %v652_v48 = vld [vmem:[%s813_s1 + $0x100] sm:$0xff]  }
  0x10   :  { %547 = vmatpush3.bf16.msra.mxu0 %v624_v14  ;;  %384 = vmatprep.mubr.bf16.mxu0 %v495_v37  ;;  %v538_v62 = vld [vmem:[%s815_s2] ss:$0 sm:$0xff] }
  0x11   :  { %569 = vmatpush3.bf16.msra.mxu1 %v625_v15  ;;  %548 = vmatprep.subr.bf16.mxu0 %v626_v16  ;;  %v539_v0 = vld [vmem:[%s816_s3] ss:$0 sm:$0xff] }
  0x12   :  { %570 = vmatprep.subr.bf16.mxu1 %v627_v17  ;;  %424 = vmatprep.mubr.bf16.mxu1 %v497_v41 }
  0x14   :  { %549 = vmatpush3.bf16.msra.mxu0 %v628_v18 }
  0x15   :  { %571 = vmatpush3.bf16.msra.mxu1 %v629_v19  ;;  %550 = vmatprep.subr.bf16.mxu0 %v630_v20 }
  0x16   :  { %572 = vmatprep.subr.bf16.mxu1 %v631_v21 }
  0x18   :  { %551 = vmatpush3.bf16.msra.mxu0 %v632_v22 }
  0x19   :  { %573 = vmatpush3.bf16.msra.mxu1 %v633_v23  ;;  %552 = vmatprep.subr.bf16.mxu0 %v634_v24 }
  0x1a   :  { %574 = vmatprep.subr.bf16.mxu1 %v635_v25 }
  0x1c   :  { %553 = vmatpush3.bf16.msra.mxu0 %v636_v26 }
  0x1d   :  { %575 = vmatpush3.bf16.msra.mxu1 %v637_v27  ;;  %554 = vmatprep.subr.bf16.mxu0 %v638_v28 }
  0x1e   :  { %576 = vmatprep.subr.bf16.mxu1 %v639_v29 }
  0x20   :  { %555 = vmatpush3.bf16.msra.mxu0 %v640_v32 }
  0x21   :  { %577 = vmatpush3.bf16.msra.mxu1 %v641_v33  ;;  %591 = vmatprep.subr.bf16.mxu0 %v654_v39 }
  0x23   :  { %385 = vmatmul.mubr.bf16.vlgmr.msra.gmra.mxu0 %v494_v36 }
  0x24   :  { %425 = vmatmul.mubr.bf16.vlgmr.msra.gmra.mxu1 %v496_v40  ;;  %603 = vmatprep.mubr.msk.bf16.mxu0 %vm655_vm2, %v654_v39 }
  0x25   :  { %592 = vmatpush3.bf16.msra.mxu0 %v350_v43 }
  0x26   :  { %593 = vmatprep.subr.bf16.mxu0 %v654_v39 }
  0x29   :  { %594 = vmatpush3.bf16.msra.mxu0 %v648_v44 }
  0x2a   :  { %595 = vmatprep.subr.bf16.mxu0 %v654_v39 }
  0x2d   :  { %596 = vmatpush3.bf16.msra.mxu0 %v649_v45 }
  0x2e   :  { %597 = vmatprep.subr.bf16.mxu0 %v654_v39 }
  0x31   :  { %598 = vmatpush3.bf16.msra.mxu0 %v650_v46 }
  0x32   :  { %599 = vmatprep.subr.bf16.mxu0 %v654_v39 }
  0x35   :  { %600 = vmatpush3.bf16.msra.mxu0 %v651_v47 }
  0x36   :  { %601 = vmatprep.subr.bf16.mxu0 %v654_v39 }
  0x39   :  { %602 = vmatpush3.bf16.msra.mxu0 %v652_v48 }
  0x3c   :  { %604 = vmatmul.mubr.msk.bf16.vlgmr.msra.gmra.mxu0 %vm341_vm3, %v644_v49 }
  0xe3   :  { %v556_v50 = vpop.f32.mrf.mxu0 }
  0xe4   :  { %v578_v51 = vpop.f32.mrf.mxu1 }
  0xe5   :  { %v557_v52 = vpop.f32.mrf.mxu0 }
  0xe6   :  { %v579_v53 = vpop.f32.mrf.mxu1  ;;  %v558_v58 = vadd.f32 %v557_v52, %v556_v50 }
  0xe7   :  { %v559_v54 = vpop.f32.mrf.mxu0  ;;  %v580_v59 = vadd.f32 %v579_v53, %v578_v51 }
  0xe8   :  { %v581_v55 = vpop.f32.mrf.mxu1 }
  0xe9   :  { %v560_v56 = vpop.f32.mrf.mxu0  ;;  %v427_v60 = vadd.f32 %v580_v59, %v558_v58 }
  0xea   :  { %v582_v57 = vpop.f32.mrf.mxu1 }
  0xfc   :  { %v466_v61 = vpop.f32.mrf.mxu0 }
  0xfd   :  { %v467_v63 = vadd.f32 %v466_v61, %v427_v60 }
  0xfe   :  { %v605_v1 = vpop.f32.mrf.mxu0 }
  0xff   :  { %v479_v2 = vmul.f32 %v538_v62, %v467_v63 }
 0x100   :  { %v469_v3 = vpop.f32.mrf.mxu0 }
 0x101   :  { %v487_v4 = vadd.f32 %v539_v0, %v479_v2 }
 0x102   :  { %v606_v5 = vpop.f32.mrf.mxu0 }
 0x103   :  { %v488_v6 = vmax.f32 %v487_v4, 0.0 }
 0x105   :  { %489 = vst [vmem:[%s817_s4] sm:$0xff] %v488_v6 }

// kernel: small_unet2_forward.24
= control target key start
LH: loop header
LB: loop body
LE: loop exit
PB: predicated region body
PF: predicated region fallthrough
CT: control target
= control target key end

     0   :  { %vm1137_vm0 = vmmov 0   ;;  %s1403_s1 = inlined_call_operand.vmem [shape: bf16[1152,128], index: 1, kind: input, shape index: {}]   ;;  %s1404_s0 = inlined_call_operand.vmem [shape: bf16[8,1152], index: 0, kind: input, shape index: {}]   ;;  %s1405_s2 = inlined_call_operand.vmem [shape: f32[1,128], index: 2, kind: input, shape index: {}]   ;;  %s1406_s3 = inlined_call_operand.vmem [shape: f32[1,128], index: 3, kind: input, shape index: {}]   ;;  %s1407_s4 = inlined_call_operand.vmem [shape: f32[8,128], index: 4, kind: output, shape index: {}]  }
   0x1   :  { %v1055_v0 = vld [vmem:[%s1403_s1 + $0x78] sm:$0xff]   ;;  %v1059_v4 = vld [vmem:[%s1403_s1 + $0x70] sm:$0xff]   ;;  %v1063_v8 = vld [vmem:[%s1403_s1 + $0x68] sm:$0xff]  }
   0x2   :  { %v1056_v1 = vld [vmem:[%s1403_s1 + $0xf8] sm:$0xff]   ;;  %936 = vmatprep.subr.bf16.mxu0 %v1055_v0  ;;  %v1060_v5 = vld [vmem:[%s1403_s1 + $0xf0] sm:$0xff]   ;;  %v1064_v9 = vld [vmem:[%s1403_s1 + $0xe8] sm:$0xff]  }
   0x3   :  { %v1057_v2 = vld [vmem:[%s1403_s1 + $0x38] sm:$0xff]   ;;  %958 = vmatprep.subr.bf16.mxu1 %v1056_v1  ;;  %v1061_v6 = vld [vmem:[%s1403_s1 + $0x30] sm:$0xff]   ;;  %v1065_v10 = vld [vmem:[%s1403_s1 + $0x28] sm:$0xff]  }
   0x4   :  { %v1058_v3 = vld [vmem:[%s1403_s1 + $0xb8] sm:$0xff]   ;;  %937 = vmatpush3.bf16.msra.mxu0 %v1057_v2  ;;  %v1062_v7 = vld [vmem:[%s1403_s1 + $0xb0] sm:$0xff]   ;;  %v1066_v11 = vld [vmem:[%s1403_s1 + $0xa8] sm:$0xff]  }
   0x5   :  { %959 = vmatpush3.bf16.msra.mxu1 %v1058_v3  ;;  %938 = vmatprep.subr.bf16.mxu0 %v1059_v4  ;;  %v1067_v12 = vld [vmem:[%s1403_s1 + $0x60] sm:$0xff]   ;;  %v1071_v16 = vld [vmem:[%s1403_s1 + $0x58] sm:$0xff]   ;;  %v1075_v20 = vld [vmem:[%s1403_s1 + $0x50] sm:$0xff]  }
   0x6   :  { %960 = vmatprep.subr.bf16.mxu1 %v1060_v5  ;;  %v1068_v13 = vld [vmem:[%s1403_s1 + $0xe0] sm:$0xff]   ;;  %v1072_v17 = vld [vmem:[%s1403_s1 + $0xd8] sm:$0xff]   ;;  %v1076_v21 = vld [vmem:[%s1403_s1 + $0xd0] sm:$0xff]  }
   0x7   :  { %v1069_v14 = vld [vmem:[%s1403_s1 + $0x20] sm:$0xff]   ;;  %v1073_v18 = vld [vmem:[%s1403_s1 + $0x18] sm:$0xff]   ;;  %v1077_v22 = vld [vmem:[%s1403_s1 + $0x10] sm:$0xff]  }
   0x8   :  { %939 = vmatpush3.bf16.msra.mxu0 %v1061_v6  ;;  %v1070_v15 = vld [vmem:[%s1403_s1 + $0xa0] sm:$0xff]   ;;  %v1074_v19 = vld [vmem:[%s1403_s1 + $0x98] sm:$0xff]   ;;  %v1078_v23 = vld [vmem:[%s1403_s1 + $0x90] sm:$0xff]  }
   0x9   :  { %961 = vmatpush3.bf16.msra.mxu1 %v1062_v7  ;;  %940 = vmatprep.subr.bf16.mxu0 %v1063_v8  ;;  %v1079_v24 = vld [vmem:[%s1403_s1 + $0x48] sm:$0xff]   ;;  %v1083_v28 = vld [vmem:[%s1403_s1 + $0x40] sm:$0xff]   ;;  %v1091_v38 = vld [vmem:[%s1403_s1 + $0x178] sm:$0xff]  }
   0xa   :  { %962 = vmatprep.subr.bf16.mxu1 %v1064_v9  ;;  %v1080_v25 = vld [vmem:[%s1403_s1 + $0xc8] sm:$0xff]   ;;  %v1084_v29 = vld [vmem:[%s1403_s1 + $0xc0] sm:$0xff]   ;;  %v1092_v39 = vld [vmem:[%s1403_s1 + $0x138] sm:$0xff]  }
   0xb   :  { %v1081_v26 = vld [vmem:[%s1403_s1 + $0x8] sm:$0xff]   ;;  %v1085_v30 = vld [vmem:[%s1403_s1] sm:$0xff]   ;;  %v1093_v40 = vld [vmem:[%s1403_s1 + $0x1f8] sm:$0xff]  }
   0xc   :  { %941 = vmatpush3.bf16.msra.mxu0 %v1065_v10  ;;  %v1082_v27 = vld [vmem:[%s1403_s1 + $0x88] sm:$0xff]   ;;  %v1086_v31 = vld [vmem:[%s1403_s1 + $0x80] sm:$0xff]   ;;  %v1094_v41 = vld [vmem:[%s1403_s1 + $0x1b8] sm:$0xff]  }
   0xd   :  { %963 = vmatpush3.bf16.msra.mxu1 %v1066_v11  ;;  %942 = vmatprep.subr.bf16.mxu0 %v1067_v12  ;;  %v18_v32 = vld [vmem:[%s1404_s0] sm:$0xff]  ;;  %v19_v33 = vld [vmem:[%s1404_s0 + $0x8] sm:$0xff]  ;;  %v1095_v42 = vld [vmem:[%s1403_s1 + $0x170] sm:$0xff]  }
   0xe   :  { %964 = vmatprep.subr.bf16.mxu1 %v1068_v13  ;;  %v853_v34 = vcombine.low %v18_v32, %v18_v32  ;;  %v854_v35 = vcombine.high %v18_v32, %v18_v32  ;;  %v855_v36 = vcombine.low %v19_v33, %v19_v33  ;;  %v856_v37 = vcombine.high %v19_v33, %v19_v33  ;;  %v1096_v43 = vld [vmem:[%s1403_s1 + $0x130] sm:$0xff]   ;;  %v1099_v46 = vld [vmem:[%s1403_s1 + $0x168] sm:$0xff]   ;;  %v1103_v50 = vld [vmem:[%s1403_s1 + $0x160] sm:$0xff]  }
   0xf   :  { %v1097_v44 = vld [vmem:[%s1403_s1 + $0x1f0] sm:$0xff]   ;;  %v1100_v47 = vld [vmem:[%s1403_s1 + $0x128] sm:$0xff]   ;;  %v1104_v51 = vld [vmem:[%s1403_s1 + $0x120] sm:$0xff]   ;;  %v1136_v13 = vmov 0.0  }
  0x10   :  { %943 = vmatpush3.bf16.msra.mxu0 %v1069_v14  ;;  %663 = vmatprep.mubr.bf16.mxu0 %v854_v35  ;;  %v1098_v45 = vld [vmem:[%s1403_s1 + $0x1b0] sm:$0xff]   ;;  %v1101_v48 = vld [vmem:[%s1403_s1 + $0x1e8] sm:$0xff]   ;;  %v1105_v52 = vld [vmem:[%s1403_s1 + $0x1e0] sm:$0xff]  }
  0x11   :  { %965 = vmatpush3.bf16.msra.mxu1 %v1070_v15  ;;  %944 = vmatprep.subr.bf16.mxu0 %v1071_v16  ;;  %v1102_v49 = vld [vmem:[%s1403_s1 + $0x1a8] sm:$0xff]   ;;  %v1106_v53 = vld [vmem:[%s1403_s1 + $0x1a0] sm:$0xff]   ;;  %v1107_v54 = vld [vmem:[%s1403_s1 + $0x158] sm:$0xff]  }
  0x12   :  { %966 = vmatprep.subr.bf16.mxu1 %v1072_v17  ;;  %703 = vmatprep.mubr.bf16.mxu1 %v856_v37  ;;  %v1108_v55 = vld [vmem:[%s1403_s1 + $0x118] sm:$0xff]   ;;  %v1111_v58 = vld [vmem:[%s1403_s1 + $0x150] sm:$0xff]   ;;  %v1115_v62 = vld [vmem:[%s1403_s1 + $0x148] sm:$0xff]  }
  0x13   :  { %v1109_v56 = vld [vmem:[%s1403_s1 + $0x1d8] sm:$0xff]   ;;  %v1112_v59 = vld [vmem:[%s1403_s1 + $0x110] sm:$0xff]   ;;  %v1116_v63 = vld [vmem:[%s1403_s1 + $0x108] sm:$0xff]  }
  0x14   :  { %945 = vmatpush3.bf16.msra.mxu0 %v1073_v18  ;;  %v1110_v57 = vld [vmem:[%s1403_s1 + $0x198] sm:$0xff]   ;;  %v1113_v60 = vld [vmem:[%s1403_s1 + $0x1d0] sm:$0xff]   ;;  %v1117_v0 = vld [vmem:[%s1403_s1 + $0x1c8] sm:$0xff]  }
  0x15   :  { %967 = vmatpush3.bf16.msra.mxu1 %v1074_v19  ;;  %946 = vmatprep.subr.bf16.mxu0 %v1075_v20  ;;  %v1114_v61 = vld [vmem:[%s1403_s1 + $0x190] sm:$0xff]   ;;  %v1118_v1 = vld [vmem:[%s1403_s1 + $0x188] sm:$0xff]   ;;  %v1119_v2 = vld [vmem:[%s1403_s1 + $0x140] sm:$0xff]  }
  0x16   :  { %968 = vmatprep.subr.bf16.mxu1 %v1076_v21  ;;  %v1120_v3 = vld [vmem:[%s1403_s1 + $0x100] sm:$0xff]   ;;  %v20_v5 = vld [vmem:[%s1404_s0 + $0x10] sm:$0xff]  ;;  %v21_v9 = vld [vmem:[%s1404_s0 + $0x18] sm:$0xff] }
  0x17   :  { %v1121_v4 = vld [vmem:[%s1403_s1 + $0x1c0] sm:$0xff]   ;;  %v858_v6 = vcombine.high %v20_v5, %v20_v5  ;;  %v857_v8 = vcombine.low %v20_v5, %v20_v5  ;;  %v859_v10 = vcombine.low %v21_v9, %v21_v9  ;;  %v860_v11 = vcombine.high %v21_v9, %v21_v9  ;;  %v1127_v12 = vld [vmem:[%s1403_s1 + $0x238] sm:$0xff]   ;;  %v1128_v14 = vld [vmem:[%s1403_s1 + $0x230] sm:$0xff]  }
  0x18   :  { %947 = vmatpush3.bf16.msra.mxu0 %v1077_v22  ;;  %v1124_v7 = vld [vmem:[%s1403_s1 + $0x180] sm:$0xff]   ;;  %v1129_v15 = vld [vmem:[%s1403_s1 + $0x228] sm:$0xff]   ;;  %v1131_v17 = vld [vmem:[%s1403_s1 + $0x218] sm:$0xff]  }
  0x19   :  { %969 = vmatpush3.bf16.msra.mxu1 %v1078_v23  ;;  %948 = vmatprep.subr.bf16.mxu0 %v1079_v24  ;;  %v1130_v16 = vld [vmem:[%s1403_s1 + $0x220] sm:$0xff]   ;;  %v1132_v18 = vld [vmem:[%s1403_s1 + $0x210] sm:$0xff]   ;;  %v1133_v19 = vld [vmem:[%s1403_s1 + $0x208] sm:$0xff]  }
  0x1a   :  { %970 = vmatprep.subr.bf16.mxu1 %v1080_v25  ;;  %v1134_v20 = vld [vmem:[%s1403_s1 + $0x200] sm:$0xff]  }
  0x1b   :  { %v1135_v21 = vld [vmem:[%s1404_s0 + $0x20] ss:$0 sps:$4 sm:$0xff]  }
  0x1c   :  { %949 = vmatpush3.bf16.msra.mxu0 %v1081_v26 }
  0x1d   :  { %971 = vmatpush3.bf16.msra.mxu1 %v1082_v27  ;;  %950 = vmatprep.subr.bf16.mxu0 %v1083_v28 }
  0x1e   :  { %972 = vmatprep.subr.bf16.mxu1 %v1084_v29 }
  0x20   :  { %951 = vmatpush3.bf16.msra.mxu0 %v1085_v30 }
  0x21   :  { %973 = vmatpush3.bf16.msra.mxu1 %v1086_v31  ;;  %980 = vmatprep.subr.bf16.mxu0 %v1091_v38 }
  0x22   :  { %1002 = vmatprep.subr.bf16.mxu1 %v1093_v40 }
  0x23   :  { %664 = vmatmul.mubr.bf16.vlgmr.msra.gmra.mxu0 %v853_v34 }
  0x24   :  { %704 = vmatmul.mubr.bf16.vlgmr.msra.gmra.mxu1 %v855_v36  ;;  %981 = vmatpush3.bf16.msra.mxu0 %v1092_v39 }
  0x25   :  { %1003 = vmatpush3.bf16.msra.mxu1 %v1094_v41  ;;  %982 = vmatprep.subr.bf16.mxu0 %v1095_v42 }
  0x26   :  { %1004 = vmatprep.subr.bf16.mxu1 %v1097_v44  ;;  %743 = vmatprep.mubr.bf16.mxu0 %v858_v6 }
  0x27   :  { %783 = vmatprep.mubr.bf16.mxu1 %v860_v11 }
  0x28   :  { %983 = vmatpush3.bf16.msra.mxu0 %v1096_v43 }
  0x29   :  { %1005 = vmatpush3.bf16.msra.mxu1 %v1098_v45  ;;  %984 = vmatprep.subr.bf16.mxu0 %v1099_v46  ;;  %v934_v46 = vld [vmem:[%s1405_s2] ss:$0 sm:$0xff] }
  0x2a   :  { %1006 = vmatprep.subr.bf16.mxu1 %v1101_v48  ;;  %v935_v48 = vld [vmem:[%s1406_s3] ss:$0 sm:$0xff] }
  0x2c   :  { %985 = vmatpush3.bf16.msra.mxu0 %v1100_v47 }
  0x2d   :  { %1007 = vmatpush3.bf16.msra.mxu1 %v1102_v49  ;;  %986 = vmatprep.subr.bf16.mxu0 %v1103_v50 }
  0x2e   :  { %1008 = vmatprep.subr.bf16.mxu1 %v1105_v52 }
  0x30   :  { %987 = vmatpush3.bf16.msra.mxu0 %v1104_v51 }
  0x31   :  { %1009 = vmatpush3.bf16.msra.mxu1 %v1106_v53  ;;  %988 = vmatprep.subr.bf16.mxu0 %v1107_v54 }
  0x32   :  { %1010 = vmatprep.subr.bf16.mxu1 %v1109_v56 }
  0x34   :  { %989 = vmatpush3.bf16.msra.mxu0 %v1108_v55 }
  0x35   :  { %1011 = vmatpush3.bf16.msra.mxu1 %v1110_v57  ;;  %990 = vmatprep.subr.bf16.mxu0 %v1111_v58 }
  0x36   :  { %1012 = vmatprep.subr.bf16.mxu1 %v1113_v60 }
  0x38   :  { %991 = vmatpush3.bf16.msra.mxu0 %v1112_v59 }
  0x39   :  { %1013 = vmatpush3.bf16.msra.mxu1 %v1114_v61  ;;  %992 = vmatprep.subr.bf16.mxu0 %v1115_v62 }
  0x3a   :  { %1014 = vmatprep.subr.bf16.mxu1 %v1117_v0 }
  0x3c   :  { %993 = vmatpush3.bf16.msra.mxu0 %v1116_v63 }
  0x3d   :  { %1015 = vmatpush3.bf16.msra.mxu1 %v1118_v1  ;;  %994 = vmatprep.subr.bf16.mxu0 %v1119_v2 }
  0x3e   :  { %1016 = vmatprep.subr.bf16.mxu1 %v1121_v4 }
  0x40   :  { %995 = vmatpush3.bf16.msra.mxu0 %v1120_v3 }
  0x41   :  { %1017 = vmatpush3.bf16.msra.mxu1 %v1124_v7  ;;  %1033 = vmatprep.subr.bf16.mxu0 %v1136_v13 }
  0x43   :  { %744 = vmatmul.mubr.bf16.vlgmr.msra.gmra.mxu0 %v857_v8 }
  0x44   :  { %1034 = vmatpush3.bf16.msra.mxu0 %v1127_v12  ;;  %784 = vmatmul.mubr.bf16.vlgmr.msra.gmra.mxu1 %v859_v10 }
  0x45   :  { %1035 = vmatprep.subr.bf16.mxu0 %v1136_v13  ;;  %1049 = vmatprep.mubr.msk.bf16.mxu0 %vm1137_vm0, %v1136_v13 }
  0x48   :  { %1036 = vmatpush3.bf16.msra.mxu0 %v1128_v14 }
  0x49   :  { %1037 = vmatprep.subr.bf16.mxu0 %v1136_v13 }
  0x4c   :  { %1038 = vmatpush3.bf16.msra.mxu0 %v1129_v15 }
  0x4d   :  { %1039 = vmatprep.subr.bf16.mxu0 %v1136_v13 }
  0x50   :  { %1040 = vmatpush3.bf16.msra.mxu0 %v1130_v16 }
  0x51   :  { %1041 = vmatprep.subr.bf16.mxu0 %v1136_v13 }
  0x54   :  { %1042 = vmatpush3.bf16.msra.mxu0 %v1131_v17 }
  0x55   :  { %1043 = vmatprep.subr.bf16.mxu0 %v1136_v13 }
  0x58   :  { %1044 = vmatpush3.bf16.msra.mxu0 %v1132_v18 }
  0x59   :  { %1045 = vmatprep.subr.bf16.mxu0 %v1136_v13 }
  0x5c   :  { %1046 = vmatpush3.bf16.msra.mxu0 %v1133_v19 }
  0x5d   :  { %1047 = vmatprep.subr.bf16.mxu0 %v1136_v13 }
  0x60   :  { %1048 = vmatpush3.bf16.msra.mxu0 %v1134_v20 }
  0x63   :  { %1050 = vmatmul.mubr.bf16.vlgmr.msra.gmra.mxu0 %v1135_v21 }
  0xe3   :  { %v952_v22 = vpop.f32.mrf.mxu0 }
  0xe4   :  { %v974_v23 = vpop.f32.mrf.mxu1 }
  0xe5   :  { %v953_v24 = vpop.f32.mrf.mxu0 }
  0xe6   :  { %v975_v25 = vpop.f32.mrf.mxu1  ;;  %v954_v38 = vadd.f32 %v953_v24, %v952_v22 }
  0xe7   :  { %v955_v26 = vpop.f32.mrf.mxu0  ;;  %v976_v39 = vadd.f32 %v975_v25, %v974_v23 }
  0xe8   :  { %v977_v27 = vpop.f32.mrf.mxu1 }
  0xe9   :  { %v956_v28 = vpop.f32.mrf.mxu0  ;;  %v706_v41 = vadd.f32 %v976_v39, %v954_v38 }
  0xea   :  { %v978_v29 = vpop.f32.mrf.mxu1 }
 0x103   :  { %v996_v30 = vpop.f32.mrf.mxu0 }
 0x104   :  { %v1018_v31 = vpop.f32.mrf.mxu1 }
 0x105   :  { %v997_v32 = vpop.f32.mrf.mxu0 }
 0x106   :  { %v1019_v33 = vpop.f32.mrf.mxu1  ;;  %v998_v40 = vadd.f32 %v997_v32, %v996_v30 }
 0x107   :  { %v999_v34 = vpop.f32.mrf.mxu0  ;;  %v1020_v43 = vadd.f32 %v1019_v33, %v1018_v31 }
 0x108   :  { %v1021_v35 = vpop.f32.mrf.mxu1  ;;  %v746_v42 = vadd.f32 %v998_v40, %v706_v41 }
 0x109   :  { %v1000_v36 = vpop.f32.mrf.mxu0 }
 0x10a   :  { %v1022_v37 = vpop.f32.mrf.mxu1  ;;  %v786_v44 = vadd.f32 %v1020_v43, %v746_v42 }
 0x123   :  { %v825_v45 = vpop.f32.mrf.mxu0 }
 0x124   :  { %v826_v47 = vadd.f32 %v825_v45, %v786_v44 }
 0x125   :  { %v1051_v49 = vpop.f32.mrf.mxu0 }
 0x126   :  { %v838_v50 = vmul.f32 %v934_v46, %v826_v47 }
 0x127   :  { %v828_v51 = vpop.f32.mrf.mxu0 }
 0x128   :  { %v846_v52 = vadd.f32 %v935_v48, %v838_v50 }
 0x129   :  { %v1052_v53 = vpop.f32.mrf.mxu0 }
 0x12a   :  { %v847_v54 = vmax.f32 %v846_v52, 0.0 }
 0x12c   :  { %848 = vst [vmem:[%s1407_s4] sm:$0xff] %v847_v54 }

// kernel: small_unet2_forward.25
= control target key start
LH: loop header
LB: loop body
LE: loop exit
PB: predicated region body
PF: predicated region fallthrough
CT: control target
= control target key end

     0   :  { %vm977_vm0 = vcmask 523264   ;;  %s1631_s1 = inlined_call_operand.vmem [shape: bf16[1152,64], index: 1, kind: input, shape index: {}]   ;;  %s1632_s0 = inlined_call_operand.vmem [shape: bf16[32,1152], index: 0, kind: input, shape index: {}]   ;;  %s1633_s2 = inlined_call_operand.vmem [shape: f32[1,64], index: 2, kind: input, shape index: {}]   ;;  %s1634_s3 = inlined_call_operand.vmem [shape: f32[1,64], index: 3, kind: input, shape index: {}]   ;;  %s1635_s4 = inlined_call_operand.vmem [shape: f32[32,64], index: 4, kind: output, shape index: {}]  }
   0x1   :  { %v1220_v0 = vld [vmem:[%s1631_s1 + $0x78] sm:$0xff]   ;;  %v1224_v4 = vld [vmem:[%s1631_s1 + $0x70] sm:$0xff]   ;;  %v1228_v8 = vld [vmem:[%s1631_s1 + $0x68] sm:$0xff]  }
   0x2   :  { %v1221_v1 = vld [vmem:[%s1631_s1 + $0xf8] sm:$0xff]   ;;  %1078 = vmatprep.subr.bf16.mxu0 %v1220_v0  ;;  %v1225_v5 = vld [vmem:[%s1631_s1 + $0xf0] sm:$0xff]   ;;  %v1229_v9 = vld [vmem:[%s1631_s1 + $0xe8] sm:$0xff]  }
   0x3   :  { %v1222_v2 = vld [vmem:[%s1631_s1 + $0x38] sm:$0xff]   ;;  %1106 = vmatprep.subr.bf16.mxu1 %v1221_v1  ;;  %v1226_v6 = vld [vmem:[%s1631_s1 + $0x30] sm:$0xff]   ;;  %v1230_v10 = vld [vmem:[%s1631_s1 + $0x28] sm:$0xff]  }
   0x4   :  { %v1223_v3 = vld [vmem:[%s1631_s1 + $0xb8] sm:$0xff]   ;;  %1079 = vmatpush3.bf16.msra.mxu0 %v1222_v2  ;;  %v1227_v7 = vld [vmem:[%s1631_s1 + $0xb0] sm:$0xff]   ;;  %v1231_v11 = vld [vmem:[%s1631_s1 + $0xa8] sm:$0xff]  }
   0x5   :  { %1107 = vmatpush3.bf16.msra.mxu1 %v1223_v3  ;;  %1080 = vmatprep.subr.bf16.mxu0 %v1224_v4  ;;  %v1232_v12 = vld [vmem:[%s1631_s1 + $0x60] sm:$0xff]   ;;  %v1236_v16 = vld [vmem:[%s1631_s1 + $0x58] sm:$0xff]   ;;  %v1240_v20 = vld [vmem:[%s1631_s1 + $0x50] sm:$0xff]  }
   0x6   :  { %1108 = vmatprep.subr.bf16.mxu1 %v1225_v5  ;;  %v1233_v13 = vld [vmem:[%s1631_s1 + $0xe0] sm:$0xff]   ;;  %v1237_v17 = vld [vmem:[%s1631_s1 + $0xd8] sm:$0xff]   ;;  %v1241_v21 = vld [vmem:[%s1631_s1 + $0xd0] sm:$0xff]  }
   0x7   :  { %v1234_v14 = vld [vmem:[%s1631_s1 + $0x20] sm:$0xff]   ;;  %v1238_v18 = vld [vmem:[%s1631_s1 + $0x18] sm:$0xff]   ;;  %v1242_v22 = vld [vmem:[%s1631_s1 + $0x10] sm:$0xff]  }
   0x8   :  { %1081 = vmatpush3.bf16.msra.mxu0 %v1226_v6  ;;  %v1235_v15 = vld [vmem:[%s1631_s1 + $0xa0] sm:$0xff]   ;;  %v1239_v19 = vld [vmem:[%s1631_s1 + $0x98] sm:$0xff]   ;;  %v1243_v23 = vld [vmem:[%s1631_s1 + $0x90] sm:$0xff]  }
   0x9   :  { %1109 = vmatpush3.bf16.msra.mxu1 %v1227_v7  ;;  %1082 = vmatprep.subr.bf16.mxu0 %v1228_v8  ;;  %v1244_v24 = vld [vmem:[%s1631_s1 + $0x48] sm:$0xff]   ;;  %v1248_v28 = vld [vmem:[%s1631_s1 + $0x40] sm:$0xff]   ;;  %v1258_v36 = vld [vmem:[%s1631_s1 + $0x178] sm:$0xff]  }
   0xa   :  { %1110 = vmatprep.subr.bf16.mxu1 %v1229_v9  ;;  %v1245_v25 = vld [vmem:[%s1631_s1 + $0xc8] sm:$0xff]   ;;  %v1249_v29 = vld [vmem:[%s1631_s1 + $0xc0] sm:$0xff]   ;;  %v1259_v37 = vld [vmem:[%s1631_s1 + $0x138] sm:$0xff]  }
   0xb   :  { %v1246_v26 = vld [vmem:[%s1631_s1 + $0x8] sm:$0xff]   ;;  %v1250_v30 = vld [vmem:[%s1631_s1] sm:$0xff]   ;;  %v1260_v38 = vld [vmem:[%s1631_s1 + $0x1f8] sm:$0xff]  }
   0xc   :  { %1083 = vmatpush3.bf16.msra.mxu0 %v1230_v10  ;;  %v1247_v27 = vld [vmem:[%s1631_s1 + $0x88] sm:$0xff]   ;;  %v1251_v31 = vld [vmem:[%s1631_s1 + $0x80] sm:$0xff]   ;;  %v1261_v39 = vld [vmem:[%s1631_s1 + $0x1b8] sm:$0xff]  }
   0xd   :  { %1111 = vmatpush3.bf16.msra.mxu1 %v1231_v11  ;;  %1084 = vmatprep.subr.bf16.mxu0 %v1232_v12  ;;  %v1252_v32 = vld [vmem:[%s1632_s0] ss:$36 sps:$4 sm:$0xff]   ;;  %v1255_v34 = vld [vmem:[%s1632_s0 + $0x8] ss:$36 sps:$4 sm:$0xff]   ;;  %v1262_v40 = vld [vmem:[%s1631_s1 + $0x170] sm:$0xff]  }
   0xe   :  { %1112 = vmatprep.subr.bf16.mxu1 %v1233_v13  ;;  %v1254_v33 = vld [vmem:[%s1632_s0 + $0x4] ss:$36 sps:$4 sm:$0xff]   ;;  %v1257_v35 = vld [vmem:[%s1632_s0 + $0xc] ss:$36 sps:$4 sm:$0xff]   ;;  %v1274_v52 = vld [vmem:[%s1631_s1 + $0x158] sm:$0xff]  }
   0xf   :  { %738 = vmatprep.mubr.bf16.mxu0 %v1254_v33  ;;  %787 = vmatprep.mubr.bf16.mxu1 %v1257_v35  ;;  %v1263_v41 = vld [vmem:[%s1631_s1 + $0x130] sm:$0xff]   ;;  %v1266_v44 = vld [vmem:[%s1631_s1 + $0x168] sm:$0xff]   ;;  %v1270_v48 = vld [vmem:[%s1631_s1 + $0x160] sm:$0xff]  }
  0x10   :  { %1085 = vmatpush3.bf16.msra.mxu0 %v1234_v14  ;;  %v1264_v42 = vld [vmem:[%s1631_s1 + $0x1f0] sm:$0xff]   ;;  %v1267_v45 = vld [vmem:[%s1631_s1 + $0x128] sm:$0xff]   ;;  %v1271_v49 = vld [vmem:[%s1631_s1 + $0x120] sm:$0xff]  }
  0x11   :  { %1113 = vmatpush3.bf16.msra.mxu1 %v1235_v15  ;;  %1086 = vmatprep.subr.bf16.mxu0 %v1236_v16  ;;  %v1265_v43 = vld [vmem:[%s1631_s1 + $0x1b0] sm:$0xff]   ;;  %v1268_v46 = vld [vmem:[%s1631_s1 + $0x1e8] sm:$0xff]   ;;  %v1272_v50 = vld [vmem:[%s1631_s1 + $0x1e0] sm:$0xff]  }
  0x12   :  { %1114 = vmatprep.subr.bf16.mxu1 %v1237_v17  ;;  %v1269_v47 = vld [vmem:[%s1631_s1 + $0x1a8] sm:$0xff]   ;;  %v1273_v51 = vld [vmem:[%s1631_s1 + $0x1a0] sm:$0xff]   ;;  %v1275_v53 = vld [vmem:[%s1631_s1 + $0x118] sm:$0xff]  }
  0x13   :  { %v1276_v54 = vld [vmem:[%s1632_s0 + $0x4c] ss:$36 sps:$4 sm:$0xff]   ;;  %v1278_v55 = vld [vmem:[%s1632_s0 + $0x54] ss:$36 sps:$4 sm:$0xff]   ;;  %v1292_v4 = vld [vmem:[%s1631_s1 + $0x140] sm:$0xff]  }
  0x14   :  { %1087 = vmatpush3.bf16.msra.mxu0 %v1238_v18  ;;  %v1280_v56 = vld [vmem:[%s1631_s1 + $0x1d8] sm:$0xff]   ;;  %v1281_v57 = vld [vmem:[%s1632_s0 + $0x48] ss:$36 sps:$4 sm:$0xff]   ;;  %v1282_v58 = vld [vmem:[%s1632_s0 + $0x50] ss:$36 sps:$4 sm:$0xff]  }
  0x15   :  { %1115 = vmatpush3.bf16.msra.mxu1 %v1239_v19  ;;  %1088 = vmatprep.subr.bf16.mxu0 %v1240_v20  ;;  %v1283_v59 = vld [vmem:[%s1631_s1 + $0x198] sm:$0xff]   ;;  %v1284_v60 = vld [vmem:[%s1631_s1 + $0x150] sm:$0xff]   ;;  %v1288_v0 = vld [vmem:[%s1631_s1 + $0x148] sm:$0xff]  }
  0x16   :  { %1116 = vmatprep.subr.bf16.mxu1 %v1241_v21  ;;  %v1285_v61 = vld [vmem:[%s1631_s1 + $0x110] sm:$0xff]   ;;  %v1289_v1 = vld [vmem:[%s1631_s1 + $0x108] sm:$0xff]   ;;  %v1293_v5 = vld [vmem:[%s1631_s1 + $0x100] sm:$0xff]  }
  0x17   :  { %v1286_v62 = vld [vmem:[%s1631_s1 + $0x1d0] sm:$0xff]   ;;  %v1290_v2 = vld [vmem:[%s1631_s1 + $0x1c8] sm:$0xff]   ;;  %v1294_v6 = vld [vmem:[%s1631_s1 + $0x1c0] sm:$0xff]  }
  0x18   :  { %1089 = vmatpush3.bf16.msra.mxu0 %v1242_v22  ;;  %v1287_v63 = vld [vmem:[%s1631_s1 + $0x190] sm:$0xff]   ;;  %v1291_v3 = vld [vmem:[%s1631_s1 + $0x188] sm:$0xff]   ;;  %v1298_v9 = vld [vmem:[%s1631_s1 + $0x180] sm:$0xff]  }
  0x19   :  { %1117 = vmatpush3.bf16.msra.mxu1 %v1243_v23  ;;  %1090 = vmatprep.subr.bf16.mxu0 %v1244_v24  ;;  %v1295_v7 = vld [vmem:[%s1632_s0 + $0x10] ss:$36 sps:$4 sm:$0xff]   ;;  %v1299_v10 = vld [vmem:[%s1631_s1 + $0x238] sm:$0xff]   ;;  %v1307_v16 = vld [vmem:[%s1631_s1 + $0x228] sm:$0xff]  }
  0x1a   :  { %1118 = vmatprep.subr.bf16.mxu1 %v1245_v25  ;;  %v1297_v8 = vld [vmem:[%s1632_s0 + $0x14] ss:$36 sps:$4 sm:$0xff]   ;;  %v1302_v12 = vld [vmem:[%s1632_s0 + $0x1c] ss:$36 sps:$4 sm:$0xff]   ;;  %v1308_v17 = vld [vmem:[%s1632_s0 + $0x64] ss:$36 sps:$4 sm:$0xff]  }
  0x1b   :  { %v1300_v11 = vld [vmem:[%s1632_s0 + $0x18] ss:$36 sps:$4 sm:$0xff]   ;;  %v1303_v13 = vld [vmem:[%s1631_s1 + $0x230] sm:$0xff]   ;;  %v1310_v18 = vld [vmem:[%s1632_s0 + $0x60] ss:$36 sps:$4 sm:$0xff]  }
  0x1c   :  { %1091 = vmatpush3.bf16.msra.mxu0 %v1246_v26  ;;  %v1304_v14 = vld [vmem:[%s1632_s0 + $0x5c] ss:$36 sps:$4 sm:$0xff]   ;;  %v1313_v22 = vld [vmem:[%s1631_s1 + $0x210] sm:$0xff]   ;;  %v1314_v23 = vld [vmem:[%s1631_s1 + $0x208] sm:$0xff]  }
  0x1d   :  { %1119 = vmatpush3.bf16.msra.mxu1 %v1247_v27  ;;  %1092 = vmatprep.subr.bf16.mxu0 %v1248_v28  ;;  %v1306_v15 = vld [vmem:[%s1632_s0 + $0x58] ss:$36 sps:$4 sm:$0xff]   ;;  %v1311_v19 = vld [vmem:[%s1631_s1 + $0x220] sm:$0xff]   ;;  %v1317_v25 = vld [vmem:[%s1632_s0 + $0x68] ss:$36 sps:$4 sm:$0xff]  }
  0x1e   :  { %1120 = vmatprep.subr.bf16.mxu1 %v1249_v29  ;;  %v1312_v20 = vld [vmem:[%s1631_s1 + $0x218] sm:$0xff]   ;;  %v1316_v21 = vld [vmem:[%s1632_s0 + $0x20] ss:$36 sps:$4 sm:$0xff]  }
  0x1f   :  { %v1315_v24 = vld [vmem:[%s1631_s1 + $0x200] sm:$0xff]  }
  0x20   :  { %1093 = vmatpush3.bf16.msra.mxu0 %v1250_v30 }
  0x21   :  { %1121 = vmatpush3.bf16.msra.mxu1 %v1251_v31  ;;  %1134 = vmatprep.subr.bf16.mxu0 %v1258_v36 }
  0x22   :  { %1162 = vmatprep.subr.bf16.mxu1 %v1260_v38 }
  0x23   :  { %739 = vmatmul.mubr.bf16.vlgmr.msra.gmra.mxu0 %v1252_v32 }
  0x24   :  { %788 = vmatmul.mubr.bf16.vlgmr.msra.gmra.mxu1 %v1255_v34  ;;  %1135 = vmatpush3.bf16.msra.mxu0 %v1259_v37 }
  0x25   :  { %1163 = vmatpush3.bf16.msra.mxu1 %v1261_v39  ;;  %1136 = vmatprep.subr.bf16.mxu0 %v1262_v40 }
  0x26   :  { %1164 = vmatprep.subr.bf16.mxu1 %v1264_v42  ;;  %746 = vmatprep.mubr.bf16.mxu0 %v1276_v54 }
  0x27   :  { %795 = vmatprep.mubr.bf16.mxu1 %v1278_v55 }
  0x28   :  { %1137 = vmatpush3.bf16.msra.mxu0 %v1263_v41 }
  0x29   :  { %1165 = vmatpush3.bf16.msra.mxu1 %v1265_v43  ;;  %1138 = vmatprep.subr.bf16.mxu0 %v1266_v44 }
  0x2a   :  { %1166 = vmatprep.subr.bf16.mxu1 %v1268_v46 }
  0x2b   :  { %747 = vmatmul.mubr.bf16.gmra.mxu0 %v1281_v57 }
  0x2c   :  { %1139 = vmatpush3.bf16.msra.mxu0 %v1267_v45  ;;  %796 = vmatmul.mubr.bf16.gmra.mxu1 %v1282_v58 }
  0x2d   :  { %1167 = vmatpush3.bf16.msra.mxu1 %v1269_v47  ;;  %1140 = vmatprep.subr.bf16.mxu0 %v1270_v48 }
  0x2e   :  { %1168 = vmatprep.subr.bf16.mxu1 %v1272_v50  ;;  %836 = vmatprep.mubr.bf16.mxu0 %v1297_v8 }
  0x2f   :  { %885 = vmatprep.mubr.bf16.mxu1 %v1302_v12 }
  0x30   :  { %1141 = vmatpush3.bf16.msra.mxu0 %v1271_v49 }
  0x31   :  { %1169 = vmatpush3.bf16.msra.mxu1 %v1273_v51  ;;  %1142 = vmatprep.subr.bf16.mxu0 %v1274_v52 }
  0x32   :  { %1170 = vmatprep.subr.bf16.mxu1 %v1280_v56 }
  0x34   :  { %1143 = vmatpush3.bf16.msra.mxu0 %v1275_v53 }
  0x35   :  { %1171 = vmatpush3.bf16.msra.mxu1 %v1283_v59  ;;  %1144 = vmatprep.subr.bf16.mxu0 %v1284_v60 }
  0x36   :  { %1172 = vmatprep.subr.bf16.mxu1 %v1286_v62 }
  0x38   :  { %1145 = vmatpush3.bf16.msra.mxu0 %v1285_v61 }
  0x39   :  { %1173 = vmatpush3.bf16.msra.mxu1 %v1287_v63  ;;  %1146 = vmatprep.subr.bf16.mxu0 %v1288_v0 }
  0x3a   :  { %1174 = vmatprep.subr.bf16.mxu1 %v1290_v2 }
  0x3c   :  { %1147 = vmatpush3.bf16.msra.mxu0 %v1289_v1 }
  0x3d   :  { %1175 = vmatpush3.bf16.msra.mxu1 %v1291_v3  ;;  %1148 = vmatprep.subr.bf16.mxu0 %v1292_v4 }
  0x3e   :  { %1176 = vmatprep.subr.bf16.mxu1 %v1294_v6 }
  0x40   :  { %1149 = vmatpush3.bf16.msra.mxu0 %v1293_v5 }
  0x41   :  { %1177 = vmatpush3.bf16.msra.mxu1 %v1298_v9  ;;  %1200 = vmatprep.subr.bf16.mxu0 %v1299_v10 }
  0x43   :  { %837 = vmatmul.mubr.bf16.vlgmr.msra.gmra.mxu0 %v1295_v7 }
  0x44   :  { %1201 = vmatpush3.bf16.msra.mxu0 %v1299_v10  ;;  %886 = vmatmul.mubr.bf16.vlgmr.msra.gmra.mxu1 %v1300_v11 }
  0x45   :  { %1202 = vmatprep.subr.bf16.mxu0 %v1303_v13  ;;  %844 = vmatprep.mubr.bf16.mxu0 %v1304_v14 }
  0x46   :  { %893 = vmatprep.mubr.bf16.mxu1 %v1308_v17 }
  0x48   :  { %1203 = vmatpush3.bf16.msra.mxu0 %v1303_v13 }
  0x49   :  { %1204 = vmatprep.subr.bf16.mxu0 %v1307_v16 }
  0x4b   :  { %845 = vmatmul.mubr.bf16.gmra.mxu0 %v1306_v15 }
  0x4c   :  { %1205 = vmatpush3.bf16.msra.mxu0 %v1307_v16  ;;  %894 = vmatmul.mubr.bf16.gmra.mxu1 %v1310_v18  ;;  %v1076_v18 = vld [vmem:[%s1633_s2] ss:$0 sm:$0xff] }
  0x4d   :  { %1206 = vmatprep.subr.bf16.mxu0 %v1311_v19  ;;  %1216 = vmatprep.mubr.bf16.mxu0 %v1316_v21 }
  0x50   :  { %1207 = vmatpush3.bf16.msra.mxu0 %v1311_v19 }
  0x51   :  { %1208 = vmatprep.subr.bf16.mxu0 %v1312_v20 }
  0x54   :  { %1209 = vmatpush3.bf16.msra.mxu0 %v1312_v20 }
  0x55   :  { %1210 = vmatprep.subr.bf16.mxu0 %v1313_v22 }
  0x58   :  { %1211 = vmatpush3.bf16.msra.mxu0 %v1313_v22 }
  0x59   :  { %1212 = vmatprep.subr.bf16.mxu0 %v1314_v23 }
  0x5c   :  { %1213 = vmatpush3.bf16.msra.mxu0 %v1314_v23  ;;  %v1077_v23 = vld [vmem:[%s1634_s3] ss:$0 sm:$0xff] }
  0x5d   :  { %1214 = vmatprep.subr.bf16.mxu0 %v1315_v24 }
  0x60   :  { %1215 = vmatpush3.bf16.msra.mxu0 %v1315_v24 }
  0x63   :  { %1217 = vmatmul.mubr.bf16.vlgmr.msra.gmra.mxu0 %v1317_v25 }
  0xe3   :  { %v1094_v26 = vpop.f32.mrf.mxu0 }
  0xe4   :  { %v1122_v27 = vpop.f32.mrf.mxu1 }
  0xe5   :  { %v1095_v28 = vpop.f32.mrf.mxu0 }
  0xe6   :  { %v1123_v29 = vpop.f32.mrf.mxu1  ;;  %v1096_v57 = vadd.f32 %v1095_v28, %v1094_v26 }
  0xe7   :  { %v1097_v30 = vpop.f32.mrf.mxu0  ;;  %v1124_v58 = vadd.f32 %v1123_v29, %v1122_v27 }
  0xe8   :  { %v1125_v31 = vpop.f32.mrf.mxu1 }
  0xe9   :  { %v1098_v32 = vpop.f32.mrf.mxu0  ;;  %v790_v2 = vadd.f32 %v1124_v58, %v1096_v57 }
  0xea   :  { %v1126_v34 = vpop.f32.mrf.mxu1  ;;  %v1099_v3 = vadd.f32 %v1098_v32, %v1097_v30 }
  0xeb   :  { %v1100_v33 = vpop.f32.mrf.mxu0  ;;  %v1127_v4 = vadd.f32 %v1126_v34, %v1125_v31 }
  0xec   :  { %v1128_v35 = vpop.f32.mrf.mxu1 }
  0xed   :  { %v1101_v36 = vpop.f32.mrf.mxu0  ;;  %v793_v13 = vadd.f32 %v1127_v4, %v1099_v3 }
  0xee   :  { %v1129_v37 = vpop.f32.mrf.mxu1  ;;  %v1102_v55 = vadd.f32 %v1101_v36, %v1100_v33 }
  0xef   :  { %v1103_v38 = vpop.f32.mrf.mxu0  ;;  %v1130_v56 = vadd.f32 %v1129_v37, %v1128_v35 }
  0xf0   :  { %v1131_v39 = vpop.f32.mrf.mxu1 }
  0xf1   :  { %v1104_v40 = vpop.f32.mrf.mxu0  ;;  %v798_v62 = vadd.f32 %v1130_v56, %v1102_v55 }
  0xf2   :  { %v1132_v42 = vpop.f32.mrf.mxu1  ;;  %v1105_v63 = vadd.f32 %v1104_v40, %v1103_v38 }
  0xf3   :  { %v1133_v0 = vadd.f32 %v1132_v42, %v1131_v39 }
  0xf5   :  { %v801_v9 = vadd.f32 %v1133_v0, %v1105_v63 }
 0x103   :  { %v1150_v41 = vpop.f32.mrf.mxu0 }
 0x104   :  { %v1178_v44 = vpop.f32.mrf.mxu1 }
 0x105   :  { %v1151_v43 = vpop.f32.mrf.mxu0 }
 0x106   :  { %v1179_v46 = vpop.f32.mrf.mxu1  ;;  %v1152_v1 = vadd.f32 %v1151_v43, %v1150_v41 }
 0x107   :  { %v1153_v45 = vpop.f32.mrf.mxu0  ;;  %v1180_v11 = vadd.f32 %v1179_v46, %v1178_v44 }
 0x108   :  { %v1181_v48 = vpop.f32.mrf.mxu1  ;;  %v839_v10 = vadd.f32 %v1152_v1, %v790_v2 }
 0x109   :  { %v1154_v47 = vpop.f32.mrf.mxu0 }
 0x10a   :  { %v1182_v50 = vpop.f32.mrf.mxu1  ;;  %v1155_v12 = vadd.f32 %v1154_v47, %v1153_v45  ;;  %v888_v22 = vadd.f32 %v1180_v11, %v839_v10 }
 0x10b   :  { %v1156_v49 = vpop.f32.mrf.mxu0  ;;  %v1183_v20 = vadd.f32 %v1182_v50, %v1181_v48 }
 0x10c   :  { %v1184_v52 = vpop.f32.mrf.mxu1  ;;  %v842_v19 = vadd.f32 %v1155_v12, %v793_v13 }
 0x10d   :  { %v1157_v51 = vpop.f32.mrf.mxu0 }
 0x10e   :  { %v1185_v54 = vpop.f32.mrf.mxu1  ;;  %v1158_v59 = vadd.f32 %v1157_v51, %v1156_v49  ;;  %v891_v32 = vadd.f32 %v1183_v20, %v842_v19 }
 0x10f   :  { %v1159_v53 = vpop.f32.mrf.mxu0  ;;  %v1186_v6 = vadd.f32 %v1185_v54, %v1184_v52 }
 0x110   :  { %v1187_v61 = vpop.f32.mrf.mxu1  ;;  %v847_v5 = vadd.f32 %v1158_v59, %v798_v62 }
 0x111   :  { %v1160_v60 = vpop.f32.mrf.mxu0 }
 0x112   :  { %v1161_v7 = vadd.f32 %v1160_v60, %v1159_v53  ;;  %v1188_v8 = vpop.f32.mrf.mxu1  ;;  %v896_v16 = vadd.f32 %v1186_v6, %v847_v5 }
 0x113   :  { %v1189_v15 = vadd.f32 %v1188_v8, %v1187_v61 }
 0x114   :  { %v850_v14 = vadd.f32 %v1161_v7, %v801_v9 }
 0x116   :  { %v899_v27 = vadd.f32 %v1189_v15, %v850_v14 }
 0x123   :  { %v1218_v17 = vpop.f32.mrf.mxu0 }
 0x124   :  { %v945_v21 = vadd.f32 %v1218_v17, %v896_v16 }
 0x125   :  { %v936_v24 = vpop.f32.mrf.mxu0 }
 0x126   :  { %v960_v25 = vmul.f32 %v1076_v18, %v945_v21  ;;  %v937_v26 = vadd.f32 %v936_v24, %v888_v22 }
 0x127   :  { %v1219_v28 = vpop.f32.mrf.mxu0 }
 0x128   :  { %v971_v29 = vadd.f32 %v1077_v23, %v960_v25  ;;  %v958_v30 = vmul.f32 %v1076_v18, %v937_v26  ;;  %v948_v31 = vadd.f32 %v1219_v28, %v899_v27 }
 0x129   :  { %v939_v33 = vpop.f32.mrf.mxu0 }
 0x12a   :  { %v975_v34 = vmax.f32 %v971_v29, 0.0  ;;  %v969_v35 = vadd.f32 %v1077_v23, %v958_v30  ;;  %v961_v36 = vmul.f32 %v1076_v18, %v948_v31  ;;  %v940_v37 = vadd.f32 %v939_v33, %v891_v32 }
 0x12c   :  { %980 = vst.msk [vmem:[%s1635_s4 + $0x10] sm:$0xff] %vm977_vm0, %v975_v34  ;;  %v973_v38 = vmax.f32 %v969_v35, 0.0  ;;  %v972_v39 = vadd.f32 %v1077_v23, %v961_v36  ;;  %v959_v40 = vmul.f32 %v1076_v18, %v940_v37 }
 0x12e   :  { %978 = vst.msk [vmem:[%s1635_s4] sm:$0xff] %vm977_vm0, %v973_v38  ;;  %v976_v41 = vmax.f32 %v972_v39, 0.0  ;;  %v970_v42 = vadd.f32 %v1077_v23, %v959_v40 }
 0x130   :  { %981 = vst.msk [vmem:[%s1635_s4 + $0x18] sm:$0xff] %vm977_vm0, %v976_v41  ;;  %v974_v43 = vmax.f32 %v970_v42, 0.0 }
 0x132   :  { %979 = vst.msk [vmem:[%s1635_s4 + $0x8] sm:$0xff] %vm977_vm0, %v974_v43 }

// kernel: small_unet2_forward.28
= control target key start
LH: loop header
LB: loop body
LE: loop exit
PB: predicated region body
PF: predicated region fallthrough
CT: control target
= control target key end

     0   :  { %vm554_vm0 = vcmask 523264   ;;  %vm932_vm1 = vcmask 261120   ;;  %s1682_s1 = inlined_call_operand.vmem [shape: bf16[576,32], index: 1, kind: input, shape index: {}]   ;;  %s1683_s0 = inlined_call_operand.vmem [shape: bf16[128,576], index: 0, kind: input, shape index: {}]   ;;  %s1684_s2 = inlined_call_operand.vmem [shape: f32[1,32], index: 2, kind: input, shape index: {}]   ;;  %s1685_s3 = inlined_call_operand.vmem [shape: f32[1,32], index: 3, kind: input, shape index: {}]   ;;  %s1686_s4 = inlined_call_operand.vmem [shape: f32[128,32], index: 4, kind: output, shape index: {}]  }
   0x1   :  { %v1211_v0 = vld [vmem:[%s1682_s1 + $0x78] sm:$0xff]   ;;  %v1215_v4 = vld [vmem:[%s1682_s1 + $0x70] sm:$0xff]   ;;  %v1219_v8 = vld [vmem:[%s1682_s1 + $0x68] sm:$0xff]  }
   0x2   :  { %v1212_v1 = vld [vmem:[%s1682_s1 + $0xf8] sm:$0xff]   ;;  %1039 = vmatprep.subr.bf16.mxu0 %v1211_v0  ;;  %v1216_v5 = vld [vmem:[%s1682_s1 + $0xf0] sm:$0xff]   ;;  %v1220_v9 = vld [vmem:[%s1682_s1 + $0xe8] sm:$0xff]  }
   0x3   :  { %v1213_v2 = vld [vmem:[%s1682_s1 + $0x38] sm:$0xff]   ;;  %1103 = vmatprep.subr.bf16.mxu1 %v1212_v1  ;;  %v1217_v6 = vld [vmem:[%s1682_s1 + $0x30] sm:$0xff]   ;;  %v1221_v10 = vld [vmem:[%s1682_s1 + $0x28] sm:$0xff]  }
   0x4   :  { %v1214_v3 = vld [vmem:[%s1682_s1 + $0xb8] sm:$0xff]   ;;  %1040 = vmatpush3.bf16.msra.mxu0 %v1213_v2  ;;  %v1218_v7 = vld [vmem:[%s1682_s1 + $0xb0] sm:$0xff]   ;;  %v1222_v11 = vld [vmem:[%s1682_s1 + $0xa8] sm:$0xff]  }
   0x5   :  { %1104 = vmatpush3.bf16.msra.mxu1 %v1214_v3  ;;  %1041 = vmatprep.subr.bf16.mxu0 %v1215_v4  ;;  %v1223_v12 = vld [vmem:[%s1682_s1 + $0x60] sm:$0xff]   ;;  %v1227_v16 = vld [vmem:[%s1682_s1 + $0x58] sm:$0xff]   ;;  %v1231_v20 = vld [vmem:[%s1682_s1 + $0x50] sm:$0xff]  }
   0x6   :  { %1105 = vmatprep.subr.bf16.mxu1 %v1216_v5  ;;  %v1224_v13 = vld [vmem:[%s1682_s1 + $0xe0] sm:$0xff]   ;;  %v1228_v17 = vld [vmem:[%s1682_s1 + $0xd8] sm:$0xff]   ;;  %v1232_v21 = vld [vmem:[%s1682_s1 + $0xd0] sm:$0xff]  }
   0x7   :  { %v1225_v14 = vld [vmem:[%s1682_s1 + $0x20] sm:$0xff]   ;;  %v1229_v18 = vld [vmem:[%s1682_s1 + $0x18] sm:$0xff]   ;;  %v1233_v22 = vld [vmem:[%s1682_s1 + $0x10] sm:$0xff]  }
   0x8   :  { %1042 = vmatpush3.bf16.msra.mxu0 %v1217_v6  ;;  %v1226_v15 = vld [vmem:[%s1682_s1 + $0xa0] sm:$0xff]   ;;  %v1230_v19 = vld [vmem:[%s1682_s1 + $0x98] sm:$0xff]   ;;  %v1234_v23 = vld [vmem:[%s1682_s1 + $0x90] sm:$0xff]  }
   0x9   :  { %1106 = vmatpush3.bf16.msra.mxu1 %v1218_v7  ;;  %1043 = vmatprep.subr.bf16.mxu0 %v1219_v8  ;;  %v1235_v24 = vld [vmem:[%s1682_s1 + $0x48] sm:$0xff]   ;;  %v1239_v28 = vld [vmem:[%s1682_s1 + $0x40] sm:$0xff]   ;;  %v1249_v36 = vld [vmem:[%s1682_s1 + $0x118] sm:$0xff]  }
   0xa   :  { %1107 = vmatprep.subr.bf16.mxu1 %v1220_v9  ;;  %v1236_v25 = vld [vmem:[%s1682_s1 + $0xc8] sm:$0xff]   ;;  %v1240_v29 = vld [vmem:[%s1682_s1 + $0xc0] sm:$0xff]   ;;  %v1262_v42 = vld [vmem:[%s1682_s1 + $0x110] sm:$0xff]  }
   0xb   :  { %v1237_v26 = vld [vmem:[%s1682_s1 + $0x8] sm:$0xff]   ;;  %v1241_v30 = vld [vmem:[%s1682_s1] sm:$0xff]   ;;  %v1258_v43 = vld [vmem:[%s1683_s0 + $0x5c] ss:$20 sps:$4 sm:$0xff]  }
   0xc   :  { %1044 = vmatpush3.bf16.msra.mxu0 %v1221_v10  ;;  %v1238_v27 = vld [vmem:[%s1682_s1 + $0x88] sm:$0xff]   ;;  %v1242_v31 = vld [vmem:[%s1682_s1 + $0x80] sm:$0xff]   ;;  %v1263_v47 = vld [vmem:[%s1683_s0 + $0x7c] ss:$20 sps:$4 sm:$0xff]  }
   0xd   :  { %1108 = vmatpush3.bf16.msra.mxu1 %v1222_v11  ;;  %1045 = vmatprep.subr.bf16.mxu0 %v1223_v12  ;;  %v1243_v32 = vld [vmem:[%s1683_s0] ss:$20 sps:$4 sm:$0xff]   ;;  %v1245_v33 = vld [vmem:[%s1683_s0 + $0x4] ss:$20 sps:$4 sm:$0xff]   ;;  %v1246_v34 = vld [vmem:[%s1683_s0 + $0x8] ss:$20 sps:$4 sm:$0xff]  }
   0xe   :  { %1109 = vmatprep.subr.bf16.mxu1 %v1224_v13  ;;  %v1248_v35 = vld [vmem:[%s1683_s0 + $0xc] ss:$20 sps:$4 sm:$0xff]   ;;  %611 = vmatprep.mubr.bf16.mxu0 %v1245_v33  ;;  %v1252_v38 = vld [vmem:[%s1683_s0 + $0x34] ss:$20 sps:$4 sm:$0xff]   ;;  %v1255_v40 = vld [vmem:[%s1683_s0 + $0x30] ss:$20 sps:$4 sm:$0xff]  }
   0xf   :  { %708 = vmatprep.mubr.bf16.mxu1 %v1248_v35  ;;  %v1250_v37 = vld [vmem:[%s1683_s0 + $0x2c] ss:$20 sps:$4 sm:$0xff]   ;;  %v1254_v39 = vld [vmem:[%s1683_s0 + $0x28] ss:$20 sps:$4 sm:$0xff]   ;;  %v1260_v44 = vld [vmem:[%s1683_s0 + $0x50] ss:$20 sps:$4 sm:$0xff]  }
  0x10   :  { %1046 = vmatpush3.bf16.msra.mxu0 %v1225_v14  ;;  %v1256_v41 = vld [vmem:[%s1683_s0 + $0x54] ss:$20 sps:$4 sm:$0xff]   ;;  %v1261_v45 = vld [vmem:[%s1683_s0 + $0x58] ss:$20 sps:$4 sm:$0xff]   ;;  %v1288_v49 = vld [vmem:[%s1682_s1 + $0x100] sm:$0xff]  }
  0x11   :  { %1110 = vmatpush3.bf16.msra.mxu1 %v1226_v15  ;;  %1047 = vmatprep.subr.bf16.mxu0 %v1227_v16  ;;  %v1275_v46 = vld [vmem:[%s1682_s1 + $0x108] sm:$0xff]   ;;  %v1265_v48 = vld [vmem:[%s1683_s0 + $0x84] ss:$20 sps:$4 sm:$0xff]   ;;  %v1268_v51 = vld [vmem:[%s1683_s0 + $0x80] ss:$20 sps:$4 sm:$0xff]  }
  0x12   :  { %1111 = vmatprep.subr.bf16.mxu1 %v1228_v17  ;;  %v1267_v50 = vld [vmem:[%s1683_s0 + $0x78] ss:$20 sps:$4 sm:$0xff]   ;;  %v1273_v54 = vld [vmem:[%s1683_s0 + $0xa0] ss:$20 sps:$4 sm:$0xff]   ;;  %v1274_v55 = vld [vmem:[%s1683_s0 + $0xa8] ss:$20 sps:$4 sm:$0xff]  }
  0x13   :  { %v1269_v52 = vld [vmem:[%s1683_s0 + $0xa4] ss:$20 sps:$4 sm:$0xff]   ;;  %v1271_v53 = vld [vmem:[%s1683_s0 + $0xac] ss:$20 sps:$4 sm:$0xff]   ;;  %v1278_v57 = vld [vmem:[%s1683_s0 + $0xd4] ss:$20 sps:$4 sm:$0xff]  }
  0x14   :  { %1048 = vmatpush3.bf16.msra.mxu0 %v1229_v18  ;;  %v1276_v56 = vld [vmem:[%s1683_s0 + $0xcc] ss:$20 sps:$4 sm:$0xff]   ;;  %v1280_v58 = vld [vmem:[%s1683_s0 + $0xc8] ss:$20 sps:$4 sm:$0xff]   ;;  %v1281_v59 = vld [vmem:[%s1683_s0 + $0xd0] ss:$20 sps:$4 sm:$0xff]  }
  0x15   :  { %1112 = vmatpush3.bf16.msra.mxu1 %v1230_v19  ;;  %1049 = vmatprep.subr.bf16.mxu0 %v1231_v20  ;;  %v1282_v60 = vld [vmem:[%s1683_s0 + $0xf4] ss:$20 sps:$4 sm:$0xff]   ;;  %v1284_v61 = vld [vmem:[%s1683_s0 + $0xfc] ss:$20 sps:$4 sm:$0xff]   ;;  %v1287_v63 = vld [vmem:[%s1683_s0 + $0xf8] ss:$20 sps:$4 sm:$0xff]  }
  0x16   :  { %1113 = vmatprep.subr.bf16.mxu1 %v1232_v21  ;;  %v1286_v62 = vld [vmem:[%s1683_s0 + $0xf0] ss:$20 sps:$4 sm:$0xff]   ;;  %v1293_v2 = vld [vmem:[%s1683_s0 + $0x118] ss:$20 sps:$4 sm:$0xff]   ;;  %v1294_v3 = vld [vmem:[%s1683_s0 + $0x120] ss:$20 sps:$4 sm:$0xff]  }
  0x17   :  { %v1289_v0 = vld [vmem:[%s1683_s0 + $0x11c] ss:$20 sps:$4 sm:$0xff]   ;;  %v1291_v1 = vld [vmem:[%s1683_s0 + $0x124] ss:$20 sps:$4 sm:$0xff]   ;;  %v1299_v8 = vld [vmem:[%s1683_s0 + $0x60] ss:$20 sps:$4 sm:$0xff]  }
  0x18   :  { %1050 = vmatpush3.bf16.msra.mxu0 %v1233_v22  ;;  %v1295_v4 = vld [vmem:[%s1683_s0 + $0x10] ss:$20 sps:$4 sm:$0xff]   ;;  %v1297_v6 = vld [vmem:[%s1683_s0 + $0x38] ss:$20 sps:$4 sm:$0xff]   ;;  %v1300_v9 = vld [vmem:[%s1683_s0 + $0x100] ss:$20 sps:$4 sm:$0xff]  }
  0x19   :  { %1114 = vmatpush3.bf16.msra.mxu1 %v1234_v23  ;;  %1051 = vmatprep.subr.bf16.mxu0 %v1235_v24  ;;  %v1296_v5 = vld [vmem:[%s1683_s0 + $0xb0] ss:$20 sps:$4 sm:$0xff]   ;;  %v1298_v7 = vld [vmem:[%s1683_s0 + $0xd8] ss:$20 sps:$4 sm:$0xff]   ;;  %v1301_v10 = vld [vmem:[%s1683_s0 + $0x88] ss:$20 sps:$4 sm:$0xff]  }
  0x1a   :  { %1115 = vmatprep.subr.bf16.mxu1 %v1236_v25  ;;  %v1302_v11 = vld [vmem:[%s1683_s0 + $0x128] ss:$20 sps:$4 sm:$0xff]  }
  0x1c   :  { %1052 = vmatpush3.bf16.msra.mxu0 %v1237_v26 }
  0x1d   :  { %1116 = vmatpush3.bf16.msra.mxu1 %v1238_v27  ;;  %1053 = vmatprep.subr.bf16.mxu0 %v1239_v28 }
  0x1e   :  { %1117 = vmatprep.subr.bf16.mxu1 %v1240_v29 }
  0x20   :  { %1054 = vmatpush3.bf16.msra.mxu0 %v1241_v30 }
  0x21   :  { %1118 = vmatpush3.bf16.msra.mxu1 %v1242_v31  ;;  %1179 = vmatprep.subr.bf16.mxu0 %v1249_v36 }
  0x22   :  { %1203 = vmatprep.subr.bf16.mxu1 %v1249_v36 }
  0x23   :  { %612 = vmatmul.mubr.bf16.vlgmr.msra.gmra.mxu0 %v1243_v32 }
  0x24   :  { %709 = vmatmul.mubr.bf16.vlgmr.msra.gmra.mxu1 %v1246_v34  ;;  %1180 = vmatpush3.bf16.msra.mxu0 %v1249_v36 }
  0x25   :  { %1207 = vmatpush3.bf16.msra.mxu1 %v1249_v36  ;;  %619 = vmatprep.mubr.bf16.mxu0 %v1250_v37 }
  0x26   :  { %716 = vmatprep.mubr.bf16.mxu1 %v1252_v38  ;;  %1181 = vmatprep.subr.bf16.mxu0 %v1262_v42 }
  0x27   :  { %1204 = vmatprep.subr.bf16.mxu1 %v1262_v42 }
  0x28   :  { %1182 = vmatpush3.bf16.msra.mxu0 %v1262_v42 }
  0x29   :  { %1208 = vmatpush3.bf16.msra.mxu1 %v1262_v42  ;;  %1183 = vmatprep.subr.bf16.mxu0 %v1275_v46 }
  0x2a   :  { %1205 = vmatprep.subr.bf16.mxu1 %v1275_v46 }
  0x2b   :  { %620 = vmatmul.mubr.bf16.gmra.mxu0 %v1254_v39 }
  0x2c   :  { %717 = vmatmul.mubr.bf16.gmra.mxu1 %v1255_v40  ;;  %627 = vmatprep.mubr.bf16.mxu0 %v1256_v41 }
  0x2d   :  { %724 = vmatprep.mubr.bf16.mxu1 %v1258_v43  ;;  %1184 = vmatpush3.bf16.msra.mxu0 %v1275_v46 }
  0x2e   :  { %1209 = vmatpush3.bf16.msra.mxu1 %v1275_v46  ;;  %1185 = vmatprep.subr.bf16.mxu0 %v1288_v49 }
  0x2f   :  { %1206 = vmatprep.subr.bf16.mxu1 %v1288_v49 }
  0x31   :  { %1186 = vmatpush3.bf16.msra.mxu0 %v1288_v49 }
  0x32   :  { %1210 = vmatpush3.bf16.msra.mxu1 %v1288_v49 }
  0x33   :  { %628 = vmatmul.mubr.bf16.gmra.mxu0 %v1260_v44 }
  0x34   :  { %725 = vmatmul.mubr.bf16.gmra.mxu1 %v1261_v45  ;;  %635 = vmatprep.mubr.bf16.mxu0 %v1263_v47 }
  0x35   :  { %732 = vmatprep.mubr.bf16.mxu1 %v1265_v48 }
  0x3b   :  { %636 = vmatmul.mubr.bf16.gmra.mxu0 %v1267_v50 }
  0x3c   :  { %733 = vmatmul.mubr.bf16.gmra.mxu1 %v1268_v51  ;;  %643 = vmatprep.mubr.bf16.mxu0 %v1269_v52 }
  0x3d   :  { %740 = vmatprep.mubr.bf16.mxu1 %v1271_v53 }
  0x43   :  { %644 = vmatmul.mubr.bf16.gmra.mxu0 %v1273_v54 }
  0x44   :  { %741 = vmatmul.mubr.bf16.gmra.mxu1 %v1274_v55  ;;  %651 = vmatprep.mubr.bf16.mxu0 %v1276_v56 }
  0x45   :  { %748 = vmatprep.mubr.bf16.mxu1 %v1278_v57 }
  0x4b   :  { %652 = vmatmul.mubr.bf16.gmra.mxu0 %v1280_v58 }
  0x4c   :  { %749 = vmatmul.mubr.bf16.gmra.mxu1 %v1281_v59  ;;  %659 = vmatprep.mubr.bf16.mxu0 %v1282_v60 }
  0x4d   :  { %756 = vmatprep.mubr.bf16.mxu1 %v1284_v61 }
  0x53   :  { %660 = vmatmul.mubr.bf16.gmra.mxu0 %v1286_v62 }
  0x54   :  { %757 = vmatmul.mubr.bf16.gmra.mxu1 %v1287_v63  ;;  %667 = vmatprep.mubr.bf16.mxu0 %v1289_v0 }
  0x55   :  { %764 = vmatprep.mubr.bf16.mxu1 %v1291_v1 }
  0x5b   :  { %668 = vmatmul.mubr.bf16.gmra.mxu0 %v1293_v2 }
  0x5c   :  { %765 = vmatmul.mubr.bf16.gmra.mxu1 %v1294_v3  ;;  %1187 = vmatprep.mubr.msk.bf16.mxu0 %vm554_vm0, %v1295_v4 }
  0x5d   :  { %1195 = vmatprep.mubr.msk.bf16.mxu1 %vm554_vm0, %v1296_v5 }
  0x63   :  { %1188 = vmatmul.mubr.msk.bf16.vlgmr.msra.gmra.mxu0 %vm554_vm0, %v1297_v6 }
  0x64   :  { %1196 = vmatmul.mubr.msk.bf16.vlgmr.msra.gmra.mxu1 %vm554_vm0, %v1298_v7  ;;  %1191 = vmatprep.mubr.msk.bf16.mxu0 %vm554_vm0, %v1299_v8 }
  0x65   :  { %1199 = vmatprep.mubr.msk.bf16.mxu1 %vm554_vm0, %v1300_v9 }
  0x6b   :  { %1192 = vmatmul.mubr.msk.bf16.gmra.mxu0 %vm554_vm0, %v1301_v10 }
  0x6c   :  { %1200 = vmatmul.mubr.msk.bf16.gmra.mxu1 %vm554_vm0, %v1302_v11 }
  0xe3   :  { %v1055_v12 = vpop.f32.mrf.mxu0 }
  0xe4   :  { %v1119_v13 = vpop.f32.mrf.mxu1 }
  0xe5   :  { %v1056_v14 = vpop.f32.mrf.mxu0 }
  0xe6   :  { %v1120_v15 = vpop.f32.mrf.mxu1  ;;  %v1057_v3 = vadd.f32 %v1056_v14, %v1055_v12 }
  0xe7   :  { %v1058_v16 = vpop.f32.mrf.mxu0  ;;  %v1121_v4 = vadd.f32 %v1120_v15, %v1119_v13 }
  0xe8   :  { %v1122_v17 = vpop.f32.mrf.mxu1 }
  0xe9   :  { %v1059_v18 = vpop.f32.mrf.mxu0 }
  0xea   :  { %v1123_v19 = vpop.f32.mrf.mxu1  ;;  %v1060_v5 = vadd.f32 %v1059_v18, %v1058_v16 }
  0xeb   :  { %v1061_v20 = vpop.f32.mrf.mxu0  ;;  %v1124_v6 = vadd.f32 %v1123_v19, %v1122_v17 }
  0xec   :  { %v1125_v21 = vpop.f32.mrf.mxu1 }
  0xed   :  { %v1062_v22 = vpop.f32.mrf.mxu0 }
  0xee   :  { %v1126_v23 = vpop.f32.mrf.mxu1  ;;  %v1063_v8 = vadd.f32 %v1062_v22, %v1061_v20 }
  0xef   :  { %v1064_v24 = vpop.f32.mrf.mxu0  ;;  %v1127_v9 = vadd.f32 %v1126_v23, %v1125_v21 }
  0xf0   :  { %v1128_v25 = vpop.f32.mrf.mxu1 }
  0xf1   :  { %v1065_v26 = vpop.f32.mrf.mxu0 }
  0xf2   :  { %v1129_v27 = vpop.f32.mrf.mxu1  ;;  %v1066_v10 = vadd.f32 %v1065_v26, %v1064_v24  ;;  %v719_v26 = vadd.f32 %v1127_v9, %v1063_v8 }
  0xf3   :  { %v1067_v28 = vpop.f32.mrf.mxu0  ;;  %v1130_v11 = vadd.f32 %v1129_v27, %v1128_v25  ;;  %v711_v25 = vadd.f32 %v1121_v4, %v1057_v3 }
  0xf4   :  { %v1131_v29 = vpop.f32.mrf.mxu1 }
  0xf5   :  { %v1068_v30 = vpop.f32.mrf.mxu0  ;;  %v722_v27 = vadd.f32 %v1130_v11, %v1066_v10 }
  0xf6   :  { %v1132_v31 = vpop.f32.mrf.mxu1  ;;  %v1069_v14 = vadd.f32 %v1068_v30, %v1067_v28  ;;  %v714_v28 = vadd.f32 %v1124_v6, %v1060_v5 }
  0xf7   :  { %v1070_v32 = vpop.f32.mrf.mxu0  ;;  %v1133_v13 = vadd.f32 %v1132_v31, %v1131_v29 }
  0xf8   :  { %v1134_v33 = vpop.f32.mrf.mxu1 }
  0xf9   :  { %v1071_v34 = vpop.f32.mrf.mxu0 }
  0xfa   :  { %v1135_v35 = vpop.f32.mrf.mxu1  ;;  %v1072_v15 = vadd.f32 %v1071_v34, %v1070_v32  ;;  %v1564_v32 = vadd.f32 %v1133_v13, %v1069_v14 }
  0xfb   :  { %v1073_v36 = vpop.f32.mrf.mxu0  ;;  %v1136_v16 = vadd.f32 %v1135_v35, %v1134_v33 }
  0xfc   :  { %v1137_v37 = vpop.f32.mrf.mxu1 }
  0xfd   :  { %v1074_v38 = vpop.f32.mrf.mxu0  ;;  %v1566_v34 = vadd.f32 %v1136_v16, %v1072_v15 }
  0xfe   :  { %v1138_v39 = vpop.f32.mrf.mxu1  ;;  %v1075_v17 = vadd.f32 %v1074_v38, %v1073_v36 }
  0xff   :  { %v1076_v40 = vpop.f32.mrf.mxu0  ;;  %v1139_v19 = vadd.f32 %v1138_v39, %v1137_v37 }
 0x100   :  { %v1140_v41 = vpop.f32.mrf.mxu1 }
 0x101   :  { %v1077_v42 = vpop.f32.mrf.mxu0  ;;  %v735_v38 = vadd.f32 %v1139_v19, %v1075_v17 }
 0x102   :  { %v1141_v43 = vpop.f32.mrf.mxu1  ;;  %v1078_v30 = vadd.f32 %v1077_v42, %v1076_v40 }
 0x103   :  { %v1079_v44 = vpop.f32.mrf.mxu0  ;;  %v1142_v29 = vadd.f32 %v1141_v43, %v1140_v41  ;;  %v1571_v43 = vld [vmem:[%s1684_s2] ss:$0 sm:$0xff] }
 0x104   :  { %v1143_v45 = vpop.f32.mrf.mxu1 }
 0x105   :  { %v1080_v46 = vpop.f32.mrf.mxu0 }
 0x106   :  { %v1144_v47 = vpop.f32.mrf.mxu1  ;;  %v1081_v33 = vadd.f32 %v1080_v46, %v1079_v44 }
 0x107   :  { %v1082_v48 = vpop.f32.mrf.mxu0  ;;  %v1145_v35 = vadd.f32 %v1144_v47, %v1143_v45 }
 0x108   :  { %v1146_v49 = vpop.f32.mrf.mxu1 }
 0x109   :  { %v1083_v50 = vpop.f32.mrf.mxu0 }
 0x10a   :  { %v1147_v51 = vpop.f32.mrf.mxu1  ;;  %v1084_v36 = vadd.f32 %v1083_v50, %v1082_v48  ;;  %v1573_v48 = vadd.f32 %v1142_v29, %v1078_v30 }
 0x10b   :  { %v1085_v52 = vpop.f32.mrf.mxu0  ;;  %v1148_v39 = vadd.f32 %v1147_v51, %v1146_v49  ;;  %v1578_v51 = vld [vmem:[%s1685_s3] ss:$0 sm:$0xff] }
 0x10c   :  { %v1149_v53 = vpop.f32.mrf.mxu1 }
 0x10d   :  { %v1086_v54 = vpop.f32.mrf.mxu0 }
 0x10e   :  { %v1150_v55 = vpop.f32.mrf.mxu1  ;;  %v1087_v22 = vadd.f32 %v1086_v54, %v1085_v52 }
 0x10f   :  { %v1088_v56 = vpop.f32.mrf.mxu0  ;;  %v1151_v21 = vadd.f32 %v1150_v55, %v1149_v53 }
 0x110   :  { %v1152_v57 = vpop.f32.mrf.mxu1 }
 0x111   :  { %v1089_v58 = vpop.f32.mrf.mxu0  ;;  %v751_v55 = vadd.f32 %v1151_v21, %v1087_v22 }
 0x112   :  { %v1153_v59 = vpop.f32.mrf.mxu1  ;;  %v1090_v52 = vadd.f32 %v1089_v58, %v1088_v56  ;;  %v743_v58 = vadd.f32 %v1145_v35, %v1081_v33 }
 0x113   :  { %v1091_v60 = vpop.f32.mrf.mxu0  ;;  %v1154_v53 = vadd.f32 %v1153_v59, %v1152_v57 }
 0x114   :  { %v1155_v61 = vpop.f32.mrf.mxu1 }
 0x115   :  { %v1092_v62 = vpop.f32.mrf.mxu0 }
 0x116   :  { %v1156_v63 = vpop.f32.mrf.mxu1  ;;  %v1093_v3 = vadd.f32 %v1092_v62, %v1091_v60  ;;  %v754_v62 = vadd.f32 %v1154_v53, %v1090_v52 }
 0x117   :  { %v1094_v0 = vpop.f32.mrf.mxu0  ;;  %v1157_v4 = vadd.f32 %v1156_v63, %v1155_v61  ;;  %v746_v63 = vadd.f32 %v1148_v39, %v1084_v36 }
 0x118   :  { %v1158_v1 = vpop.f32.mrf.mxu1 }
 0x119   :  { %v1095_v2 = vpop.f32.mrf.mxu0  ;;  %v759_v5 = vadd.f32 %v1157_v4, %v1093_v3 }
 0x11a   :  { %v1159_v7 = vpop.f32.mrf.mxu1  ;;  %v1096_v40 = vadd.f32 %v1095_v2, %v1094_v0 }
 0x11b   :  { %v1097_v12 = vpop.f32.mrf.mxu0  ;;  %v1160_v41 = vadd.f32 %v1159_v7, %v1158_v1 }
 0x11c   :  { %v1161_v18 = vpop.f32.mrf.mxu1 }
 0x11d   :  { %v1098_v20 = vpop.f32.mrf.mxu0  ;;  %v1582_v6 = vadd.f32 %v1160_v41, %v1096_v40 }
 0x11e   :  { %v1162_v23 = vpop.f32.mrf.mxu1  ;;  %v1099_v44 = vadd.f32 %v1098_v20, %v1097_v12 }
 0x11f   :  { %v1100_v24 = vpop.f32.mrf.mxu0  ;;  %v1163_v45 = vadd.f32 %v1162_v23, %v1161_v18 }
 0x120   :  { %v1164_v31 = vpop.f32.mrf.mxu1 }
 0x121   :  { %v1101_v37 = vpop.f32.mrf.mxu0  ;;  %v767_v11 = vadd.f32 %v1163_v45, %v1099_v44 }
 0x122   :  { %v1165_v54 = vpop.f32.mrf.mxu1  ;;  %v1102_v49 = vadd.f32 %v1101_v37, %v1100_v24 }
 0x123   :  { %v1189_v42 = vpop.f32.mrf.mxu0  ;;  %v1166_v50 = vadd.f32 %v1165_v54, %v1164_v31 }
 0x124   :  { %v816_v46 = vadd.f32 %v1189_v42, %v719_v26  ;;  %v1197_v47 = vpop.f32.mrf.mxu1 }
 0x125   :  { %v848_v56 = vadd.f32 %v1197_v47, %v751_v55  ;;  %v807_v57 = vpop.f32.mrf.mxu0  ;;  %v770_v16 = vadd.f32 %v1166_v50, %v1102_v49 }
 0x126   :  { %v879_v59 = vmul.f32 %v1571_v43, %v816_v46  ;;  %v808_v60 = vadd.f32 %v807_v57, %v711_v25  ;;  %v839_v61 = vpop.f32.mrf.mxu1 }
 0x127   :  { %v887_v0 = vmul.f32 %v1571_v43, %v848_v56  ;;  %v840_v1 = vadd.f32 %v839_v61, %v743_v58  ;;  %v1190_v2 = vpop.f32.mrf.mxu0 }
 0x128   :  { %v902_v7 = vadd.f32 %v1578_v51, %v879_v59  ;;  %v877_v8 = vmul.f32 %v1571_v43, %v808_v60  ;;  %v819_v9 = vadd.f32 %v1190_v2, %v722_v27  ;;  %v1198_v10 = vpop.f32.mrf.mxu1 }
 0x129   :  { %v910_v12 = vadd.f32 %v1578_v51, %v887_v0  ;;  %v885_v14 = vmul.f32 %v1571_v43, %v840_v1  ;;  %v851_v13 = vadd.f32 %v1198_v10, %v754_v62  ;;  %v810_v15 = vpop.f32.mrf.mxu0 }
 0x12a   :  { %v918_v18 = vmax.f32 %v902_v7, 0.0  ;;  %v900_v17 = vadd.f32 %v1578_v51, %v877_v8  ;;  %v880_v19 = vmul.f32 %v1571_v43, %v819_v9  ;;  %v811_v20 = vadd.f32 %v810_v15, %v714_v28  ;;  %v842_v22 = vpop.f32.mrf.mxu1 }
 0x12b   :  { %v926_v21 = vmax.f32 %v910_v12, 0.0  ;;  %v908_v23 = vadd.f32 %v1578_v51, %v885_v14  ;;  %v888_v24 = vmul.f32 %v1571_v43, %v851_v13  ;;  %v843_v26 = vadd.f32 %v842_v22, %v746_v63  ;;  %v1193_v25 = vpop.f32.mrf.mxu0 }
 0x12c   :  { %935 = vst.msk [vmem:[%s1686_s4 + $0x10] sm:$0xff] %vm932_vm1, %v918_v18  ;;  %v916_v27 = vmax.f32 %v900_v17, 0.0  ;;  %v903_v30 = vadd.f32 %v1578_v51, %v880_v19  ;;  %v878_v29 = vmul.f32 %v1571_v43, %v811_v20  ;;  %v832_v31 = vadd.f32 %v1193_v25, %v735_v38  ;;  %v1201_v28 = vpop.f32.mrf.mxu1 }
 0x12d   :  { %943 = vst.msk [vmem:[%s1686_s4 + $0x50] sm:$0xff] %vm932_vm1, %v926_v21  ;;  %v924_v33 = vmax.f32 %v908_v23, 0.0  ;;  %v911_v35 = vadd.f32 %v1578_v51, %v888_v24  ;;  %v886_v36 = vmul.f32 %v1571_v43, %v843_v26  ;;  %v864_v37 = vadd.f32 %v1201_v28, %v767_v11  ;;  %v823_v39 = vpop.f32.mrf.mxu0 }
 0x12e   :  { %933 = vst.msk [vmem:[%s1686_s4] sm:$0xff] %vm932_vm1, %v916_v27  ;;  %v919_v52 = vmax.f32 %v903_v30, 0.0  ;;  %v901_v38 = vadd.f32 %v1578_v51, %v878_v29  ;;  %v883_v53 = vmul.f32 %v1571_v43, %v832_v31  ;;  %v824_v54 = vadd.f32 %v823_v39, %v1564_v32  ;;  %v855_v55 = vpop.f32.mrf.mxu1 }
 0x12f   :  { %941 = vst.msk [vmem:[%s1686_s4 + $0x40] sm:$0xff] %vm932_vm1, %v924_v33  ;;  %v927_v3 = vmax.f32 %v911_v35, 0.0  ;;  %v909_v4 = vadd.f32 %v1578_v51, %v886_v36  ;;  %v891_v40 = vmul.f32 %v1571_v43, %v864_v37  ;;  %v856_v41 = vadd.f32 %v855_v55, %v759_v5  ;;  %v1194_v42 = vpop.f32.mrf.mxu0 }
 0x130   :  { %936 = vst.msk [vmem:[%s1686_s4 + $0x18] sm:$0xff] %vm932_vm1, %v919_v52  ;;  %v917_v44 = vmax.f32 %v901_v38, 0.0  ;;  %v906_v32 = vadd.f32 %v1578_v51, %v883_v53  ;;  %v881_v45 = vmul.f32 %v1571_v43, %v824_v54  ;;  %v835_v46 = vadd.f32 %v1194_v42, %v1573_v48  ;;  %v1202_v47 = vpop.f32.mrf.mxu1 }
 0x131   :  { %944 = vst.msk [vmem:[%s1686_s4 + $0x58] sm:$0xff] %vm932_vm1, %v927_v3  ;;  %v925_v49 = vmax.f32 %v909_v4, 0.0  ;;  %v914_v50 = vadd.f32 %v1578_v51, %v891_v40  ;;  %v889_v56 = vmul.f32 %v1571_v43, %v856_v41  ;;  %v867_v57 = vadd.f32 %v1202_v47, %v770_v16  ;;  %v826_v58 = vpop.f32.mrf.mxu0 }
 0x132   :  { %934 = vst.msk [vmem:[%s1686_s4 + $0x8] sm:$0xff] %vm932_vm1, %v917_v44  ;;  %v922_v59 = vmax.f32 %v906_v32, 0.0  ;;  %v904_v48 = vadd.f32 %v1578_v51, %v881_v45  ;;  %v884_v60 = vmul.f32 %v1571_v43, %v835_v46  ;;  %v827_v61 = vadd.f32 %v826_v58, %v1566_v34  ;;  %v858_v62 = vpop.f32.mrf.mxu1 }
 0x133   :  { %942 = vst.msk [vmem:[%s1686_s4 + $0x48] sm:$0xff] %vm932_vm1, %v925_v49  ;;  %v930_v63 = vmax.f32 %v914_v50, 0.0  ;;  %v912_v0 = vadd.f32 %v1578_v51, %v889_v56  ;;  %v892_v1 = vmul.f32 %v1571_v43, %v867_v57  ;;  %v859_v2 = vadd.f32 %v858_v62, %v1582_v6 }
 0x134   :  { %939 = vst.msk [vmem:[%s1686_s4 + $0x30] sm:$0xff] %vm932_vm1, %v922_v59  ;;  %v920_v5 = vmax.f32 %v904_v48, 0.0  ;;  %v907_v34 = vadd.f32 %v1578_v51, %v884_v60  ;;  %v882_v7 = vmul.f32 %v1571_v43, %v827_v61 }
 0x135   :  { %947 = vst.msk [vmem:[%s1686_s4 + $0x70] sm:$0xff] %vm932_vm1, %v930_v63  ;;  %v928_v8 = vmax.f32 %v912_v0, 0.0  ;;  %v915_v9 = vadd.f32 %v1578_v51, %v892_v1  ;;  %v890_v6 = vmul.f32 %v1571_v43, %v859_v2 }
 0x136   :  { %937 = vst.msk [vmem:[%s1686_s4 + $0x20] sm:$0xff] %vm932_vm1, %v920_v5  ;;  %v923_v10 = vmax.f32 %v907_v34, 0.0  ;;  %v905_v11 = vadd.f32 %v1578_v51, %v882_v7 }
 0x137   :  { %945 = vst.msk [vmem:[%s1686_s4 + $0x60] sm:$0xff] %vm932_vm1, %v928_v8  ;;  %v931_v12 = vmax.f32 %v915_v9, 0.0  ;;  %v913_v14 = vadd.f32 %v1578_v51, %v890_v6 }
 0x138   :  { %940 = vst.msk [vmem:[%s1686_s4 + $0x38] sm:$0xff] %vm932_vm1, %v923_v10  ;;  %v921_v43 = vmax.f32 %v905_v11, 0.0 }
 0x139   :  { %948 = vst.msk [vmem:[%s1686_s4 + $0x78] sm:$0xff] %vm932_vm1, %v931_v12  ;;  %v929_v13 = vmax.f32 %v913_v14, 0.0 }
 0x13a   :  { %938 = vst.msk [vmem:[%s1686_s4 + $0x28] sm:$0xff] %vm932_vm1, %v921_v43 }
 0x13b   :  { %946 = vst.msk [vmem:[%s1686_s4 + $0x68] sm:$0xff] %vm932_vm1, %v929_v13 }

// kernel: small_unet2_forward.31
= control target key start
LH: loop header
LB: loop body
LE: loop exit
PB: predicated region body
PF: predicated region fallthrough
CT: control target
= control target key end

     0   :  { %s1624_s15 = smov 0   ;;  %s1947_s0 = inlined_call_operand.vmem [shape: bf16[512,288], index: 0, kind: input, shape index: {}]   ;;  %s1948_s1 = inlined_call_operand.vmem [shape: bf16[288,16], index: 1, kind: input, shape index: {}]   ;;  %s1949_s2 = inlined_call_operand.vmem [shape: f32[1,16], index: 2, kind: input, shape index: {}]   ;;  %s1950_s3 = inlined_call_operand.vmem [shape: f32[1,16], index: 3, kind: input, shape index: {}]   ;;  %s1951_s4 = inlined_call_operand.vmem [shape: f32[512,16], index: 4, kind: output, shape index: {}]  }
   0x1 LB: > { %s1223_s16 = sadd.s32 4294967295, %s1597_s15   ;;  %p1227_p0 = scmp.ge.s32.totalorder %s1597_s15, 1  ;;  %s1597_s15 = sphi %s1624_s15, %s14_s15  }
   0x2   : > { %p164_p1 = scmp.lt.s32.totalorder %s1597_s15, 3 }
   0x4   : > { %p165_p2 = pnand %p1227_p0, %p164_p1 }
   0x5   : > { %s1228_s19 = sshll.u32 (!%p165_p2), %s1223_s16, 5 }
   0x6   : > { %168 = sbr.rel (%p165_p2) target bundleno = 342 (0x156), region = 36  ;;  %p192_p3 = scmp.lt.s32.totalorder (!%p165_p2), %s1228_s19, 63 }
   0xb   : > { %v1509_v0 = vld [vmem:[%s1948_s1 + $0x78] sm:$0xff]   ;;  %v1511_v2 = vld [vmem:[%s1948_s1 + $0x70] sm:$0xff]   ;;  %v1513_v4 = vld [vmem:[%s1948_s1 + $0x68] sm:$0xff]   ;;  %s1953_s19 = smov (!%p192_p3, %s1228_s19), 63  ;;  %vm653_vm0 = vcmask 261120   ;;  %vm1134_vm1 = vcmask 130048  }
   0xc   : > { %v1510_v1 = vld [vmem:[%s1948_s1 + $0x38] sm:$0xff]   ;;  %1318 = vmatprep.subr.bf16.mxu0 %v1509_v0  ;;  %1484 = vmatprep.subr.bf16.mxu1 %v1509_v0  ;;  %v1512_v3 = vld [vmem:[%s1948_s1 + $0x30] sm:$0xff]   ;;  %v1514_v5 = vld [vmem:[%s1948_s1 + $0x28] sm:$0xff]   ;;  %s1500_s6 = smul.u32 12, %s1953_s19  ;;  %s1231_s12 = sshll.u32 %s1953_s19, 3 }
   0xd   : > { %1319 = vmatpush3.bf16.msra.mxu0 %v1510_v1  ;;  %1492 = vmatpush3.bf16.msra.mxu1 %v1510_v1  ;;  %v1515_v6 = vld [vmem:[%s1948_s1 + $0x60] sm:$0xff]   ;;  %v1517_v8 = vld [vmem:[%s1948_s1 + $0x58] sm:$0xff]   ;;  %v1519_v10 = vld [vmem:[%s1948_s1 + $0x50] sm:$0xff]   ;;  %s1799_s16 = scalar_lea.vmem %s1951_s4, %s1231_s12 }
   0xe   : > { %1320 = vmatprep.subr.bf16.mxu0 %v1511_v2  ;;  %1485 = vmatprep.subr.bf16.mxu1 %v1511_v2  ;;  %v1516_v7 = vld [vmem:[%s1948_s1 + $0x20] sm:$0xff]   ;;  %s1665_s13 = scalar_lea.vmem %s1947_s0, %s1500_s6  ;;  %v1518_v9 = vld [vmem:[%s1948_s1 + $0x18] sm:$0xff]   ;;  %v1520_v13 = vld [vmem:[%s1948_s1 + $0x10] sm:$0xff]  }
   0xf   : > { %v1527_v11 = vld [vmem:[%s1665_s13 + $0x4] ss:$12 sps:$4 sm:$0xff]   ;;  %v1521_v14 = vld [vmem:[%s1948_s1 + $0x48] sm:$0xff]   ;;  %v1538_v26 = vld [vmem:[%s1665_s13 + $0x34] ss:$12 sps:$4 sm:$0xff]  }
  0x10   : > { %v1530_v12 = vld [vmem:[%s1665_s13 + $0x124] ss:$12 sps:$4 sm:$0xff]   ;;  %734 = vmatprep.mubr.bf16.mxu0 %v1527_v11  ;;  %v1522_v15 = vld [vmem:[%s1948_s1 + $0x8] sm:$0xff]   ;;  %v1540_v27 = vld [vmem:[%s1665_s13 + $0x154] ss:$12 sps:$4 sm:$0xff]  }
  0x11   : > { %1321 = vmatpush3.bf16.msra.mxu0 %v1512_v3  ;;  %1493 = vmatpush3.bf16.msra.mxu1 %v1512_v3  ;;  %v1523_v16 = vld [vmem:[%s1948_s1 + $0x40] sm:$0xff]   ;;  %v1531_v18 = vld [vmem:[%s1948_s1 + $0x88] sm:$0xff]   ;;  %v1542_v28 = vld [vmem:[%s1665_s13 + $0x30] ss:$12 sps:$4 sm:$0xff]  }
  0x12   : > { %1322 = vmatprep.subr.bf16.mxu0 %v1513_v4  ;;  %1486 = vmatprep.subr.bf16.mxu1 %v1513_v4  ;;  %v1524_v17 = vld [vmem:[%s1948_s1] sm:$0xff]   ;;  %v1532_v21 = vld [vmem:[%s1665_s13 + $0x1c] ss:$12 sps:$4 sm:$0xff]   ;;  %v1545_v30 = vld [vmem:[%s1665_s13 + $0x4c] ss:$12 sps:$4 sm:$0xff]  }
  0x13   : > { %830 = vmatprep.mubr.bf16.mxu1 %v1530_v12  ;;  %v1525_v19 = vld [vmem:[%s1665_s13] ss:$12 sps:$4 sm:$0xff]   ;;  %v1534_v22 = vld [vmem:[%s1665_s13 + $0x13c] ss:$12 sps:$4 sm:$0xff]   ;;  %v1536_v24 = vld [vmem:[%s1665_s13 + $0x18] ss:$12 sps:$4 sm:$0xff]  }
  0x14   : > { %v1528_v20 = vld [vmem:[%s1665_s13 + $0x120] ss:$12 sps:$4 sm:$0xff]   ;;  %v1537_v25 = vld [vmem:[%s1665_s13 + $0x138] ss:$12 sps:$4 sm:$0xff]   ;;  %v1543_v29 = vld [vmem:[%s1665_s13 + $0x150] ss:$12 sps:$4 sm:$0xff]  }
  0x15   : > { %1323 = vmatpush3.bf16.msra.mxu0 %v1514_v5  ;;  %1494 = vmatpush3.bf16.msra.mxu1 %v1514_v5  ;;  %v1544_v23 = vld [vmem:[%s1948_s1 + $0x80] sm:$0xff]   ;;  %v1547_v31 = vld [vmem:[%s1665_s13 + $0x16c] ss:$12 sps:$4 sm:$0xff]   ;;  %v1549_v32 = vld [vmem:[%s1665_s13 + $0x48] ss:$12 sps:$4 sm:$0xff]  }
  0x16   : > { %1324 = vmatprep.subr.bf16.mxu0 %v1515_v6  ;;  %1487 = vmatprep.subr.bf16.mxu1 %v1515_v6  ;;  %v1550_v33 = vld [vmem:[%s1665_s13 + $0x168] ss:$12 sps:$4 sm:$0xff]   ;;  %v1551_v34 = vld [vmem:[%s1665_s13 + $0x64] ss:$12 sps:$4 sm:$0xff]   ;;  %v1554_v36 = vld [vmem:[%s1665_s13 + $0x60] ss:$12 sps:$4 sm:$0xff]  }
  0x17   : > { %v1553_v35 = vld [vmem:[%s1665_s13 + $0x8] ss:$12 sps:$4 sm:$0xff]   ;;  %v1555_v37 = vld [vmem:[%s1665_s13 + $0x20] ss:$12 sps:$4 sm:$0xff]   ;;  %v1558_v39 = vld [vmem:[%s1665_s13 + $0x38] ss:$12 sps:$4 sm:$0xff]  }
  0x18   : > { %v1556_v38 = vld [vmem:[%s1665_s13 + $0x7c] ss:$12 sps:$4 sm:$0xff]   ;;  %v1559_v40 = vld [vmem:[%s1665_s13 + $0x78] ss:$12 sps:$4 sm:$0xff]   ;;  %v1561_v42 = vld [vmem:[%s1665_s13 + $0x94] ss:$12 sps:$4 sm:$0xff]  }
  0x19   : > { %1325 = vmatpush3.bf16.msra.mxu0 %v1516_v7  ;;  %1495 = vmatpush3.bf16.msra.mxu1 %v1516_v7  ;;  %v1560_v41 = vld [vmem:[%s1665_s13 + $0x50] ss:$12 sps:$4 sm:$0xff]   ;;  %v1563_v43 = vld [vmem:[%s1665_s13 + $0x68] ss:$12 sps:$4 sm:$0xff]   ;;  %v1565_v45 = vld [vmem:[%s1665_s13 + $0x80] ss:$12 sps:$4 sm:$0xff]  }
  0x1a   : > { %1326 = vmatprep.subr.bf16.mxu0 %v1517_v8  ;;  %1488 = vmatprep.subr.bf16.mxu1 %v1517_v8  ;;  %v1564_v44 = vld [vmem:[%s1665_s13 + $0x90] ss:$12 sps:$4 sm:$0xff]   ;;  %v1566_v46 = vld [vmem:[%s1665_s13 + $0xac] ss:$12 sps:$4 sm:$0xff]   ;;  %v1569_v48 = vld [vmem:[%s1665_s13 + $0xa8] ss:$12 sps:$4 sm:$0xff]  }
  0x1b   : > { %v1568_v47 = vld [vmem:[%s1665_s13 + $0x98] ss:$12 sps:$4 sm:$0xff]   ;;  %v1570_v49 = vld [vmem:[%s1665_s13 + $0xb0] ss:$12 sps:$4 sm:$0xff]   ;;  %v1573_v51 = vld [vmem:[%s1665_s13 + $0xc8] ss:$12 sps:$4 sm:$0xff]  }
  0x1c   : > { %v1571_v50 = vld [vmem:[%s1665_s13 + $0xc4] ss:$12 sps:$4 sm:$0xff]   ;;  %v1574_v52 = vld [vmem:[%s1665_s13 + $0xc0] ss:$12 sps:$4 sm:$0xff]   ;;  %v1576_v54 = vld [vmem:[%s1665_s13 + $0xdc] ss:$12 sps:$4 sm:$0xff]  }
  0x1d   : > { %1327 = vmatpush3.bf16.msra.mxu0 %v1518_v9  ;;  %1496 = vmatpush3.bf16.msra.mxu1 %v1518_v9  ;;  %v1575_v53 = vld [vmem:[%s1665_s13 + $0xe0] ss:$12 sps:$4 sm:$0xff]   ;;  %v1578_v55 = vld [vmem:[%s1665_s13 + $0xf8] ss:$12 sps:$4 sm:$0xff]   ;;  %v1580_v57 = vld [vmem:[%s1665_s13 + $0x110] ss:$12 sps:$4 sm:$0xff]  }
  0x1e   : > { %1328 = vmatprep.subr.bf16.mxu0 %v1519_v10  ;;  %1489 = vmatprep.subr.bf16.mxu1 %v1519_v10  ;;  %v1579_v56 = vld [vmem:[%s1665_s13 + $0xd8] ss:$12 sps:$4 sm:$0xff]   ;;  %v1581_v58 = vld [vmem:[%s1665_s13 + $0xf4] ss:$12 sps:$4 sm:$0xff]   ;;  %v1584_v60 = vld [vmem:[%s1665_s13 + $0xf0] ss:$12 sps:$4 sm:$0xff]  }
  0x1f   : > { %v1583_v59 = vld [vmem:[%s1665_s13 + $0x128] ss:$12 sps:$4 sm:$0xff]   ;;  %v1585_v61 = vld [vmem:[%s1665_s13 + $0x140] ss:$12 sps:$4 sm:$0xff]   ;;  %v1588_v63 = vld [vmem:[%s1665_s13 + $0x158] ss:$12 sps:$4 sm:$0xff]  }
  0x20   : > { %v1586_v62 = vld [vmem:[%s1665_s13 + $0x10c] ss:$12 sps:$4 sm:$0xff]   ;;  %v1589_v0 = vld [vmem:[%s1665_s13 + $0x108] ss:$12 sps:$4 sm:$0xff]   ;;  %v1590_v1 = vld [vmem:[%s1665_s13 + $0x170] ss:$12 sps:$4 sm:$0xff]  }
  0x21   : > { %1329 = vmatpush3.bf16.msra.mxu0 %v1520_v13  ;;  %1497 = vmatpush3.bf16.msra.mxu1 %v1520_v13 }
  0x22   : > { %1330 = vmatprep.subr.bf16.mxu0 %v1521_v14  ;;  %1490 = vmatprep.subr.bf16.mxu1 %v1521_v14 }
  0x25   : > { %1331 = vmatpush3.bf16.msra.mxu0 %v1522_v15  ;;  %1498 = vmatpush3.bf16.msra.mxu1 %v1522_v15 }
  0x26   : > { %1332 = vmatprep.subr.bf16.mxu0 %v1523_v16  ;;  %1491 = vmatprep.subr.bf16.mxu1 %v1523_v16 }
  0x29   : > { %1333 = vmatpush3.bf16.msra.mxu0 %v1524_v17  ;;  %1499 = vmatpush3.bf16.msra.mxu1 %v1524_v17 }
  0x2a   : > { %1448 = vmatprep.subr.bf16.mxu1 %v1531_v18 }
  0x2c   : > { %735 = vmatmul.mubr.bf16.vlgmr.msra.gmra.mxu0 %v1525_v19  ;;  %831 = vmatmul.mubr.bf16.vlgmr.msra.gmra.mxu1 %v1528_v20 }
  0x2d   : > { %1449 = vmatpush3.bf16.msra.mxu1 %v1531_v18  ;;  %742 = vmatprep.mubr.bf16.mxu0 %v1532_v21 }
  0x2e   : > { %838 = vmatprep.mubr.bf16.mxu1 %v1534_v22  ;;  %1450 = vmatprep.subr.bf16.mxu1 %v1544_v23 }
  0x31   : > { %1451 = vmatpush3.bf16.msra.mxu1 %v1544_v23 }
  0x34   : > { %743 = vmatmul.mubr.bf16.gmra.mxu0 %v1536_v24  ;;  %839 = vmatmul.mubr.bf16.gmra.mxu1 %v1537_v25 }
  0x35   : > { %750 = vmatprep.mubr.bf16.mxu0 %v1538_v26  ;;  %846 = vmatprep.mubr.bf16.mxu1 %v1540_v27 }
  0x3c   : > { %751 = vmatmul.mubr.bf16.gmra.mxu0 %v1542_v28  ;;  %847 = vmatmul.mubr.bf16.gmra.mxu1 %v1543_v29 }
  0x3d   : > { %758 = vmatprep.mubr.bf16.mxu0 %v1545_v30  ;;  %854 = vmatprep.mubr.bf16.mxu1 %v1547_v31 }
  0x44   : > { %759 = vmatmul.mubr.bf16.gmra.mxu0 %v1549_v32  ;;  %855 = vmatmul.mubr.bf16.gmra.mxu1 %v1550_v33 }
  0x45   : > { %766 = vmatprep.mubr.bf16.mxu0 %v1551_v34  ;;  %1452 = vmatprep.mubr.msk.bf16.mxu1 %vm653_vm0, %v1553_v35 }
  0x4c   : > { %767 = vmatmul.mubr.bf16.gmra.mxu0 %v1554_v36  ;;  %1453 = vmatmul.mubr.msk.bf16.vlgmr.msra.gmra.mxu1 %vm653_vm0, %v1555_v37 }
  0x4d   : > { %774 = vmatprep.mubr.bf16.mxu0 %v1556_v38  ;;  %1456 = vmatprep.mubr.msk.bf16.mxu1 %vm653_vm0, %v1558_v39 }
  0x54   : > { %775 = vmatmul.mubr.bf16.gmra.mxu0 %v1559_v40  ;;  %1457 = vmatmul.mubr.msk.bf16.gmra.mxu1 %vm653_vm0, %v1560_v41 }
  0x55   : > { %782 = vmatprep.mubr.bf16.mxu0 %v1561_v42  ;;  %1460 = vmatprep.mubr.msk.bf16.mxu1 %vm653_vm0, %v1563_v43  ;;  %v1783_v43 = vld [vmem:[%s1949_s2] ss:$0 sm:$0xff] }
  0x5c   : > { %783 = vmatmul.mubr.bf16.gmra.mxu0 %v1564_v44  ;;  %1461 = vmatmul.mubr.msk.bf16.gmra.mxu1 %vm653_vm0, %v1565_v45 }
  0x5d   : > { %790 = vmatprep.mubr.bf16.mxu0 %v1566_v46  ;;  %1464 = vmatprep.mubr.msk.bf16.mxu1 %vm653_vm0, %v1568_v47  ;;  %v1788_v46 = vld [vmem:[%s1950_s3] ss:$0 sm:$0xff] }
  0x64   : > { %791 = vmatmul.mubr.bf16.gmra.mxu0 %v1569_v48  ;;  %1465 = vmatmul.mubr.msk.bf16.gmra.mxu1 %vm653_vm0, %v1570_v49 }
  0x65   : > { %798 = vmatprep.mubr.bf16.mxu0 %v1571_v50  ;;  %1468 = vmatprep.mubr.msk.bf16.mxu1 %vm653_vm0, %v1573_v51 }
  0x6c   : > { %799 = vmatmul.mubr.bf16.gmra.mxu0 %v1574_v52  ;;  %1469 = vmatmul.mubr.msk.bf16.gmra.mxu1 %vm653_vm0, %v1575_v53 }
  0x6d   : > { %806 = vmatprep.mubr.bf16.mxu0 %v1576_v54  ;;  %1472 = vmatprep.mubr.msk.bf16.mxu1 %vm653_vm0, %v1578_v55 }
  0x74   : > { %807 = vmatmul.mubr.bf16.gmra.mxu0 %v1579_v56  ;;  %1473 = vmatmul.mubr.msk.bf16.gmra.mxu1 %vm653_vm0, %v1580_v57 }
  0x75   : > { %814 = vmatprep.mubr.bf16.mxu0 %v1581_v58  ;;  %1476 = vmatprep.mubr.msk.bf16.mxu1 %vm653_vm0, %v1583_v59 }
  0x7c   : > { %815 = vmatmul.mubr.bf16.gmra.mxu0 %v1584_v60  ;;  %1477 = vmatmul.mubr.msk.bf16.gmra.mxu1 %vm653_vm0, %v1585_v61 }
  0x7d   : > { %822 = vmatprep.mubr.bf16.mxu0 %v1586_v62  ;;  %1480 = vmatprep.mubr.msk.bf16.mxu1 %vm653_vm0, %v1588_v63 }
  0x84   : > { %823 = vmatmul.mubr.bf16.gmra.mxu0 %v1589_v0  ;;  %1481 = vmatmul.mubr.msk.bf16.gmra.mxu1 %vm653_vm0, %v1590_v1 }
  0xec   : > { %v1334_v2 = vpop.f32.mrf.mxu0  ;;  %v1406_v3 = vpop.f32.mrf.mxu1 }
  0xee   : > { %v1335_v4 = vpop.f32.mrf.mxu0  ;;  %v1407_v5 = vpop.f32.mrf.mxu1 }
  0xef   : > { %v1758_v6 = vadd.f32 %v1407_v5, %v1406_v3  ;;  %v1336_v44 = vadd.f32 %v1335_v4, %v1334_v2 }
  0xf0   : > { %v1337_v7 = vpop.f32.mrf.mxu0  ;;  %v1409_v8 = vpop.f32.mrf.mxu1 }
  0xf2   : > { %v1338_v9 = vpop.f32.mrf.mxu0  ;;  %v1410_v10 = vpop.f32.mrf.mxu1 }
  0xf3   : > { %v1760_v11 = vadd.f32 %v1410_v10, %v1409_v8  ;;  %v1339_v57 = vadd.f32 %v1338_v9, %v1337_v7 }
  0xf4   : > { %v1340_v12 = vpop.f32.mrf.mxu0  ;;  %v1412_v13 = vpop.f32.mrf.mxu1 }
  0xf6   : > { %v1341_v14 = vpop.f32.mrf.mxu0  ;;  %v1413_v15 = vpop.f32.mrf.mxu1 }
  0xf7   : > { %v1762_v16 = vadd.f32 %v1413_v15, %v1412_v13  ;;  %v1342_v40 = vadd.f32 %v1341_v14, %v1340_v12 }
  0xf8   : > { %v1343_v17 = vpop.f32.mrf.mxu0  ;;  %v1415_v18 = vpop.f32.mrf.mxu1 }
  0xfa   : > { %v1344_v19 = vpop.f32.mrf.mxu0  ;;  %v1416_v20 = vpop.f32.mrf.mxu1 }
  0xfb   : > { %v1764_v21 = vadd.f32 %v1416_v20, %v1415_v18  ;;  %v1345_v49 = vadd.f32 %v1344_v19, %v1343_v17 }
  0xfc   : > { %v1346_v22 = vpop.f32.mrf.mxu0  ;;  %v1418_v23 = vpop.f32.mrf.mxu1 }
  0xfe   : > { %v1347_v24 = vpop.f32.mrf.mxu0  ;;  %v1419_v25 = vpop.f32.mrf.mxu1 }
  0xff   : > { %v1766_v26 = vadd.f32 %v1419_v25, %v1418_v23  ;;  %v1348_v3 = vadd.f32 %v1347_v24, %v1346_v22 }
 0x100   : > { %v1768_v27 = vpop.f32.mrf.mxu0  ;;  %v1421_v28 = vpop.f32.mrf.mxu1 }
 0x102   : > { %v1350_v29 = vpop.f32.mrf.mxu0  ;;  %v1422_v30 = vpop.f32.mrf.mxu1 }
 0x103   : > { %v1770_v31 = vadd.f32 %v1422_v30, %v1421_v28  ;;  %v1351_v24 = vadd.f32 %v1350_v29, %v1768_v27 }
 0x104   : > { %v1352_v32 = vpop.f32.mrf.mxu0  ;;  %v1772_v33 = vpop.f32.mrf.mxu1 }
 0x106   : > { %v1353_v34 = vpop.f32.mrf.mxu0  ;;  %v1774_v35 = vpop.f32.mrf.mxu1 }
 0x107   : > { %v1354_v60 = vadd.f32 %v1353_v34, %v1352_v32 }
 0x108   : > { %v1355_v36 = vpop.f32.mrf.mxu0  ;;  %v1776_v37 = vpop.f32.mrf.mxu1 }
 0x10a   : > { %v1356_v38 = vpop.f32.mrf.mxu0  ;;  %v1778_v39 = vpop.f32.mrf.mxu1 }
 0x10b   : > { %v1357_v12 = vadd.f32 %v1356_v38, %v1355_v36 }
 0x10c   : > { %v1358_v41 = vpop.f32.mrf.mxu0  ;;  %v1454_v42 = vpop.f32.mrf.mxu1 }
 0x10d   : > { %v906_v45 = vadd.f32 %v1454_v42, %v1342_v40 }
 0x10e   : > { %v1359_v47 = vpop.f32.mrf.mxu0  ;;  %v897_v48 = vpop.f32.mrf.mxu1 }
 0x10f   : > { %v1033_v50 = vmul.f32 %v1783_v43, %v906_v45  ;;  %v898_v51 = vadd.f32 %v1336_v44, %v897_v48  ;;  %v1360_v45 = vadd.f32 %v1359_v47, %v1358_v41 }
 0x110   : > { %v1792_v52 = vpop.f32.mrf.mxu0  ;;  %v1455_v53 = vpop.f32.mrf.mxu1 }
 0x111   : > { %v1072_v54 = vadd.f32 %v1788_v46, %v1033_v50  ;;  %v1031_v55 = vmul.f32 %v1783_v43, %v898_v51  ;;  %v909_v56 = vadd.f32 %v1455_v53, %v1345_v49 }
 0x112   : > { %v1362_v58 = vpop.f32.mrf.mxu0  ;;  %v900_v59 = vpop.f32.mrf.mxu1 }
 0x113   : > { %v1104_v61 = vmax.f32 %v1072_v54, 0.0  ;;  %v1070_v62 = vadd.f32 %v1788_v46, %v1031_v55  ;;  %v1034_v63 = vmul.f32 %v1783_v43, %v909_v56  ;;  %v901_v0 = vadd.f32 %v1339_v57, %v900_v59 }
 0x114   : > { %v1364_v1 = vpop.f32.mrf.mxu0  ;;  %v1458_v2 = vpop.f32.mrf.mxu1 }
 0x115   : > { %1137 = vst.msk [vmem:[%s1799_s16 + $0x10] sm:$0xff] %vm1134_vm1, %v1104_v61  ;;  %v1102_v4 = vmax.f32 %v1070_v62, 0.0  ;;  %v1073_v5 = vadd.f32 %v1788_v46, %v1034_v63  ;;  %v922_v7 = vadd.f32 %v1458_v2, %v1354_v60  ;;  %v1032_v8 = vmul.f32 %v1783_v43, %v901_v0 }
 0x116   : > { %v1365_v9 = vpop.f32.mrf.mxu0  ;;  %v913_v10 = vpop.f32.mrf.mxu1  ;;  %v1363_v62 = vadd.f32 %v1362_v58, %v1792_v52 }
 0x117   : > { %1135 = vst.msk [vmem:[%s1799_s16] sm:$0xff] %vm1134_vm1, %v1102_v4  ;;  %v1105_v13 = vmax.f32 %v1073_v5, 0.0  ;;  %v1037_v14 = vmul.f32 %v1783_v43, %v922_v7  ;;  %v914_v15 = vadd.f32 %v1348_v3, %v913_v10  ;;  %v1071_v17 = vadd.f32 %v1788_v46, %v1032_v8 }
 0x118   : > { %v1367_v18 = vpop.f32.mrf.mxu0  ;;  %v1459_v19 = vpop.f32.mrf.mxu1  ;;  %v1366_v34 = vadd.f32 %v1365_v9, %v1364_v1 }
 0x119   : > { %1138 = vst.msk [vmem:[%s1799_s16 + $0x18] sm:$0xff] %vm1134_vm1, %v1105_v13  ;;  %v1076_v20 = vadd.f32 %v1788_v46, %v1037_v14  ;;  %v1035_v22 = vmul.f32 %v1783_v43, %v914_v15  ;;  %v925_v23 = vadd.f32 %v1459_v19, %v1357_v12  ;;  %v1103_v25 = vmax.f32 %v1071_v17, 0.0 }
 0x11a   : > { %v1368_v28 = vpop.f32.mrf.mxu0  ;;  %v916_v30 = vpop.f32.mrf.mxu1 }
 0x11b   : > { %v1108_v32 = vmax.f32 %v1076_v20, 0.0  ;;  %v1074_v36 = vadd.f32 %v1788_v46, %v1035_v22  ;;  %v1038_v38 = vmul.f32 %v1783_v43, %v925_v23  ;;  %1136 = vst.msk [vmem:[%s1799_s16 + $0x8] sm:$0xff] %vm1134_vm1, %v1103_v25  ;;  %v917_v40 = vadd.f32 %v1351_v24, %v916_v30 }
 0x11c   : > { %v1370_v42 = vpop.f32.mrf.mxu0  ;;  %v1462_v44 = vpop.f32.mrf.mxu1  ;;  %v1369_v54 = vadd.f32 %v1368_v28, %v1367_v18 }
 0x11d   : > { %1141 = vst.msk [vmem:[%s1799_s16 + $0x30] sm:$0xff] %vm1134_vm1, %v1108_v32  ;;  %v1106_v27 = vmax.f32 %v1074_v36, 0.0  ;;  %v1077_v29 = vadd.f32 %v1788_v46, %v1038_v38  ;;  %v938_v48 = vadd.f32 %v1462_v44, %v1366_v34  ;;  %v1036_v49 = vmul.f32 %v1783_v43, %v917_v40 }
 0x11e   : > { %v1371_v50 = vpop.f32.mrf.mxu0  ;;  %v929_v51 = vpop.f32.mrf.mxu1 }
 0x11f   : > { %1139 = vst.msk [vmem:[%s1799_s16 + $0x20] sm:$0xff] %vm1134_vm1, %v1106_v27  ;;  %v1109_v53 = vmax.f32 %v1077_v29, 0.0  ;;  %v1041_v55 = vmul.f32 %v1783_v43, %v938_v48  ;;  %v930_v56 = vadd.f32 %v1360_v45, %v929_v51  ;;  %v1075_v41 = vadd.f32 %v1788_v46, %v1036_v49 }
 0x120   : > { %v1373_v47 = vpop.f32.mrf.mxu0  ;;  %v1463_v57 = vpop.f32.mrf.mxu1  ;;  %v1372_v9 = vadd.f32 %v1371_v50, %v1370_v42 }
 0x121   : > { %1142 = vst.msk [vmem:[%s1799_s16 + $0x38] sm:$0xff] %vm1134_vm1, %v1109_v53  ;;  %v1080_v59 = vadd.f32 %v1788_v46, %v1041_v55  ;;  %v1039_v60 = vmul.f32 %v1783_v43, %v930_v56  ;;  %v941_v61 = vadd.f32 %v1463_v57, %v1369_v54  ;;  %v1107_v63 = vmax.f32 %v1075_v41, 0.0 }
 0x122   : > { %v1374_v0 = vpop.f32.mrf.mxu0  ;;  %v932_v1 = vpop.f32.mrf.mxu1 }
 0x123   : > { %v1112_v2 = vmax.f32 %v1080_v59, 0.0  ;;  %v1078_v3 = vadd.f32 %v1788_v46, %v1039_v60  ;;  %v1042_v4 = vmul.f32 %v1783_v43, %v941_v61  ;;  %1140 = vst.msk [vmem:[%s1799_s16 + $0x28] sm:$0xff] %vm1134_vm1, %v1107_v63  ;;  %v933_v5 = vadd.f32 %v1363_v62, %v932_v1 }
 0x124   : > { %v1376_v7 = vpop.f32.mrf.mxu0  ;;  %v1466_v8 = vpop.f32.mrf.mxu1  ;;  %v1375_v22 = vadd.f32 %v1374_v0, %v1373_v47 }
 0x125   : > { %1145 = vst.msk [vmem:[%s1799_s16 + $0x50] sm:$0xff] %vm1134_vm1, %v1112_v2  ;;  %v1110_v10 = vmax.f32 %v1078_v3, 0.0  ;;  %v1081_v52 = vadd.f32 %v1788_v46, %v1042_v4  ;;  %v1040_v58 = vmul.f32 %v1783_v43, %v933_v5 }
 0x126   : > { %v1377_v12 = vpop.f32.mrf.mxu0  ;;  %v945_v13 = vpop.f32.mrf.mxu1 }
 0x127   : > { %1143 = vst.msk [vmem:[%s1799_s16 + $0x40] sm:$0xff] %vm1134_vm1, %v1110_v10  ;;  %v1113_v14 = vmax.f32 %v1081_v52, 0.0  ;;  %v1378_v15 = vadd.f32 %v1377_v12, %v1376_v7  ;;  %v946_v17 = vadd.f32 %v1372_v9, %v945_v13  ;;  %v1079_v18 = vadd.f32 %v1788_v46, %v1040_v58 }
 0x128   : > { %v1379_v19 = vpop.f32.mrf.mxu0  ;;  %v1467_v20 = vpop.f32.mrf.mxu1 }
 0x129   : > { %1146 = vst.msk [vmem:[%s1799_s16 + $0x58] sm:$0xff] %vm1134_vm1, %v1113_v14  ;;  %v954_v23 = vadd.f32 %v1466_v8, %v1378_v15  ;;  %v1043_v24 = vmul.f32 %v1783_v43, %v946_v17  ;;  %v1111_v25 = vmax.f32 %v1079_v18, 0.0 }
 0x12a   : > { %v1380_v28 = vpop.f32.mrf.mxu0  ;;  %v948_v30 = vpop.f32.mrf.mxu1 }
 0x12b   : > { %v1045_v32 = vmul.f32 %v1783_v43, %v954_v23  ;;  %v1082_v34 = vadd.f32 %v1788_v46, %v1043_v24  ;;  %v1381_v36 = vadd.f32 %v1380_v28, %v1379_v19  ;;  %v949_v38 = vadd.f32 %v1375_v22, %v948_v30  ;;  %1144 = vst.msk [vmem:[%s1799_s16 + $0x48] sm:$0xff] %vm1134_vm1, %v1111_v25 }
 0x12c   : > { %v1382_v40 = vpop.f32.mrf.mxu0  ;;  %v1470_v42 = vpop.f32.mrf.mxu1 }
 0x12d   : > { %v1084_v44 = vadd.f32 %v1788_v46, %v1045_v32  ;;  %v1114_v45 = vmax.f32 %v1082_v34, 0.0  ;;  %v957_v27 = vadd.f32 %v1467_v20, %v1381_v36  ;;  %v1044_v29 = vmul.f32 %v1783_v43, %v949_v38 }
 0x12e   : > { %v1383_v48 = vpop.f32.mrf.mxu0  ;;  %v961_v49 = vpop.f32.mrf.mxu1 }
 0x12f   : > { %v1116_v50 = vmax.f32 %v1084_v44, 0.0  ;;  %1147 = vst.msk [vmem:[%s1799_s16 + $0x60] sm:$0xff] %vm1134_vm1, %v1114_v45  ;;  %v1046_v51 = vmul.f32 %v1783_v43, %v957_v27  ;;  %v1083_v53 = vadd.f32 %v1788_v46, %v1044_v29  ;;  %v1384_v54 = vadd.f32 %v1383_v48, %v1382_v40 }
 0x130   : > { %v1385_v55 = vpop.f32.mrf.mxu0  ;;  %v1471_v56 = vpop.f32.mrf.mxu1  ;;  %v1426_v29 = vadd.f32 %v1774_v35, %v1772_v33 }
 0x131   : > { %1149 = vst.msk [vmem:[%s1799_s16 + $0x70] sm:$0xff] %vm1134_vm1, %v1116_v50  ;;  %v1085_v41 = vadd.f32 %v1788_v46, %v1046_v51  ;;  %v1115_v47 = vmax.f32 %v1083_v53, 0.0  ;;  %v962_v57 = vadd.f32 %v1384_v54, %v961_v49 }
 0x132   : > { %v1386_v59 = vpop.f32.mrf.mxu0  ;;  %v964_v60 = vpop.f32.mrf.mxu1 }
 0x133   : > { %v1117_v61 = vmax.f32 %v1085_v41, 0.0  ;;  %1148 = vst.msk [vmem:[%s1799_s16 + $0x68] sm:$0xff] %vm1134_vm1, %v1115_v47  ;;  %v1047_v62 = vmul.f32 %v1783_v43, %v962_v57  ;;  %v1387_v63 = vadd.f32 %v1386_v59, %v1385_v55  ;;  %v1429_v59 = vadd.f32 %v1778_v39, %v1776_v37 }
 0x134   : > { %v1388_v0 = vpop.f32.mrf.mxu0  ;;  %v1863_v1 = vpop.f32.mrf.mxu1 }
 0x135   : > { %1150 = vst.msk [vmem:[%s1799_s16 + $0x78] sm:$0xff] %vm1134_vm1, %v1117_v61  ;;  %v1086_v2 = vadd.f32 %v1788_v46, %v1047_v62  ;;  %v965_v3 = vadd.f32 %v1387_v63, %v964_v60 }
 0x136   : > { %v1389_v4 = vpop.f32.mrf.mxu0  ;;  %v977_v5 = vpop.f32.mrf.mxu1 }
 0x137   : > { %v1118_v7 = vmax.f32 %v1086_v2, 0.0  ;;  %v1048_v8 = vmul.f32 %v1783_v43, %v965_v3  ;;  %v1390_v9 = vadd.f32 %v1389_v4, %v1388_v0 }
 0x138   : > { %v1391_v10 = vpop.f32.mrf.mxu0  ;;  %v1869_v52 = vpop.f32.mrf.mxu1 }
 0x139   : > { %1151 = vst.msk [vmem:[%s1799_s16 + $0x80] sm:$0xff] %vm1134_vm1, %v1118_v7  ;;  %v1087_v58 = vadd.f32 %v1788_v46, %v1048_v8  ;;  %v970_v12 = vadd.f32 %v1470_v42, %v1390_v9 }
 0x13a   : > { %v1392_v13 = vpop.f32.mrf.mxu0  ;;  %v980_v14 = vpop.f32.mrf.mxu1 }
 0x13b   : > { %v1119_v15 = vmax.f32 %v1087_v58, 0.0  ;;  %v1049_v17 = vmul.f32 %v1783_v43, %v970_v12  ;;  %v1393_v18 = vadd.f32 %v1392_v13, %v1391_v10 }
 0x13c   : > { %v1394_v19 = vpop.f32.mrf.mxu0  ;;  %v1478_v20 = vpop.f32.mrf.mxu1 }
 0x13d   : > { %1152 = vst.msk [vmem:[%s1799_s16 + $0x88] sm:$0xff] %vm1134_vm1, %v1119_v15  ;;  %v1088_v22 = vadd.f32 %v1788_v46, %v1049_v17  ;;  %v973_v23 = vadd.f32 %v1471_v56, %v1393_v18  ;;  %v1002_v24 = vadd.f32 %v1478_v20, %v1762_v16 }
 0x13e   : > { %v1395_v25 = vpop.f32.mrf.mxu0  ;;  %v993_v28 = vpop.f32.mrf.mxu1 }
 0x13f   : > { %v1120_v30 = vmax.f32 %v1088_v22, 0.0  ;;  %v1050_v32 = vmul.f32 %v1783_v43, %v973_v23  ;;  %v1057_v34 = vmul.f32 %v1783_v43, %v1002_v24  ;;  %v1396_v36 = vadd.f32 %v1395_v25, %v1394_v19 }
 0x140   : > { %v994_v38 = vadd.f32 %v1758_v6, %v993_v28  ;;  %v1397_v40 = vpop.f32.mrf.mxu0  ;;  %v1479_v42 = vpop.f32.mrf.mxu1 }
 0x141   : > { %1153 = vst.msk [vmem:[%s1799_s16 + $0x90] sm:$0xff] %vm1134_vm1, %v1120_v30  ;;  %v1089_v44 = vadd.f32 %v1788_v46, %v1050_v32  ;;  %v1096_v45 = vadd.f32 %v1788_v46, %v1057_v34  ;;  %v978_v16 = vadd.f32 %v1396_v36, %v977_v5  ;;  %v1005_v27 = vadd.f32 %v1479_v42, %v1764_v21 }
 0x142   : > { %v1055_v48 = vmul.f32 %v1783_v43, %v994_v38  ;;  %v1398_v49 = vpop.f32.mrf.mxu0  ;;  %v996_v6 = vpop.f32.mrf.mxu1 }
 0x143   : > { %v1121_v50 = vmax.f32 %v1089_v44, 0.0  ;;  %v1128_v51 = vmax.f32 %v1096_v45, 0.0  ;;  %v1051_v53 = vmul.f32 %v1783_v43, %v978_v16  ;;  %v1058_v54 = vmul.f32 %v1783_v43, %v1005_v27 }
 0x144   : > { %v1094_v55 = vadd.f32 %v1788_v46, %v1055_v48  ;;  %v1399_v56 = vadd.f32 %v1398_v49, %v1397_v40  ;;  %v997_v41 = vadd.f32 %v1760_v11, %v996_v6  ;;  %v1400_v47 = vpop.f32.mrf.mxu0  ;;  %v1482_v21 = vpop.f32.mrf.mxu1 }
 0x145   : > { %1154 = vst.msk [vmem:[%s1799_s16 + $0x98] sm:$0xff] %vm1134_vm1, %v1121_v50  ;;  %1161 = vst.msk [vmem:[%s1799_s16 + $0xd0] sm:$0xff] %vm1134_vm1, %v1128_v51  ;;  %v1090_v33 = vadd.f32 %v1788_v46, %v1051_v53  ;;  %v1097_v35 = vadd.f32 %v1788_v46, %v1058_v54  ;;  %v1018_v57 = vadd.f32 %v1482_v21, %v1426_v29 }
 0x146   : > { %v1126_v60 = vmax.f32 %v1094_v55, 0.0  ;;  %v981_v61 = vadd.f32 %v1399_v56, %v980_v14  ;;  %v1056_v11 = vmul.f32 %v1783_v43, %v997_v41  ;;  %v1401_v62 = vpop.f32.mrf.mxu0  ;;  %v1009_v63 = vpop.f32.mrf.mxu1 }
 0x147   : > { %v1122_v0 = vmax.f32 %v1090_v33, 0.0  ;;  %v1129_v2 = vmax.f32 %v1097_v35, 0.0  ;;  %v1061_v3 = vmul.f32 %v1783_v43, %v1018_v57  ;;  %v1402_v4 = vadd.f32 %v1401_v62, %v1400_v47 }
 0x148   : > { %1159 = vst.msk [vmem:[%s1799_s16 + $0xc0] sm:$0xff] %vm1134_vm1, %v1126_v60  ;;  %v1052_v5 = vmul.f32 %v1783_v43, %v981_v61  ;;  %v1095_v7 = vadd.f32 %v1788_v46, %v1056_v11  ;;  %v1010_v37 = vadd.f32 %v1766_v26, %v1009_v63  ;;  %v1403_v39 = vpop.f32.mrf.mxu0  ;;  %v1483_v8 = vpop.f32.mrf.mxu1 }
 0x149   : > { %1155 = vst.msk [vmem:[%s1799_s16 + $0xa0] sm:$0xff] %vm1134_vm1, %v1122_v0  ;;  %1162 = vst.msk [vmem:[%s1799_s16 + $0xd8] sm:$0xff] %vm1134_vm1, %v1129_v2  ;;  %v1100_v9 = vadd.f32 %v1788_v46, %v1061_v3  ;;  %v986_v10 = vadd.f32 %v1863_v1, %v1402_v4  ;;  %v1021_v58 = vadd.f32 %v1483_v8, %v1429_v59 }
 0x14a   : > { %v1091_v12 = vadd.f32 %v1788_v46, %v1052_v5  ;;  %v1127_v13 = vmax.f32 %v1095_v7, 0.0  ;;  %v1059_v14 = vmul.f32 %v1783_v43, %v1010_v37  ;;  %v1404_v26 = vpop.f32.mrf.mxu0  ;;  %v1012_v15 = vpop.f32.mrf.mxu1 }
 0x14b   : > { %v1132_v17 = vmax.f32 %v1100_v9, 0.0  ;;  %v1053_v18 = vmul.f32 %v1783_v43, %v986_v10  ;;  %v1062_v19 = vmul.f32 %v1783_v43, %v1021_v58  ;;  %v1405_v20 = vadd.f32 %v1404_v26, %v1403_v39 }
 0x14c   : > { %v1123_v22 = vmax.f32 %v1091_v12, 0.0  ;;  %1160 = vst.msk [vmem:[%s1799_s16 + $0xc8] sm:$0xff] %vm1134_vm1, %v1127_v13  ;;  %v1098_v1 = vadd.f32 %v1788_v46, %v1059_v14  ;;  %v1013_v23 = vadd.f32 %v1770_v31, %v1012_v15 }
 0x14d   : > { %1165 = vst.msk [vmem:[%s1799_s16 + $0xf0] sm:$0xff] %vm1134_vm1, %v1132_v17  ;;  %v1092_v24 = vadd.f32 %v1788_v46, %v1053_v18  ;;  %v1101_v25 = vadd.f32 %v1788_v46, %v1062_v19  ;;  %v989_v28 = vadd.f32 %v1869_v52, %v1405_v20 }
 0x14e   : > { %1156 = vst.msk [vmem:[%s1799_s16 + $0xa8] sm:$0xff] %vm1134_vm1, %v1123_v22  ;;  %v1130_v30 = vmax.f32 %v1098_v1, 0.0  ;;  %v1060_v32 = vmul.f32 %v1783_v43, %v1013_v23 }
 0x14f   : > { %v1124_v34 = vmax.f32 %v1092_v24, 0.0  ;;  %v1133_v36 = vmax.f32 %v1101_v25, 0.0  ;;  %v1054_v38 = vmul.f32 %v1783_v43, %v989_v28 }
 0x150   : > { %1163 = vst.msk [vmem:[%s1799_s16 + $0xe0] sm:$0xff] %vm1134_vm1, %v1130_v30  ;;  %v1099_v31 = vadd.f32 %v1788_v46, %v1060_v32 }
 0x151   : > { %1157 = vst.msk [vmem:[%s1799_s16 + $0xb0] sm:$0xff] %vm1134_vm1, %v1124_v34  ;;  %1166 = vst.msk [vmem:[%s1799_s16 + $0xf8] sm:$0xff] %vm1134_vm1, %v1133_v36  ;;  %v1093_v40 = vadd.f32 %v1788_v46, %v1054_v38 }
 0x152   : > { %v1131_v52 = vmax.f32 %v1099_v31, 0.0 }
 0x153   : > { %v1125_v42 = vmax.f32 %v1093_v40, 0.0 }
 0x154   : > { %1164 = vst.msk [vmem:[%s1799_s16 + $0xe8] sm:$0xff] %vm1134_vm1, %v1131_v52 }
 0x155   : > { %1158 = vst.msk [vmem:[%s1799_s16 + $0xb8] sm:$0xff] %vm1134_vm1, %v1125_v42 }
 0x156 PF: > { %s14_s15 = sadd.s32 1, %s1597_s15  }
 0x157   : > { %p11_p4 = scmp.ge.s32.totalorder %s14_s15, 4  }
 0x159   :  { %13 = sbr.rel (!%p11_p4) target bundleno = 1 (0x1), region = 66 }

// kernel: small_unet2_forward.33
= control target key start
LH: loop header
LB: loop body
LE: loop exit
PB: predicated region body
PF: predicated region fallthrough
CT: control target
= control target key end

     0   :  { %s1030_s19 = smov 0   ;;  %s1265_s0 = inlined_call_operand.vmem [shape: bf16[512,144], index: 0, kind: input, shape index: {}]   ;;  %s1266_s1 = inlined_call_operand.vmem [shape: bf16[144,1], index: 1, kind: input, shape index: {}]   ;;  %s1267_s2 = inlined_call_operand.<no memory space> [shape: f32[1,1], index: 2, kind: input, shape index: {}]   ;;  %s1268_s4 = inlined_call_operand.vmem [shape: f32[512,1], index: 4, kind: output, shape index: {}]   ;;  %s1269_s3 = inlined_call_operand.<no memory space> [shape: f32[1,1], index: 3, kind: input, shape index: {}]  }
   0x1   :  { %v9_v0 = vstv %s1267_s2  ;;  %v11_v1 = vstv %s1269_s3 }
   0x2   :  { %10 = vst [vmem:[#allocation2] sm:$0x1] %v9_v0  ;;  %12 = vst [vmem:[#allocation3] sm:$0x1] %v11_v1 }
   0x3 LB: > { %s834_s20 = sadd.s32 4294967295, %s996_s19   ;;  %p838_p0 = scmp.ge.s32.totalorder %s996_s19, 1  ;;  %s996_s19 = sphi %s1030_s19, %s18_s19  }
   0x4   : > { %p168_p1 = scmp.lt.s32.totalorder %s996_s19, 3 }
   0x6   : > { %p169_p2 = pnand %p838_p0, %p168_p1 }
   0x7   : > { %s839_s3 = sshll.u32 (!%p169_p2), %s834_s20, 5 }
   0x8   : > { %172 = sbr.rel (%p169_p2) target bundleno = 308 (0x134), region = 36  ;;  %p196_p3 = scmp.lt.s32.totalorder (!%p169_p2), %s839_s3, 63 }
   0xd   : > { %v933_v2 = vld [vmem:[%s1266_s1 + $0x38] sm:$0xff]   ;;  %v998_v3 = vmov 0   ;;  %v934_v4 = vld [vmem:[%s1266_s1 + $0x30] sm:$0xff]   ;;  %s1271_s3 = smov (!%p196_p3, %s839_s3), 63  ;;  %v935_v5 = vld [vmem:[%s1266_s1 + $0x28] sm:$0xff]   ;;  %vm457_vm0 = vcmask 130048  }
   0xe   : > { %506 = vmatprep.subr.bf16.mxu0 %v998_v3  ;;  %906 = vmatprep.subr.bf16.mxu1 %v998_v3  ;;  %s905_s26 = sshll.u32 %s1271_s3, 3  ;;  %v936_v6 = vld [vmem:[%s1266_s1 + $0x20] sm:$0xff]   ;;  %v937_v9 = vld [vmem:[%s1266_s1 + $0x18] sm:$0xff]   ;;  %v938_v10 = vld [vmem:[%s1266_s1 + $0x10] sm:$0xff]   ;;  %vm745_vm1 = vcmask 7168  }
   0xf   : > { %507 = vmatpush1.bf16.msra.mxu0 %v933_v2  ;;  %915 = vmatpush1.bf16.msra.mxu1 %v933_v2  ;;  %s1055_s29 = scalar_lea.vmem %s1265_s0, %s905_s26  ;;  %v939_v11 = vld [vmem:[%s1266_s1 + $0x8] sm:$0xff]   ;;  %v940_v12 = vld [vmem:[%s1266_s1] sm:$0xff]   ;;  %s1134_s18 = scalar_lea.vmem %s1268_s4, %s905_s26 }
  0x10   : > { %508 = vmatprep.subr.bf16.mxu0 %v998_v3  ;;  %907 = vmatprep.subr.bf16.mxu1 %v998_v3  ;;  %v944_v7 = vld [vmem:[%s1055_s29 + $0x4] ss:$8 sps:$4 sm:$0xff]   ;;  %v942_v14 = vld [vmem:[%s1055_s29] ss:$8 sps:$4 sm:$0xff]   ;;  %v948_v16 = vld [vmem:[%s1055_s29 + $0x14] ss:$8 sps:$4 sm:$0xff]  }
  0x11   : > { %v947_v8 = vld [vmem:[%s1055_s29 + $0x84] ss:$8 sps:$4 sm:$0xff]   ;;  %885 = vmatprep.mubr.msk.bf16.mxu0 %vm457_vm0, %v944_v7  ;;  %v945_v15 = vld [vmem:[%s1055_s29 + $0x80] ss:$8 sps:$4 sm:$0xff]   ;;  %v950_v17 = vld [vmem:[%s1055_s29 + $0x94] ss:$8 sps:$4 sm:$0xff]  }
  0x12   : > { %893 = vmatprep.mubr.msk.bf16.mxu1 %vm457_vm0, %v947_v8  ;;  %v941_v13 = vld [vmem:[%s1266_s1 + $0x40] sm:$0xff]   ;;  %v952_v18 = vld [vmem:[%s1055_s29 + $0x10] ss:$8 sps:$4 sm:$0xff]   ;;  %v960_v24 = vld [vmem:[%s1055_s29 + $0x34] ss:$8 sps:$4 sm:$0xff]  }
  0x13   : > { %509 = vmatpush1.bf16.msra.mxu0 %v934_v4  ;;  %916 = vmatpush1.bf16.msra.mxu1 %v934_v4  ;;  %v953_v19 = vld [vmem:[%s1055_s29 + $0x90] ss:$8 sps:$4 sm:$0xff]   ;;  %v954_v20 = vld [vmem:[%s1055_s29 + $0x24] ss:$8 sps:$4 sm:$0xff]   ;;  %v958_v22 = vld [vmem:[%s1055_s29 + $0x20] ss:$8 sps:$4 sm:$0xff]  }
  0x14   : > { %510 = vmatprep.subr.bf16.mxu0 %v998_v3  ;;  %908 = vmatprep.subr.bf16.mxu1 %v998_v3  ;;  %v956_v21 = vld [vmem:[%s1055_s29 + $0xa4] ss:$8 sps:$4 sm:$0xff]   ;;  %v959_v23 = vld [vmem:[%s1055_s29 + $0xa0] ss:$8 sps:$4 sm:$0xff]   ;;  %v962_v25 = vld [vmem:[%s1055_s29 + $0xb4] ss:$8 sps:$4 sm:$0xff]  }
  0x15   : > { %v964_v26 = vld [vmem:[%s1055_s29 + $0x30] ss:$8 sps:$4 sm:$0xff]   ;;  %v966_v28 = vld [vmem:[%s1055_s29 + $0x44] ss:$8 sps:$4 sm:$0xff]   ;;  %v970_v30 = vld [vmem:[%s1055_s29 + $0x40] ss:$8 sps:$4 sm:$0xff]  }
  0x16   : > { %v965_v27 = vld [vmem:[%s1055_s29 + $0xb0] ss:$8 sps:$4 sm:$0xff]   ;;  %v968_v29 = vld [vmem:[%s1055_s29 + $0xc4] ss:$8 sps:$4 sm:$0xff]   ;;  %v971_v31 = vld [vmem:[%s1055_s29 + $0xc0] ss:$8 sps:$4 sm:$0xff]  }
  0x17   : > { %511 = vmatpush1.bf16.msra.mxu0 %v935_v5  ;;  %917 = vmatpush1.bf16.msra.mxu1 %v935_v5  ;;  %v972_v32 = vld [vmem:[%s1055_s29 + $0x54] ss:$8 sps:$4 sm:$0xff]   ;;  %v976_v34 = vld [vmem:[%s1055_s29 + $0x50] ss:$8 sps:$4 sm:$0xff]   ;;  %v978_v36 = vld [vmem:[%s1055_s29 + $0x64] ss:$8 sps:$4 sm:$0xff]  }
  0x18   : > { %512 = vmatprep.subr.bf16.mxu0 %v998_v3  ;;  %909 = vmatprep.subr.bf16.mxu1 %v998_v3  ;;  %v974_v33 = vld [vmem:[%s1055_s29 + $0xd4] ss:$8 sps:$4 sm:$0xff]   ;;  %v977_v35 = vld [vmem:[%s1055_s29 + $0xd0] ss:$8 sps:$4 sm:$0xff]   ;;  %v980_v37 = vld [vmem:[%s1055_s29 + $0xe4] ss:$8 sps:$4 sm:$0xff]  }
  0x19   : > { %v982_v38 = vld [vmem:[%s1055_s29 + $0x60] ss:$8 sps:$4 sm:$0xff]   ;;  %v984_v40 = vld [vmem:[%s1055_s29 + $0x74] ss:$8 sps:$4 sm:$0xff]   ;;  %v988_v42 = vld [vmem:[%s1055_s29 + $0x70] ss:$8 sps:$4 sm:$0xff]  }
  0x1a   : > { %v983_v39 = vld [vmem:[%s1055_s29 + $0xe0] ss:$8 sps:$4 sm:$0xff]   ;;  %v986_v41 = vld [vmem:[%s1055_s29 + $0xf4] ss:$8 sps:$4 sm:$0xff]   ;;  %v989_v43 = vld [vmem:[%s1055_s29 + $0xf0] ss:$8 sps:$4 sm:$0xff]  }
  0x1b   : > { %513 = vmatpush1.bf16.msra.mxu0 %v936_v6  ;;  %918 = vmatpush1.bf16.msra.mxu1 %v936_v6  ;;  %v1123_v44 = vld [vmem:[#allocation2] ss:$0 sm:$0xff]  ;;  %v1125_v46 = vld [vmem:[#allocation3] ss:$0 sm:$0xff] }
  0x1c   : > { %514 = vmatprep.subr.bf16.mxu0 %v998_v3  ;;  %910 = vmatprep.subr.bf16.mxu1 %v998_v3 }
  0x1f   : > { %515 = vmatpush1.bf16.msra.mxu0 %v937_v9  ;;  %919 = vmatpush1.bf16.msra.mxu1 %v937_v9 }
  0x20   : > { %516 = vmatprep.subr.bf16.mxu0 %v998_v3  ;;  %911 = vmatprep.subr.bf16.mxu1 %v998_v3 }
  0x23   : > { %517 = vmatpush1.bf16.msra.mxu0 %v938_v10  ;;  %920 = vmatpush1.bf16.msra.mxu1 %v938_v10 }
  0x24   : > { %518 = vmatprep.subr.bf16.mxu0 %v998_v3  ;;  %912 = vmatprep.subr.bf16.mxu1 %v998_v3 }
  0x27   : > { %519 = vmatpush1.bf16.msra.mxu0 %v939_v11  ;;  %921 = vmatpush1.bf16.msra.mxu1 %v939_v11 }
  0x28   : > { %520 = vmatprep.subr.bf16.mxu0 %v998_v3  ;;  %913 = vmatprep.subr.bf16.mxu1 %v998_v3 }
  0x2b   : > { %521 = vmatpush1.bf16.msra.mxu0 %v940_v12  ;;  %922 = vmatpush1.bf16.msra.mxu1 %v940_v12 }
  0x2c   : > { %536 = vmatprep.subr.bf16.mxu0 %v998_v3  ;;  %914 = vmatprep.subr.bf16.mxu1 %v998_v3 }
  0x2f   : > { %537 = vmatpush2.bf16.msra.mxu0 %v941_v13  ;;  %923 = vmatpush2.bf16.msra.mxu1 %v941_v13 }
  0x32   : > { %539 = vmatmul.mubr.bf16.vlgmr.msra.gmra.mxu0 %v942_v14  ;;  %603 = vmatmul.mubr.bf16.vlgmr.msra.gmra.mxu1 %v945_v15 }
  0x33   : > { %886 = vmatprep.mubr.msk.bf16.mxu0 %vm457_vm0, %v948_v16  ;;  %894 = vmatprep.mubr.msk.bf16.mxu1 %vm457_vm0, %v950_v17 }
  0x3a   : > { %547 = vmatmul.mubr.bf16.gmra.mxu0 %v952_v18  ;;  %611 = vmatmul.mubr.bf16.gmra.mxu1 %v953_v19 }
  0x3b   : > { %887 = vmatprep.mubr.msk.bf16.mxu0 %vm457_vm0, %v954_v20  ;;  %895 = vmatprep.mubr.msk.bf16.mxu1 %vm457_vm0, %v956_v21 }
  0x42   : > { %555 = vmatmul.mubr.bf16.gmra.mxu0 %v958_v22  ;;  %619 = vmatmul.mubr.bf16.gmra.mxu1 %v959_v23 }
  0x43   : > { %888 = vmatprep.mubr.msk.bf16.mxu0 %vm457_vm0, %v960_v24  ;;  %896 = vmatprep.mubr.msk.bf16.mxu1 %vm457_vm0, %v962_v25 }
  0x4a   : > { %563 = vmatmul.mubr.bf16.gmra.mxu0 %v964_v26  ;;  %627 = vmatmul.mubr.bf16.gmra.mxu1 %v965_v27 }
  0x4b   : > { %889 = vmatprep.mubr.msk.bf16.mxu0 %vm457_vm0, %v966_v28  ;;  %897 = vmatprep.mubr.msk.bf16.mxu1 %vm457_vm0, %v968_v29 }
  0x52   : > { %571 = vmatmul.mubr.bf16.gmra.mxu0 %v970_v30  ;;  %635 = vmatmul.mubr.bf16.gmra.mxu1 %v971_v31 }
  0x53   : > { %890 = vmatprep.mubr.msk.bf16.mxu0 %vm457_vm0, %v972_v32  ;;  %898 = vmatprep.mubr.msk.bf16.mxu1 %vm457_vm0, %v974_v33 }
  0x5a   : > { %579 = vmatmul.mubr.bf16.gmra.mxu0 %v976_v34  ;;  %643 = vmatmul.mubr.bf16.gmra.mxu1 %v977_v35 }
  0x5b   : > { %891 = vmatprep.mubr.msk.bf16.mxu0 %vm457_vm0, %v978_v36  ;;  %899 = vmatprep.mubr.msk.bf16.mxu1 %vm457_vm0, %v980_v37 }
  0x62   : > { %587 = vmatmul.mubr.bf16.gmra.mxu0 %v982_v38  ;;  %651 = vmatmul.mubr.bf16.gmra.mxu1 %v983_v39 }
  0x63   : > { %892 = vmatprep.mubr.msk.bf16.mxu0 %vm457_vm0, %v984_v40  ;;  %900 = vmatprep.mubr.msk.bf16.mxu1 %vm457_vm0, %v986_v41 }
  0x6a   : > { %595 = vmatmul.mubr.bf16.gmra.mxu0 %v988_v42  ;;  %659 = vmatmul.mubr.bf16.gmra.mxu1 %v989_v43 }
  0xf2   : > { %v540_v45 = vpop.f32.mrf.mxu0  ;;  %v604_v47 = vpop.f32.mrf.mxu1 }
  0xf3   : > { %v674_v48 = vmul.f32 %v1123_v44, %v540_v45  ;;  %v690_v49 = vmul.f32 %v1123_v44, %v604_v47 }
  0xf4   : > { %v542_v50 = vpop.f32.mrf.mxu0  ;;  %v606_v51 = vpop.f32.mrf.mxu1 }
  0xf5   : > { %v713_v52 = vadd.f32 %v1125_v46, %v674_v48  ;;  %v729_v53 = vadd.f32 %v1125_v46, %v690_v49 }
  0xf6   : > { %v543_v54 = vpop.f32.mrf.mxu0  ;;  %v607_v55 = vpop.f32.mrf.mxu1 }
  0xf7   : > { %746 = vst.msk [vmem:[%s1134_s18] sm:$0xff] %vm745_vm1, %v713_v52  ;;  %762 = vst.msk [vmem:[%s1134_s18 + $0x80] sm:$0xff] %vm745_vm1, %v729_v53  ;;  %v675_v56 = vmul.f32 %v1123_v44, %v543_v54  ;;  %v691_v57 = vmul.f32 %v1123_v44, %v607_v55 }
  0xf8   : > { %v545_v58 = vpop.f32.mrf.mxu0  ;;  %v609_v59 = vpop.f32.mrf.mxu1 }
  0xf9   : > { %v714_v60 = vadd.f32 %v1125_v46, %v675_v56  ;;  %v730_v61 = vadd.f32 %v1125_v46, %v691_v57 }
  0xfa   : > { %v548_v62 = vpop.f32.mrf.mxu0  ;;  %v612_v63 = vpop.f32.mrf.mxu1 }
  0xfb   : > { %747 = vst.msk [vmem:[%s1134_s18 + $0x8] sm:$0xff] %vm745_vm1, %v714_v60  ;;  %763 = vst.msk [vmem:[%s1134_s18 + $0x88] sm:$0xff] %vm745_vm1, %v730_v61  ;;  %v676_v0 = vmul.f32 %v1123_v44, %v548_v62  ;;  %v692_v1 = vmul.f32 %v1123_v44, %v612_v63 }
  0xfc   : > { %v550_v2 = vpop.f32.mrf.mxu0  ;;  %v614_v3 = vpop.f32.mrf.mxu1 }
  0xfd   : > { %v715_v4 = vadd.f32 %v1125_v46, %v676_v0  ;;  %v731_v5 = vadd.f32 %v1125_v46, %v692_v1 }
  0xfe   : > { %v551_v6 = vpop.f32.mrf.mxu0  ;;  %v615_v7 = vpop.f32.mrf.mxu1 }
  0xff   : > { %748 = vst.msk [vmem:[%s1134_s18 + $0x10] sm:$0xff] %vm745_vm1, %v715_v4  ;;  %764 = vst.msk [vmem:[%s1134_s18 + $0x90] sm:$0xff] %vm745_vm1, %v731_v5  ;;  %v677_v8 = vmul.f32 %v1123_v44, %v551_v6  ;;  %v693_v9 = vmul.f32 %v1123_v44, %v615_v7 }
 0x100   : > { %v553_v10 = vpop.f32.mrf.mxu0  ;;  %v617_v11 = vpop.f32.mrf.mxu1 }
 0x101   : > { %v716_v12 = vadd.f32 %v1125_v46, %v677_v8  ;;  %v732_v13 = vadd.f32 %v1125_v46, %v693_v9 }
 0x102   : > { %v556_v14 = vpop.f32.mrf.mxu0  ;;  %v620_v15 = vpop.f32.mrf.mxu1 }
 0x103   : > { %749 = vst.msk [vmem:[%s1134_s18 + $0x18] sm:$0xff] %vm745_vm1, %v716_v12  ;;  %765 = vst.msk [vmem:[%s1134_s18 + $0x98] sm:$0xff] %vm745_vm1, %v732_v13  ;;  %v678_v16 = vmul.f32 %v1123_v44, %v556_v14  ;;  %v694_v17 = vmul.f32 %v1123_v44, %v620_v15 }
 0x104   : > { %v558_v18 = vpop.f32.mrf.mxu0  ;;  %v622_v19 = vpop.f32.mrf.mxu1 }
 0x105   : > { %v717_v20 = vadd.f32 %v1125_v46, %v678_v16  ;;  %v733_v21 = vadd.f32 %v1125_v46, %v694_v17 }
 0x106   : > { %v559_v22 = vpop.f32.mrf.mxu0  ;;  %v623_v23 = vpop.f32.mrf.mxu1 }
 0x107   : > { %750 = vst.msk [vmem:[%s1134_s18 + $0x20] sm:$0xff] %vm745_vm1, %v717_v20  ;;  %766 = vst.msk [vmem:[%s1134_s18 + $0xa0] sm:$0xff] %vm745_vm1, %v733_v21  ;;  %v679_v24 = vmul.f32 %v1123_v44, %v559_v22  ;;  %v695_v25 = vmul.f32 %v1123_v44, %v623_v23 }
 0x108   : > { %v561_v26 = vpop.f32.mrf.mxu0  ;;  %v625_v27 = vpop.f32.mrf.mxu1 }
 0x109   : > { %v718_v28 = vadd.f32 %v1125_v46, %v679_v24  ;;  %v734_v29 = vadd.f32 %v1125_v46, %v695_v25 }
 0x10a   : > { %v564_v30 = vpop.f32.mrf.mxu0  ;;  %v628_v31 = vpop.f32.mrf.mxu1 }
 0x10b   : > { %751 = vst.msk [vmem:[%s1134_s18 + $0x28] sm:$0xff] %vm745_vm1, %v718_v28  ;;  %767 = vst.msk [vmem:[%s1134_s18 + $0xa8] sm:$0xff] %vm745_vm1, %v734_v29  ;;  %v680_v32 = vmul.f32 %v1123_v44, %v564_v30  ;;  %v696_v33 = vmul.f32 %v1123_v44, %v628_v31 }
 0x10c   : > { %v566_v34 = vpop.f32.mrf.mxu0  ;;  %v630_v35 = vpop.f32.mrf.mxu1 }
 0x10d   : > { %v719_v36 = vadd.f32 %v1125_v46, %v680_v32  ;;  %v735_v37 = vadd.f32 %v1125_v46, %v696_v33 }
 0x10e   : > { %v567_v38 = vpop.f32.mrf.mxu0  ;;  %v631_v39 = vpop.f32.mrf.mxu1 }
 0x10f   : > { %752 = vst.msk [vmem:[%s1134_s18 + $0x30] sm:$0xff] %vm745_vm1, %v719_v36  ;;  %768 = vst.msk [vmem:[%s1134_s18 + $0xb0] sm:$0xff] %vm745_vm1, %v735_v37  ;;  %v681_v40 = vmul.f32 %v1123_v44, %v567_v38  ;;  %v697_v41 = vmul.f32 %v1123_v44, %v631_v39 }
 0x110   : > { %v569_v42 = vpop.f32.mrf.mxu0  ;;  %v633_v43 = vpop.f32.mrf.mxu1 }
 0x111   : > { %v720_v45 = vadd.f32 %v1125_v46, %v681_v40  ;;  %v736_v47 = vadd.f32 %v1125_v46, %v697_v41 }
 0x112   : > { %v572_v48 = vpop.f32.mrf.mxu0  ;;  %v636_v49 = vpop.f32.mrf.mxu1 }
 0x113   : > { %753 = vst.msk [vmem:[%s1134_s18 + $0x38] sm:$0xff] %vm745_vm1, %v720_v45  ;;  %769 = vst.msk [vmem:[%s1134_s18 + $0xb8] sm:$0xff] %vm745_vm1, %v736_v47  ;;  %v682_v50 = vmul.f32 %v1123_v44, %v572_v48  ;;  %v698_v51 = vmul.f32 %v1123_v44, %v636_v49 }
 0x114   : > { %v574_v52 = vpop.f32.mrf.mxu0  ;;  %v638_v53 = vpop.f32.mrf.mxu1 }
 0x115   : > { %v721_v54 = vadd.f32 %v1125_v46, %v682_v50  ;;  %v737_v55 = vadd.f32 %v1125_v46, %v698_v51 }
 0x116   : > { %v575_v56 = vpop.f32.mrf.mxu0  ;;  %v639_v57 = vpop.f32.mrf.mxu1 }
 0x117   : > { %754 = vst.msk [vmem:[%s1134_s18 + $0x40] sm:$0xff] %vm745_vm1, %v721_v54  ;;  %770 = vst.msk [vmem:[%s1134_s18 + $0xc0] sm:$0xff] %vm745_vm1, %v737_v55  ;;  %v683_v58 = vmul.f32 %v1123_v44, %v575_v56  ;;  %v699_v59 = vmul.f32 %v1123_v44, %v639_v57 }
 0x118   : > { %v577_v60 = vpop.f32.mrf.mxu0  ;;  %v641_v61 = vpop.f32.mrf.mxu1 }
 0x119   : > { %v722_v62 = vadd.f32 %v1125_v46, %v683_v58  ;;  %v738_v63 = vadd.f32 %v1125_v46, %v699_v59 }
 0x11a   : > { %v580_v0 = vpop.f32.mrf.mxu0  ;;  %v644_v1 = vpop.f32.mrf.mxu1 }
 0x11b   : > { %755 = vst.msk [vmem:[%s1134_s18 + $0x48] sm:$0xff] %vm745_vm1, %v722_v62  ;;  %771 = vst.msk [vmem:[%s1134_s18 + $0xc8] sm:$0xff] %vm745_vm1, %v738_v63  ;;  %v684_v2 = vmul.f32 %v1123_v44, %v580_v0  ;;  %v700_v3 = vmul.f32 %v1123_v44, %v644_v1 }
 0x11c   : > { %v582_v4 = vpop.f32.mrf.mxu0  ;;  %v646_v5 = vpop.f32.mrf.mxu1 }
 0x11d   : > { %v723_v6 = vadd.f32 %v1125_v46, %v684_v2  ;;  %v739_v7 = vadd.f32 %v1125_v46, %v700_v3 }
 0x11e   : > { %v583_v8 = vpop.f32.mrf.mxu0  ;;  %v647_v9 = vpop.f32.mrf.mxu1 }
 0x11f   : > { %756 = vst.msk [vmem:[%s1134_s18 + $0x50] sm:$0xff] %vm745_vm1, %v723_v6  ;;  %772 = vst.msk [vmem:[%s1134_s18 + $0xd0] sm:$0xff] %vm745_vm1, %v739_v7  ;;  %v685_v10 = vmul.f32 %v1123_v44, %v583_v8  ;;  %v701_v11 = vmul.f32 %v1123_v44, %v647_v9 }
 0x120   : > { %v585_v12 = vpop.f32.mrf.mxu0  ;;  %v649_v13 = vpop.f32.mrf.mxu1 }
 0x121   : > { %v724_v14 = vadd.f32 %v1125_v46, %v685_v10  ;;  %v740_v15 = vadd.f32 %v1125_v46, %v701_v11 }
 0x122   : > { %v588_v16 = vpop.f32.mrf.mxu0  ;;  %v652_v17 = vpop.f32.mrf.mxu1 }
 0x123   : > { %757 = vst.msk [vmem:[%s1134_s18 + $0x58] sm:$0xff] %vm745_vm1, %v724_v14  ;;  %773 = vst.msk [vmem:[%s1134_s18 + $0xd8] sm:$0xff] %vm745_vm1, %v740_v15  ;;  %v686_v18 = vmul.f32 %v1123_v44, %v588_v16  ;;  %v702_v19 = vmul.f32 %v1123_v44, %v652_v17 }
 0x124   : > { %v590_v20 = vpop.f32.mrf.mxu0  ;;  %v654_v21 = vpop.f32.mrf.mxu1 }
 0x125   : > { %v725_v22 = vadd.f32 %v1125_v46, %v686_v18  ;;  %v741_v23 = vadd.f32 %v1125_v46, %v702_v19 }
 0x126   : > { %v591_v24 = vpop.f32.mrf.mxu0  ;;  %v655_v25 = vpop.f32.mrf.mxu1 }
 0x127   : > { %758 = vst.msk [vmem:[%s1134_s18 + $0x60] sm:$0xff] %vm745_vm1, %v725_v22  ;;  %774 = vst.msk [vmem:[%s1134_s18 + $0xe0] sm:$0xff] %vm745_vm1, %v741_v23  ;;  %v687_v26 = vmul.f32 %v1123_v44, %v591_v24  ;;  %v703_v27 = vmul.f32 %v1123_v44, %v655_v25 }
 0x128   : > { %v593_v28 = vpop.f32.mrf.mxu0  ;;  %v657_v29 = vpop.f32.mrf.mxu1 }
 0x129   : > { %v726_v30 = vadd.f32 %v1125_v46, %v687_v26  ;;  %v742_v31 = vadd.f32 %v1125_v46, %v703_v27 }
 0x12a   : > { %v596_v32 = vpop.f32.mrf.mxu0  ;;  %v660_v33 = vpop.f32.mrf.mxu1 }
 0x12b   : > { %759 = vst.msk [vmem:[%s1134_s18 + $0x68] sm:$0xff] %vm745_vm1, %v726_v30  ;;  %775 = vst.msk [vmem:[%s1134_s18 + $0xe8] sm:$0xff] %vm745_vm1, %v742_v31  ;;  %v688_v34 = vmul.f32 %v1123_v44, %v596_v32  ;;  %v704_v35 = vmul.f32 %v1123_v44, %v660_v33 }
 0x12c   : > { %v598_v36 = vpop.f32.mrf.mxu0  ;;  %v662_v37 = vpop.f32.mrf.mxu1 }
 0x12d   : > { %v727_v38 = vadd.f32 %v1125_v46, %v688_v34  ;;  %v743_v39 = vadd.f32 %v1125_v46, %v704_v35 }
 0x12e   : > { %v599_v40 = vpop.f32.mrf.mxu0  ;;  %v663_v41 = vpop.f32.mrf.mxu1 }
 0x12f   : > { %760 = vst.msk [vmem:[%s1134_s18 + $0x70] sm:$0xff] %vm745_vm1, %v727_v38  ;;  %776 = vst.msk [vmem:[%s1134_s18 + $0xf0] sm:$0xff] %vm745_vm1, %v743_v39  ;;  %v689_v42 = vmul.f32 %v1123_v44, %v599_v40  ;;  %v705_v43 = vmul.f32 %v1123_v44, %v663_v41 }
 0x130   : > { %v601_v45 = vpop.f32.mrf.mxu0  ;;  %v665_v47 = vpop.f32.mrf.mxu1 }
 0x131   : > { %v728_v48 = vadd.f32 %v1125_v46, %v689_v42  ;;  %v744_v49 = vadd.f32 %v1125_v46, %v705_v43 }
 0x133   : > { %761 = vst.msk [vmem:[%s1134_s18 + $0x78] sm:$0xff] %vm745_vm1, %v728_v48  ;;  %777 = vst.msk [vmem:[%s1134_s18 + $0xf8] sm:$0xff] %vm745_vm1, %v744_v49 }
 0x134 PF: > { %s18_s19 = sadd.s32 1, %s996_s19  }
 0x135   : > { %p15_p4 = scmp.ge.s32.totalorder %s18_s19, 4  }
 0x137   :  { %17 = sbr.rel (!%p15_p4) target bundleno = 3 (0x3), region = 66 }

</bundles_post_ra>
